<compile_context>
chip_gen: v5e
topology: v5e:2x2
jax: 0.10.0
libtpu: 0.0.40
codegen_flags: <defaults>
</compile_context>

<pallas_src>
import numpy as np
import jax
import jax.numpy as jnp
from jax.experimental import pallas as pl
from jax.experimental.pallas import tpu as pltpu

BN_EPS = 1e-5


# ---------------------------------------------------------------------------
# small helpers
# ---------------------------------------------------------------------------
def _cdiv(a, b):
    return -(-a // b)


def _round_up(x, m):
    return _cdiv(x, m) * m


def _bn_from_stats(stats, count, gamma, beta):
    """stats: (2, C) [sum; sum_sq] -> per-channel scale/shift (training-mode)."""
    mean = stats[0] / count
    var = jnp.maximum(stats[1] / count - mean * mean, 0.0)
    scale = gamma * jax.lax.rsqrt(var + BN_EPS)
    shift = beta - mean * scale
    return scale, shift


# ---------------------------------------------------------------------------
# Pallas kernels
# ---------------------------------------------------------------------------
def _gemm_stats_kernel(a_ref, b_ref, y_ref, st_ref):
    """Y = A @ B (f32 acc); per-lane [sum; sum_sq] in rows 0/1 of the (8, L)
    stats tile (rows 2-7 are zero padding for sublane alignment)."""
    acc = jnp.dot(a_ref[...], b_ref[...], preferred_element_type=jnp.float32)
    y_ref[...] = acc.astype(y_ref.dtype)
    L = acc.shape[1]
    s = jnp.sum(acc, axis=0, keepdims=True)
    ss = jnp.sum(acc * acc, axis=0, keepdims=True)
    rows = jax.lax.broadcasted_iota(jnp.int32, (8, L), 0)
    st_ref[...] = jnp.where(rows == 0, s, jnp.where(rows == 1, ss, 0.0))


def _tap_offsets(Wp):
    # tap t = 3*a + b reads input pixel (h + a - 1, w + b - 1); on the padded
    # flattened grid that is a pure row shift by a*Wp + b (leading pad = Wp+1).
    return tuple(a * Wp + b for a in range(3) for b in range(3))


def _accumulate_taps(a_ref, h_ref, w_ref, offs):
    """sum_t  A[rows + offs[t], :] @ W[t]  with f32 MXU accumulation."""
    tm = a_ref.shape[0]
    a_full = jnp.concatenate([a_ref[...], h_ref[...]], axis=0)
    a_full = a_full.astype(jnp.float32)       # 32-bit sublane shifts use the
    acc = None                                # most robust relayout path
    for t, o in enumerate(offs):
        tap = a_full[o:o + tm, :].astype(jnp.bfloat16)
        d = jnp.dot(tap, w_ref[t], preferred_element_type=jnp.float32)
        acc = d if acc is None else acc + d
    return acc


def _make_deconv_stats_kernel(Wp):
    offs = _tap_offsets(Wp)

    def kernel(a_ref, h_ref, m_ref, w_ref, y_ref, st_ref):
        acc = _accumulate_taps(a_ref, h_ref, w_ref, offs)
        y_ref[...] = acc.astype(y_ref.dtype)
        L = acc.shape[1]
        am = acc * m_ref[...]                 # mask out padded / garbage rows
        s = jnp.sum(am, axis=0, keepdims=True)
        ss = jnp.sum(am * am, axis=0, keepdims=True)
        rows = jax.lax.broadcasted_iota(jnp.int32, (8, L), 0)
        st_ref[...] = jnp.where(rows == 0, s, jnp.where(rows == 1, ss, 0.0))

    return kernel


def _make_deconv_tanh_kernel(Wp):
    offs = _tap_offsets(Wp)

    def kernel(a_ref, h_ref, w_ref, b_ref, y_ref):
        acc = _accumulate_taps(a_ref, h_ref, w_ref, offs)
        y_ref[...] = jnp.tanh(acc + b_ref[...]).astype(y_ref.dtype)

    return kernel


# ---------------------------------------------------------------------------
# Pallas wrappers
# ---------------------------------------------------------------------------
def gemm_stats(A, B, out_dtype=jnp.bfloat16):
    """(M, K) @ (K, L) with fused per-lane sum / sum_sq (layer 1)."""
    M, K = A.shape
    L = B.shape[1]
    Mp = _round_up(max(M, 16), 16)
    tm = Mp if Mp <= 512 else 256
    Mp = _round_up(Mp, tm)
    A = jnp.pad(A.astype(jnp.bfloat16), ((0, Mp - M), (0, 0)))
    n = Mp // tm
    y, st = pl.pallas_call(
        _gemm_stats_kernel,
        out_shape=(jax.ShapeDtypeStruct((Mp, L), out_dtype),
                   jax.ShapeDtypeStruct((n * 8, L), jnp.float32)),
        grid_spec=pltpu.PrefetchScalarGridSpec(
            num_scalar_prefetch=0, grid=(n,),
            in_specs=[pl.BlockSpec((tm, K), lambda i: (i, 0)),
                      pl.BlockSpec((K, L), lambda i: (0, 0))],
            out_specs=(pl.BlockSpec((tm, L), lambda i: (i, 0)),
                       pl.BlockSpec((8, L), lambda i: (i, 0)))),
        compiler_params=pltpu.CompilerParams(
            dimension_semantics=("parallel",)),
    )(A, B.astype(jnp.bfloat16))
    return y[:M], st.reshape(n, 8, L)[:, :2].sum(axis=0)


def _halo_index_map(step):
    def index_map(i):
        return ((i + 1) * step, 0)
    return index_map


def fused_deconv_s2(x, w9, *, bias=None, out_dtype=jnp.bfloat16,
                    vmem_budget=44 * 2**20):
    """Fused stride-2 ConvTranspose2d(k=4, p=1) as a 9-tap row-shifted GEMM.

    x:  (N, H, W, Cin) activation.
    w9: (9, Cin, 4*Cout) combined sub-pixel weight (tap-major).
    Returns (y_grid, stats) with batch-norm stats fused in the epilogue, or
    just y_grid (bias + tanh fused) when `bias` is given.  y_grid rows live on
    the per-image padded grid (H+2, W+2); garbage rows are dropped later.
    """
    N, H, W, Cin = x.shape
    n_taps, Cin_w, L = w9.shape
    assert n_taps == 9 and Cin_w == Cin
    Hp, Wp = H + 2, W + 2
    Mp = N * Hp * Wp                 # output rows on the padded grid
    LP = Wp + 1                      # leading zero rows -> all tap offsets >= 0

    # ---- tiling (VMEM-aware, halo-aligned, >=8 grid steps when possible)
    th2 = _round_up(2 * Wp + 2, 16)
    w_bytes = 2 * 9 * Cin * L * 2                    # double-buffered weight
    per_row = 12 * (Cin + L)                         # blocks + f32 acc + temps
    tm_vmem = max((vmem_budget - w_bytes) // per_row, th2)
    tm_par = _round_up(max(_cdiv(Mp, 8), th2), th2)
    tm = max(th2, (min(8192, tm_vmem, tm_par) // th2) * th2)
    n_blocks = _cdiv(Mp, tm)
    rows_a = n_blocks * tm + th2

    # ---- padded, flattened A (bf16): halo pad + flatten is a single JAX copy
    xpad = jnp.pad(x.astype(jnp.bfloat16), ((0, 0), (1, 1), (1, 1), (0, 0)))
    flat = xpad.reshape(Mp, Cin)
    A = jnp.pad(flat, ((LP, rows_a - LP - Mp), (0, 0)))

    est = w_bytes + per_row * tm + 2 * th2 * Cin * 2 + 64 * L * 4 + 2 * 2**20
    cparams = pltpu.CompilerParams(
        dimension_semantics=("parallel",),
        vmem_limit_bytes=int(min(max(2 * est, 32 * 2**20), 56 * 2**20)))

    a_spec = pl.BlockSpec((tm, Cin), lambda i: (i, 0))
    h_spec = pl.BlockSpec((th2, Cin), _halo_index_map(tm // th2))
    w_spec = pl.BlockSpec((9, Cin, L), lambda i: (0, 0, 0))
    y_spec = pl.BlockSpec((tm, L), lambda i: (i, 0))

    if bias is None:
        # validity mask (valid interior rows of real images only) - a static
        # compile-time constant; used only for the fused batch-norm statistics.
        rr = np.arange(n_blocks * tm)
        hp = (rr % (Hp * Wp)) // Wp
        wp = rr % Wp
        valid = ((rr < Mp) & (hp >= 1) & (hp <= Hp - 2)
                 & (wp >= 1) & (wp <= Wp - 2))
        mask = jnp.asarray(valid.astype(np.float32)[:, None])
        y, st = pl.pallas_call(
            _make_deconv_stats_kernel(Wp),
            out_shape=(jax.ShapeDtypeStruct((n_blocks * tm, L), out_dtype),
                       jax.ShapeDtypeStruct((n_blocks * 8, L), jnp.float32)),
            grid_spec=pltpu.PrefetchScalarGridSpec(
                num_scalar_prefetch=0, grid=(n_blocks,),
                in_specs=[a_spec, h_spec,
                          pl.BlockSpec((tm, 1), lambda i: (i, 0)),
                          w_spec],
                out_specs=(y_spec, pl.BlockSpec((8, L), lambda i: (i, 0)))),
            compiler_params=cparams,
        )(A, A, mask, w9)
        return y, st.reshape(n_blocks, 8, L)[:, :2].sum(axis=0)

    y = pl.pallas_call(
        _make_deconv_tanh_kernel(Wp),
        out_shape=jax.ShapeDtypeStruct((n_blocks * tm, L), out_dtype),
        grid_spec=pltpu.PrefetchScalarGridSpec(
            num_scalar_prefetch=0, grid=(n_blocks,),
            in_specs=[a_spec, h_spec, w_spec,
                      pl.BlockSpec((1, L), lambda i: (0, 0))],
            out_specs=y_spec),
        compiler_params=cparams,
    )(A, A, w9, bias.astype(jnp.float32))
    return y


# ---------------------------------------------------------------------------
# Inter-layer layout pass (JAX): BN apply + ReLU ride this single copy
# ---------------------------------------------------------------------------
def _grid_to_nhwc(y_grid, N, H, W, Cout, scale=None, shift=None, relu=False,
                  out_dtype=jnp.bfloat16):
    """(padded-grid rows, 4*Cout) raw GEMM output -> NHWC (N, 2H, 2W, Cout)."""
    Hp, Wp = H + 2, W + 2
    y = y_grid[:N * Hp * Wp].astype(jnp.float32)
    if scale is not None:
        y = y * jnp.tile(scale, 4)[None, :] + jnp.tile(shift, 4)[None, :]
    if relu:
        y = jnp.maximum(y, 0.0)
    y = y.reshape(N, Hp, Wp, 2, 2, Cout)[:, 1:Hp - 1, 1:Wp - 1]
    y = y.transpose(0, 1, 3, 2, 4, 5).reshape(N, 2 * H, 2 * W, Cout)
    return y.astype(out_dtype)


# ---------------------------------------------------------------------------
# Parameter preparation (done once, outside the forward)
# ---------------------------------------------------------------------------
def _combined_weight_s2(W):
    """PyTorch ConvTranspose2d weight (Cin, Cout, 4, 4), stride=2, padding=1
    -> combined sub-pixel weight (9, Cin, 4*Cout).  Tap t = 3a+b reads input
    pixel (h+a-1, w+b-1); lane order is (r, s, cout) for output (2h+r, 2w+s);
    kernel index kh = r+3-2a, kw = s+3-2b (zero where out of range)."""
    Cin, Cout, k, _ = W.shape
    assert k == 4
    taps = []
    for a in range(3):
        for b in range(3):
            slab = jnp.zeros((Cin, 2, 2, Cout), W.dtype)
            for r in range(2):
                kh = r + 3 - 2 * a
                if not (0 <= kh < k):
                    continue
                for s in range(2):
                    kw = s + 3 - 2 * b
                    if not (0 <= kw < k):
                        continue
                    slab = slab.at[:, r, s, :].set(W[:, :, kh, kw])
            taps.append(slab.reshape(Cin, 4 * Cout))
    return jnp.stack(taps, axis=0)


def init_generator_params(key, nz, ngf, nc):
    specs = [(nz, ngf * 8, True), (ngf * 8, ngf * 4, True),
             (ngf * 4, ngf * 2, True), (ngf * 2, ngf, True), (ngf, nc, False)]
    params = []
    for cin, cout, bn in specs:
        key, kw, kb, kg, kt = jax.random.split(key, 5)
        params.append(dict(
            W=0.02 * jax.random.normal(kw, (cin, cout, 4, 4), jnp.float32),
            b=0.02 * jax.random.normal(kb, (cout,), jnp.float32),
            bn=bn,
            gamma=(1.0 + 0.1 * jax.random.normal(kg, (cout,), jnp.float32))
            if bn else None,
            beta=(0.1 * jax.random.normal(kt, (cout,), jnp.float32))
            if bn else None))
    return params


def pack_generator_params(params):
    p1, p2, p3, p4, p5 = params
    nz, C1 = p1["W"].shape[0], p1["W"].shape[1]
    return dict(
        # layer 1: 4x4 spatial taps folded into the lane dim, order (kh,kw,co)
        B1=jnp.transpose(p1["W"], (0, 2, 3, 1)).reshape(nz, 16 * C1)
        .astype(jnp.bfloat16),
        g1=p1["gamma"], b1=p1["beta"],
        # conv biases of BN layers are dropped: batch-stat BN cancels them.
        mid=[(_combined_weight_s2(p["W"]).astype(jnp.bfloat16),
              p["gamma"], p["beta"]) for p in (p2, p3, p4)],
        W5=_combined_weight_s2(p5["W"]).astype(jnp.bfloat16),
        bias5=jnp.tile(p5["b"], 4).reshape(1, -1).astype(jnp.float32))


# ---------------------------------------------------------------------------
# Forward pass
# ---------------------------------------------------------------------------
def generator_forward(packed, z):
    N, nz = z.shape[0], z.shape[1]
    C1 = packed["B1"].shape[1] // 16

    # Layer 1: ConvT(k4,s1,p0) on a 1x1 input == GEMM; BN stats fused.
    y1, s1 = gemm_stats(z.reshape(N, nz), packed["B1"])
    sc1, sh1 = _bn_from_stats(s1.reshape(2, 16, C1).sum(axis=1),
                              float(N * 16), packed["g1"], packed["b1"])
    a1 = jnp.maximum(y1.astype(jnp.float32) * jnp.tile(sc1, 16)[None]
                     + jnp.tile(sh1, 16)[None], 0.0)
    x = a1.reshape(N, 4, 4, C1).astype(jnp.bfloat16)

    # Layers 2-4: fused deconv GEMM + in-kernel BN stats; BN apply + phase
    # interleave ride the single inter-layer layout pass.
    for w9, gamma, beta in packed["mid"]:
        _, H, W, _ = x.shape
        Cout = w9.shape[2] // 4
        y, st = fused_deconv_s2(x, w9)
        sc, sh = _bn_from_stats(st.reshape(2, 4, Cout).sum(axis=1),
                                float(N * H * W * 4), gamma, beta)
        x = _grid_to_nhwc(y, N, H, W, Cout, scale=sc, shift=sh, relu=True,
                          out_dtype=jnp.bfloat16)

    # Layer 5: fused deconv + bias + tanh in the epilogue.
    _, H, W, _ = x.shape
    nc_out = packed["W5"].shape[2] // 4
    y5 = fused_deconv_s2(x, packed["W5"], bias=packed["bias5"],
                         out_dtype=jnp.float32)
    img = _grid_to_nhwc(y5, N, H, W, nc_out, relu=False,
                        out_dtype=jnp.float32)
    return jnp.transpose(img, (0, 3, 1, 2))       # NCHW (N, nc, 64, 64)


# ---------------------------------------------------------------------------
# Pure-JAX reference (faithful to the PyTorch module, f32 throughout)
# ---------------------------------------------------------------------------
def _convT_ref(x, W, b, stride, pad):
    N, Cin, H, Wd = x.shape
    _, Cout, k, _ = W.shape
    y = jnp.zeros((N, Cout, (H - 1) * stride + k, (Wd - 1) * stride + k),
                  jnp.float32)
    for kh in range(k):
        for kw in range(k):
            contrib = jnp.einsum('nchw,cd->ndhw', x, W[:, :, kh, kw])
            y = y.at[:, :, kh:kh + (H - 1) * stride + 1:stride,
                     kw:kw + (Wd - 1) * stride + 1:stride].add(contrib)
    Hout = (H - 1) * stride - 2 * pad + k
    Wout = (Wd - 1) * stride - 2 * pad + k
    return y[:, :, pad:pad + Hout, pad:pad + Wout] + b[None, :, None, None]


def _bn_relu_ref(x, gamma, beta):
    mean = x.mean(axis=(0, 2, 3), keepdims=True)
    var = x.var(axis=(0, 2, 3), keepdims=True)
    xh = (x - mean) / jnp.sqrt(var + BN_EPS)
    return jnp.maximum(xh * gamma[None, :, None, None]
                       + beta[None, :, None, None], 0.0)


def generator_reference(params, z):
    x = z
    for i, p in enumerate(params):
        stride, pad = (1, 0) if i == 0 else (2, 1)
        x = _convT_ref(x, p["W"], p["b"], stride, pad)
        if p["bn"]:
            x = _bn_relu_ref(x, p["gamma"], p["beta"])
    return jnp.tanh(x)


# ---------------------------------------------------------------------------
if __name__ == "__main__":
    nz, ngf, nc, N = 16, 8, 3, 2
    key = jax.random.PRNGKey(0)
    kp, kz = jax.random.split(key)
    params = init_generator_params(kp, nz, ngf, nc)
    packed = pack_generator_params(params)
    z = jax.random.normal(kz, (N, nz, 1, 1), jnp.float32)

    out = jax.jit(lambda zz: generator_forward(packed, zz))(z)
    out = jax.block_until_ready(out)

    assert out.shape == (N, nc, 64, 64), out.shape
    assert bool(jnp.all(jnp.isfinite(out)))
    assert bool(jnp.all(jnp.abs(out) <= 1.0))      # tanh range

    ref = generator_reference(params, z)
    err = float(jnp.max(jnp.abs(out - ref)))
    assert err < 0.08, f"max abs error vs reference: {err}"
    print("KERNEL_OK")
</pallas_src>

<mosaic_0001>
module attributes {stable_mosaic.version = 11 : i64} {
  func.func @_gemm_stats_kernel(%arg0: i32, %arg1: memref<16x16xbf16, #tpu.memory_space<vmem>>, %arg2: memref<16x1024xbf16, #tpu.memory_space<vmem>>, %arg3: memref<16x1024xbf16, #tpu.memory_space<vmem>>, %arg4: memref<8x1024xf32, #tpu.memory_space<vmem>>) attributes {dimension_semantics = [#tpu.dimension_semantics<parallel>], iteration_bounds = array<i64: 1>, scalar_prefetch = 0 : i64, scratch_operands = 0 : i64, tpu.core_type = #tpu.core_type<tc>, window_params = [{transform_indices = @transform_0, window_bounds = array<i64: 16, 16>}, {pipeline_mode = #tpu.pipeline_mode<synchronous>, transform_indices = @transform_1, window_bounds = array<i64: 16, 1024>}, {transform_indices = @transform_2, window_bounds = array<i64: 16, 1024>}, {transform_indices = @transform_3, window_bounds = array<i64: 8, 1024>}]} {
    %c0 = arith.constant 0 : index
    %c0_0 = arith.constant 0 : index
    %0 = vector.load %arg1[%c0, %c0_0] : memref<16x16xbf16, #tpu.memory_space<vmem>>, vector<16x16xbf16>
    %c0_1 = arith.constant 0 : index
    %c0_2 = arith.constant 0 : index
    %1 = vector.load %arg2[%c0_1, %c0_2] : memref<16x1024xbf16, #tpu.memory_space<vmem>>, vector<16x1024xbf16>
    %cst = arith.constant dense<0.000000e+00> : vector<16x1024xf32>
    %2 = tpu.matmul %0, %1, %cst {dimension_numbers = #tpu.dot_dimension_numbers<[1], [0], [0], [1], [0, 0, 1, 1], [], []>} : vector<16x16xbf16>, vector<16x1024xbf16>, vector<16x1024xf32> -> vector<16x1024xf32>
    %3 = arith.truncf %2 : vector<16x1024xf32> to vector<16x1024xbf16>
    %c0_3 = arith.constant 0 : index
    %c0_4 = arith.constant 0 : index
    %4 = vector.load %arg3[%c0_3, %c0_4] : memref<16x1024xbf16, #tpu.memory_space<vmem>>, vector<16x1024xbf16>
    tpu.vector_store %arg3[%c0_3, %c0_4], %3 {strides = array<i32>} : memref<16x1024xbf16, #tpu.memory_space<vmem>>, vector<16x1024xbf16>,
    %cst_5 = arith.constant dense<0.000000e+00> : vector<1024xf32>
    %5 = vector.multi_reduction <add>, %2, %cst_5 [0] : vector<16x1024xf32> to vector<1024xf32>
    %6 = vector.shape_cast %5 : vector<1024xf32> to vector<1x1024xf32>
    %7 = arith.mulf %2, %2 : vector<16x1024xf32>
    %cst_6 = arith.constant dense<0.000000e+00> : vector<1024xf32>
    %8 = vector.multi_reduction <add>, %7, %cst_6 [0] : vector<16x1024xf32> to vector<1024xf32>
    %9 = vector.shape_cast %8 : vector<1024xf32> to vector<1x1024xf32>
    %10 = tpu.iota {dimensions = array<i32: 0>} : vector<8x1024xi32>
    %c0_i32 = arith.constant 0 : i32
    %11 = vector.broadcast %c0_i32 : i32 to vector<8x1024xi32>
    %12 = arith.cmpi eq, %10, %11 : vector<8x1024xi32>
    %c1_i32 = arith.constant 1 : i32
    %13 = vector.broadcast %c1_i32 : i32 to vector<8x1024xi32>
    %14 = arith.cmpi eq, %10, %13 : vector<8x1024xi32>
    %cst_7 = arith.constant 0.000000e+00 : f32
    %15 = vector.shape_cast %9 : vector<1x1024xf32> to vector<1x1024xf32>
    %16 = vector.broadcast %15 : vector<1x1024xf32> to vector<8x1024xf32>
    %17 = vector.broadcast %cst_7 : f32 to vector<8x1024xf32>
    %18 = arith.select %14, %16, %17 : vector<8x1024xi1>, vector<8x1024xf32>
    %19 = vector.shape_cast %6 : vector<1x1024xf32> to vector<1x1024xf32>
    %20 = vector.broadcast %19 : vector<1x1024xf32> to vector<8x1024xf32>
    %21 = arith.select %12, %20, %18 : vector<8x1024xi1>, vector<8x1024xf32>
    %c0_8 = arith.constant 0 : index
    %c0_9 = arith.constant 0 : index
    %22 = vector.load %arg4[%c0_8, %c0_9] : memref<8x1024xf32, #tpu.memory_space<vmem>>, vector<8x1024xf32>
    tpu.vector_store %arg4[%c0_8, %c0_9], %21 {strides = array<i32>} : memref<8x1024xf32, #tpu.memory_space<vmem>>, vector<8x1024xf32>,
    return
  }
  func.func @transform_0(%arg0: i32) -> (i32, i32) {
    %c0_i32 = arith.constant 0 : i32
    %c0_i32_0 = arith.constant 0 : i32
    return %arg0, %c0_i32 : i32, i32
  }
  func.func @transform_1(%arg0: i32) -> (i32, i32) {
    %c0_i32 = arith.constant 0 : i32
    %c0_i32_0 = arith.constant 0 : i32
    %c0_i32_1 = arith.constant 0 : i32
    return %c0_i32, %c0_i32_0 : i32, i32
  }
  func.func @transform_2(%arg0: i32) -> (i32, i32) {
    %c0_i32 = arith.constant 0 : i32
    %c0_i32_0 = arith.constant 0 : i32
    return %arg0, %c0_i32 : i32, i32
  }
  func.func @transform_3(%arg0: i32) -> (i32, i32) {
    %c0_i32 = arith.constant 0 : i32
    %c0_i32_0 = arith.constant 0 : i32
    return %arg0, %c0_i32 : i32, i32
  }
}

module attributes {stable_mosaic.version = 11 : i64} {
  func.func @kernel(%arg0: i32, %arg1: memref<16x64xbf16, #tpu.memory_space<vmem>>, %arg2: memref<16x64xbf16, #tpu.memory_space<vmem>>, %arg3: memref<16x1xf32, #tpu.memory_space<vmem>>, %arg4: memref<9x64x128xbf16, #tpu.memory_space<vmem>>, %arg5: memref<16x128xbf16, #tpu.memory_space<vmem>>, %arg6: memref<8x128xf32, #tpu.memory_space<vmem>>) attributes {dimension_semantics = [#tpu.dimension_semantics<parallel>], iteration_bounds = array<i64: 5>, scalar_prefetch = 0 : i64, scratch_operands = 0 : i64, tpu.core_type = #tpu.core_type<tc>, window_params = [{transform_indices = @transform_0, window_bounds = array<i64: 16, 64>}, {transform_indices = @transform_1, window_bounds = array<i64: 16, 64>}, {transform_indices = @transform_2, window_bounds = array<i64: 16, 1>}, {pipeline_mode = #tpu.pipeline_mode<synchronous>, transform_indices = @transform_3, window_bounds = array<i64: 9, 64, 128>}, {transform_indices = @transform_4, window_bounds = array<i64: 16, 128>}, {transform_indices = @transform_5, window_bounds = array<i64: 8, 128>}]} {
    %c0 = arith.constant 0 : index
    %c0_0 = arith.constant 0 : index
    %0 = vector.load %arg1[%c0, %c0_0] : memref<16x64xbf16, #tpu.memory_space<vmem>>, vector<16x64xbf16>
    %c0_1 = arith.constant 0 : index
    %c0_2 = arith.constant 0 : index
    %1 = vector.load %arg2[%c0_1, %c0_2] : memref<16x64xbf16, #tpu.memory_space<vmem>>, vector<16x64xbf16>
    %2 = tpu.concatenate %0, %1 in 0 : vector<16x64xbf16>, vector<16x64xbf16> -> vector<32x64xbf16>
    %3 = arith.extf %2 : vector<32x64xbf16> to vector<32x64xf32>
    %4 = vector.extract_strided_slice %3 {offsets = [0, 0], sizes = [16, 64], strides = [1, 1]} : vector<32x64xf32> to vector<16x64xf32>
    %5 = arith.truncf %4 : vector<16x64xf32> to vector<16x64xbf16>
    %c0_3 = arith.constant 0 : index
    %c0_4 = arith.constant 0 : index
    %c0_5 = arith.constant 0 : index
    %6 = vector.load %arg4[%c0_3, %c0_4, %c0_5] : memref<9x64x128xbf16, #tpu.memory_space<vmem>>, vector<1x64x128xbf16>
    %7 = vector.shape_cast %6 : vector<1x64x128xbf16> to vector<64x128xbf16>
    %cst = arith.constant dense<0.000000e+00> : vector<16x128xf32>
    %8 = tpu.matmul %5, %7, %cst {dimension_numbers = #tpu.dot_dimension_numbers<[1], [0], [0], [1], [0, 0, 1, 1], [], []>} : vector<16x64xbf16>, vector<64x128xbf16>, vector<16x128xf32> -> vector<16x128xf32>
    %9 = vector.extract_strided_slice %3 {offsets = [1, 0], sizes = [16, 64], strides = [1, 1]} : vector<32x64xf32> to vector<16x64xf32>
    %10 = arith.truncf %9 : vector<16x64xf32> to vector<16x64xbf16>
    %c1 = arith.constant 1 : index
    %c0_6 = arith.constant 0 : index
    %c0_7 = arith.constant 0 : index
    %11 = vector.load %arg4[%c1, %c0_6, %c0_7] : memref<9x64x128xbf16, #tpu.memory_space<vmem>>, vector<1x64x128xbf16>
    %12 = vector.shape_cast %11 : vector<1x64x128xbf16> to vector<64x128xbf16>
    %cst_8 = arith.constant dense<0.000000e+00> : vector<16x128xf32>
    %13 = tpu.matmul %10, %12, %cst_8 {dimension_numbers = #tpu.dot_dimension_numbers<[1], [0], [0], [1], [0, 0, 1, 1], [], []>} : vector<16x64xbf16>, vector<64x128xbf16>, vector<16x128xf32> -> vector<16x128xf32>
    %14 = arith.addf %8, %13 : vector<16x128xf32>
    %15 = vector.extract_strided_slice %3 {offsets = [2, 0], sizes = [16, 64], strides = [1, 1]} : vector<32x64xf32> to vector<16x64xf32>
    %16 = arith.truncf %15 : vector<16x64xf32> to vector<16x64xbf16>
    %c2 = arith.constant 2 : index
    %c0_9 = arith.constant 0 : index
    %c0_10 = arith.constant 0 : index
    %17 = vector.load %arg4[%c2, %c0_9, %c0_10] : memref<9x64x128xbf16, #tpu.memory_space<vmem>>, vector<1x64x128xbf16>
    %18 = vector.shape_cast %17 : vector<1x64x128xbf16> to vector<64x128xbf16>
    %cst_11 = arith.constant dense<0.000000e+00> : vector<16x128xf32>
    %19 = tpu.matmul %16, %18, %cst_11 {dimension_numbers = #tpu.dot_dimension_numbers<[1], [0], [0], [1], [0, 0, 1, 1], [], []>} : vector<16x64xbf16>, vector<64x128xbf16>, vector<16x128xf32> -> vector<16x128xf32>
    %20 = arith.addf %14, %19 : vector<16x128xf32>
    %21 = vector.extract_strided_slice %3 {offsets = [6, 0], sizes = [16, 64], strides = [1, 1]} : vector<32x64xf32> to vector<16x64xf32>
    %22 = arith.truncf %21 : vector<16x64xf32> to vector<16x64xbf16>
    %c3 = arith.constant 3 : index
    %c0_12 = arith.constant 0 : index
    %c0_13 = arith.constant 0 : index
    %23 = vector.load %arg4[%c3, %c0_12, %c0_13] : memref<9x64x128xbf16, #tpu.memory_space<vmem>>, vector<1x64x128xbf16>
    %24 = vector.shape_cast %23 : vector<1x64x128xbf16> to vector<64x128xbf16>
    %cst_14 = arith.constant dense<0.000000e+00> : vector<16x128xf32>
    %25 = tpu.matmul %22, %24, %cst_14 {dimension_numbers = #tpu.dot_dimension_numbers<[1], [0], [0], [1], [0, 0, 1, 1], [], []>} : vector<16x64xbf16>, vector<64x128xbf16>, vector<16x128xf32> -> vector<16x128xf32>
    %26 = arith.addf %20, %25 : vector<16x128xf32>
    %27 = vector.extract_strided_slice %3 {offsets = [7, 0], sizes = [16, 64], strides = [1, 1]} : vector<32x64xf32> to vector<16x64xf32>
    %28 = arith.truncf %27 : vector<16x64xf32> to vector<16x64xbf16>
    %c4 = arith.constant 4 : index
    %c0_15 = arith.constant 0 : index
    %c0_16 = arith.constant 0 : index
    %29 = vector.load %arg4[%c4, %c0_15, %c0_16] : memref<9x64x128xbf16, #tpu.memory_space<vmem>>, vector<1x64x128xbf16>
    %30 = vector.shape_cast %29 : vector<1x64x128xbf16> to vector<64x128xbf16>
    %cst_17 = arith.constant dense<0.000000e+00> : vector<16x128xf32>
    %31 = tpu.matmul %28, %30, %cst_17 {dimension_numbers = #tpu.dot_dimension_numbers<[1], [0], [0], [1], [0, 0, 1, 1], [], []>} : vector<16x64xbf16>, vector<64x128xbf16>, vector<16x128xf32> -> vector<16x128xf32>
    %32 = arith.addf %26, %31 : vector<16x128xf32>
    %33 = vector.extract_strided_slice %3 {offsets = [8, 0], sizes = [16, 64], strides = [1, 1]} : vector<32x64xf32> to vector<16x64xf32>
    %34 = arith.truncf %33 : vector<16x64xf32> to vector<16x64xbf16>
    %c5 = arith.constant 5 : index
    %c0_18 = arith.constant 0 : index
    %c0_19 = arith.constant 0 : index
    %35 = vector.load %arg4[%c5, %c0_18, %c0_19] : memref<9x64x128xbf16, #tpu.memory_space<vmem>>, vector<1x64x128xbf16>
    %36 = vector.shape_cast %35 : vector<1x64x128xbf16> to vector<64x128xbf16>
    %cst_20 = arith.constant dense<0.000000e+00> : vector<16x128xf32>
    %37 = tpu.matmul %34, %36, %cst_20 {dimension_numbers = #tpu.dot_dimension_numbers<[1], [0], [0], [1], [0, 0, 1, 1], [], []>} : vector<16x64xbf16>, vector<64x128xbf16>, vector<16x128xf32> -> vector<16x128xf32>
    %38 = arith.addf %32, %37 : vector<16x128xf32>
    %39 = vector.extract_strided_slice %3 {offsets = [12, 0], sizes = [16, 64], strides = [1, 1]} : vector<32x64xf32> to vector<16x64xf32>
    %40 = arith.truncf %39 : vector<16x64xf32> to vector<16x64xbf16>
    %c6 = arith.constant 6 : index
    %c0_21 = arith.constant 0 : index
    %c0_22 = arith.constant 0 : index
    %41 = vector.load %arg4[%c6, %c0_21, %c0_22] : memref<9x64x128xbf16, #tpu.memory_space<vmem>>, vector<1x64x128xbf16>
    %42 = vector.shape_cast %41 : vector<1x64x128xbf16> to vector<64x128xbf16>
    %cst_23 = arith.constant dense<0.000000e+00> : vector<16x128xf32>
    %43 = tpu.matmul %40, %42, %cst_23 {dimension_numbers = #tpu.dot_dimension_numbers<[1], [0], [0], [1], [0, 0, 1, 1], [], []>} : vector<16x64xbf16>, vector<64x128xbf16>, vector<16x128xf32> -> vector<16x128xf32>
    %44 = arith.addf %38, %43 : vector<16x128xf32>
    %45 = vector.extract_strided_slice %3 {offsets = [13, 0], sizes = [16, 64], strides = [1, 1]} : vector<32x64xf32> to vector<16x64xf32>
    %46 = arith.truncf %45 : vector<16x64xf32> to vector<16x64xbf16>
    %c7 = arith.constant 7 : index
    %c0_24 = arith.constant 0 : index
    %c0_25 = arith.constant 0 : index
    %47 = vector.load %arg4[%c7, %c0_24, %c0_25] : memref<9x64x128xbf16, #tpu.memory_space<vmem>>, vector<1x64x128xbf16>
    %48 = vector.shape_cast %47 : vector<1x64x128xbf16> to vector<64x128xbf16>
    %cst_26 = arith.constant dense<0.000000e+00> : vector<16x128xf32>
    %49 = tpu.matmul %46, %48, %cst_26 {dimension_numbers = #tpu.dot_dimension_numbers<[1], [0], [0], [1], [0, 0, 1, 1], [], []>} : vector<16x64xbf16>, vector<64x128xbf16>, vector<16x128xf32> -> vector<16x128xf32>
    %50 = arith.addf %44, %49 : vector<16x128xf32>
    %51 = vector.extract_strided_slice %3 {offsets = [14, 0], sizes = [16, 64], strides = [1, 1]} : vector<32x64xf32> to vector<16x64xf32>
    %52 = arith.truncf %51 : vector<16x64xf32> to vector<16x64xbf16>
    %c8 = arith.constant 8 : index
    %c0_27 = arith.constant 0 : index
    %c0_28 = arith.constant 0 : index
    %53 = vector.load %arg4[%c8, %c0_27, %c0_28] : memref<9x64x128xbf16, #tpu.memory_space<vmem>>, vector<1x64x128xbf16>
    %54 = vector.shape_cast %53 : vector<1x64x128xbf16> to vector<64x128xbf16>
    %cst_29 = arith.constant dense<0.000000e+00> : vector<16x128xf32>
    %55 = tpu.matmul %52, %54, %cst_29 {dimension_numbers = #tpu.dot_dimension_numbers<[1], [0], [0], [1], [0, 0, 1, 1], [], []>} : vector<16x64xbf16>, vector<64x128xbf16>, vector<16x128xf32> -> vector<16x128xf32>
    %56 = arith.addf %50, %55 : vector<16x128xf32>
    %57 = arith.truncf %56 : vector<16x128xf32> to vector<16x128xbf16>
    %c0_30 = arith.constant 0 : index
    %c0_31 = arith.constant 0 : index
    %58 = vector.load %arg5[%c0_30, %c0_31] : memref<16x128xbf16, #tpu.memory_space<vmem>>, vector<16x128xbf16>
    tpu.vector_store %arg5[%c0_30, %c0_31], %57 {strides = array<i32>} : memref<16x128xbf16, #tpu.memory_space<vmem>>, vector<16x128xbf16>,
    %c0_32 = arith.constant 0 : index
    %c0_33 = arith.constant 0 : index
    %59 = vector.load %arg3[%c0_32, %c0_33] : memref<16x1xf32, #tpu.memory_space<vmem>>, vector<16x1xf32>
    %60 = vector.broadcast %59 : vector<16x1xf32> to vector<16x128xf32>
    %61 = arith.mulf %56, %60 : vector<16x128xf32>
    %cst_34 = arith.constant dense<0.000000e+00> : vector<128xf32>
    %62 = vector.multi_reduction <add>, %61, %cst_34 [0] : vector<16x128xf32> to vector<128xf32>
    %63 = vector.shape_cast %62 : vector<128xf32> to vector<1x128xf32>
    %64 = arith.mulf %61, %61 : vector<16x128xf32>
    %cst_35 = arith.constant dense<0.000000e+00> : vector<128xf32>
    %65 = vector.multi_reduction <add>, %64, %cst_35 [0] : vector<16x128xf32> to vector<128xf32>
    %66 = vector.shape_cast %65 : vector<128xf32> to vector<1x128xf32>
    %67 = tpu.iota {dimensions = array<i32: 0>} : vector<8x128xi32>
    %c0_i32 = arith.constant 0 : i32
    %68 = vector.broadcast %c0_i32 : i32 to vector<8x128xi32>
    %69 = arith.cmpi eq, %67, %68 : vector<8x128xi32>
    %c1_i32 = arith.constant 1 : i32
    %70 = vector.broadcast %c1_i32 : i32 to vector<8x128xi32>
    %71 = arith.cmpi eq, %67, %70 : vector<8x128xi32>
    %cst_36 = arith.constant 0.000000e+00 : f32
    %72 = vector.shape_cast %66 : vector<1x128xf32> to vector<1x128xf32>
    %73 = vector.broadcast %72 : vector<1x128xf32> to vector<8x128xf32>
    %74 = vector.broadcast %cst_36 : f32 to vector<8x128xf32>
    %75 = arith.select %71, %73, %74 : vector<8x128xi1>, vector<8x128xf32>
    %76 = vector.shape_cast %63 : vector<1x128xf32> to vector<1x128xf32>
    %77 = vector.broadcast %76 : vector<1x128xf32> to vector<8x128xf32>
    %78 = arith.select %69, %77, %75 : vector<8x128xi1>, vector<8x128xf32>
    %c0_37 = arith.constant 0 : index
    %c0_38 = arith.constant 0 : index
    %79 = vector.load %arg6[%c0_37, %c0_38] : memref<8x128xf32, #tpu.memory_space<vmem>>, vector<8x128xf32>
    tpu.vector_store %arg6[%c0_37, %c0_38], %78 {strides = array<i32>} : memref<8x128xf32, #tpu.memory_space<vmem>>, vector<8x128xf32>,
    return
  }
  func.func @transform_0(%arg0: i32) -> (i32, i32) {
    %c0_i32 = arith.constant 0 : i32
    %c0_i32_0 = arith.constant 0 : i32
    return %arg0, %c0_i32 : i32, i32
  }
  func.func @transform_1(%arg0: i32) -> (i32, i32) {
    %c1_i32 = arith.constant 1 : i32
    %0 = arith.addi %arg0, %c1_i32 : i32
    %c1_i32_0 = arith.constant 1 : i32
    %1 = arith.muli %0, %c1_i32_0 : i32
    %c0_i32 = arith.constant 0 : i32
    %c0_i32_1 = arith.constant 0 : i32
    return %1, %c0_i32 : i32, i32
  }
  func.func @transform_2(%arg0: i32) -> (i32, i32) {
    %c0_i32 = arith.constant 0 : i32
    %c0_i32_0 = arith.constant 0 : i32
    return %arg0, %c0_i32 : i32, i32
  }
  func.func @transform_3(%arg0: i32) -> (i32, i32, i32) {
    %c0_i32 = arith.constant 0 : i32
    %c0_i32_0 = arith.constant 0 : i32
    %c0_i32_1 = arith.constant 0 : i32
    %c0_i32_2 = arith.constant 0 : i32
    return %c0_i32, %c0_i32_0, %c0_i32_1 : i32, i32, i32
  }
  func.func @transform_4(%arg0: i32) -> (i32, i32) {
    %c0_i32 = arith.constant 0 : i32
    %c0_i32_0 = arith.constant 0 : i32
    return %arg0, %c0_i32 : i32, i32
  }
  func.func @transform_5(%arg0: i32) -> (i32, i32) {
    %c0_i32 = arith.constant 0 : i32
    %c0_i32_0 = arith.constant 0 : i32
    return %arg0, %c0_i32 : i32, i32
  }
}

module attributes {stable_mosaic.version = 11 : i64} {
  func.func @kernel(%arg0: i32, %arg1: memref<32x32xbf16, #tpu.memory_space<vmem>>, %arg2: memref<32x32xbf16, #tpu.memory_space<vmem>>, %arg3: memref<32x1xf32, #tpu.memory_space<vmem>>, %arg4: memref<9x32x64xbf16, #tpu.memory_space<vmem>>, %arg5: memref<32x64xbf16, #tpu.memory_space<vmem>>, %arg6: memref<8x64xf32, #tpu.memory_space<vmem>>) attributes {dimension_semantics = [#tpu.dimension_semantics<parallel>], iteration_bounds = array<i64: 7>, scalar_prefetch = 0 : i64, scratch_operands = 0 : i64, tpu.core_type = #tpu.core_type<tc>, window_params = [{transform_indices = @transform_0, window_bounds = array<i64: 32, 32>}, {transform_indices = @transform_1, window_bounds = array<i64: 32, 32>}, {transform_indices = @transform_2, window_bounds = array<i64: 32, 1>}, {pipeline_mode = #tpu.pipeline_mode<synchronous>, transform_indices = @transform_3, window_bounds = array<i64: 9, 32, 64>}, {transform_indices = @transform_4, window_bounds = array<i64: 32, 64>}, {transform_indices = @transform_5, window_bounds = array<i64: 8, 64>}]} {
    %c0 = arith.constant 0 : index
    %c0_0 = arith.constant 0 : index
    %0 = vector.load %arg1[%c0, %c0_0] : memref<32x32xbf16, #tpu.memory_space<vmem>>, vector<32x32xbf16>
    %c0_1 = arith.constant 0 : index
    %c0_2 = arith.constant 0 : index
    %1 = vector.load %arg2[%c0_1, %c0_2] : memref<32x32xbf16, #tpu.memory_space<vmem>>, vector<32x32xbf16>
    %2 = tpu.concatenate %0, %1 in 0 : vector<32x32xbf16>, vector<32x32xbf16> -> vector<64x32xbf16>
    %3 = arith.extf %2 : vector<64x32xbf16> to vector<64x32xf32>
    %4 = vector.extract_strided_slice %3 {offsets = [0, 0], sizes = [32, 32], strides = [1, 1]} : vector<64x32xf32> to vector<32x32xf32>
    %5 = arith.truncf %4 : vector<32x32xf32> to vector<32x32xbf16>
    %c0_3 = arith.constant 0 : index
    %c0_4 = arith.constant 0 : index
    %c0_5 = arith.constant 0 : index
    %6 = vector.load %arg4[%c0_3, %c0_4, %c0_5] : memref<9x32x64xbf16, #tpu.memory_space<vmem>>, vector<1x32x64xbf16>
    %7 = vector.shape_cast %6 : vector<1x32x64xbf16> to vector<32x64xbf16>
    %cst = arith.constant dense<0.000000e+00> : vector<32x64xf32>
    %8 = tpu.matmul %5, %7, %cst {dimension_numbers = #tpu.dot_dimension_numbers<[1], [0], [0], [1], [0, 0, 1, 1], [], []>} : vector<32x32xbf16>, vector<32x64xbf16>, vector<32x64xf32> -> vector<32x64xf32>
    %9 = vector.extract_strided_slice %3 {offsets = [1, 0], sizes = [32, 32], strides = [1, 1]} : vector<64x32xf32> to vector<32x32xf32>
    %10 = arith.truncf %9 : vector<32x32xf32> to vector<32x32xbf16>
    %c1 = arith.constant 1 : index
    %c0_6 = arith.constant 0 : index
    %c0_7 = arith.constant 0 : index
    %11 = vector.load %arg4[%c1, %c0_6, %c0_7] : memref<9x32x64xbf16, #tpu.memory_space<vmem>>, vector<1x32x64xbf16>
    %12 = vector.shape_cast %11 : vector<1x32x64xbf16> to vector<32x64xbf16>
    %cst_8 = arith.constant dense<0.000000e+00> : vector<32x64xf32>
    %13 = tpu.matmul %10, %12, %cst_8 {dimension_numbers = #tpu.dot_dimension_numbers<[1], [0], [0], [1], [0, 0, 1, 1], [], []>} : vector<32x32xbf16>, vector<32x64xbf16>, vector<32x64xf32> -> vector<32x64xf32>
    %14 = arith.addf %8, %13 : vector<32x64xf32>
    %15 = vector.extract_strided_slice %3 {offsets = [2, 0], sizes = [32, 32], strides = [1, 1]} : vector<64x32xf32> to vector<32x32xf32>
    %16 = arith.truncf %15 : vector<32x32xf32> to vector<32x32xbf16>
    %c2 = arith.constant 2 : index
    %c0_9 = arith.constant 0 : index
    %c0_10 = arith.constant 0 : index
    %17 = vector.load %arg4[%c2, %c0_9, %c0_10] : memref<9x32x64xbf16, #tpu.memory_space<vmem>>, vector<1x32x64xbf16>
    %18 = vector.shape_cast %17 : vector<1x32x64xbf16> to vector<32x64xbf16>
    %cst_11 = arith.constant dense<0.000000e+00> : vector<32x64xf32>
    %19 = tpu.matmul %16, %18, %cst_11 {dimension_numbers = #tpu.dot_dimension_numbers<[1], [0], [0], [1], [0, 0, 1, 1], [], []>} : vector<32x32xbf16>, vector<32x64xbf16>, vector<32x64xf32> -> vector<32x64xf32>
    %20 = arith.addf %14, %19 : vector<32x64xf32>
    %21 = vector.extract_strided_slice %3 {offsets = [10, 0], sizes = [32, 32], strides = [1, 1]} : vector<64x32xf32> to vector<32x32xf32>
    %22 = arith.truncf %21 : vector<32x32xf32> to vector<32x32xbf16>
    %c3 = arith.constant 3 : index
    %c0_12 = arith.constant 0 : index
    %c0_13 = arith.constant 0 : index
    %23 = vector.load %arg4[%c3, %c0_12, %c0_13] : memref<9x32x64xbf16, #tpu.memory_space<vmem>>, vector<1x32x64xbf16>
    %24 = vector.shape_cast %23 : vector<1x32x64xbf16> to vector<32x64xbf16>
    %cst_14 = arith.constant dense<0.000000e+00> : vector<32x64xf32>
    %25 = tpu.matmul %22, %24, %cst_14 {dimension_numbers = #tpu.dot_dimension_numbers<[1], [0], [0], [1], [0, 0, 1, 1], [], []>} : vector<32x32xbf16>, vector<32x64xbf16>, vector<32x64xf32> -> vector<32x64xf32>
    %26 = arith.addf %20, %25 : vector<32x64xf32>
    %27 = vector.extract_strided_slice %3 {offsets = [11, 0], sizes = [32, 32], strides = [1, 1]} : vector<64x32xf32> to vector<32x32xf32>
    %28 = arith.truncf %27 : vector<32x32xf32> to vector<32x32xbf16>
    %c4 = arith.constant 4 : index
    %c0_15 = arith.constant 0 : index
    %c0_16 = arith.constant 0 : index
    %29 = vector.load %arg4[%c4, %c0_15, %c0_16] : memref<9x32x64xbf16, #tpu.memory_space<vmem>>, vector<1x32x64xbf16>
    %30 = vector.shape_cast %29 : vector<1x32x64xbf16> to vector<32x64xbf16>
    %cst_17 = arith.constant dense<0.000000e+00> : vector<32x64xf32>
    %31 = tpu.matmul %28, %30, %cst_17 {dimension_numbers = #tpu.dot_dimension_numbers<[1], [0], [0], [1], [0, 0, 1, 1], [], []>} : vector<32x32xbf16>, vector<32x64xbf16>, vector<32x64xf32> -> vector<32x64xf32>
    %32 = arith.addf %26, %31 : vector<32x64xf32>
    %33 = vector.extract_strided_slice %3 {offsets = [12, 0], sizes = [32, 32], strides = [1, 1]} : vector<64x32xf32> to vector<32x32xf32>
    %34 = arith.truncf %33 : vector<32x32xf32> to vector<32x32xbf16>
    %c5 = arith.constant 5 : index
    %c0_18 = arith.constant 0 : index
    %c0_19 = arith.constant 0 : index
    %35 = vector.load %arg4[%c5, %c0_18, %c0_19] : memref<9x32x64xbf16, #tpu.memory_space<vmem>>, vector<1x32x64xbf16>
    %36 = vector.shape_cast %35 : vector<1x32x64xbf16> to vector<32x64xbf16>
    %cst_20 = arith.constant dense<0.000000e+00> : vector<32x64xf32>
    %37 = tpu.matmul %34, %36, %cst_20 {dimension_numbers = #tpu.dot_dimension_numbers<[1], [0], [0], [1], [0, 0, 1, 1], [], []>} : vector<32x32xbf16>, vector<32x64xbf16>, vector<32x64xf32> -> vector<32x64xf32>
    %38 = arith.addf %32, %37 : vector<32x64xf32>
    %39 = vector.extract_strided_slice %3 {offsets = [20, 0], sizes = [32, 32], strides = [1, 1]} : vector<64x32xf32> to vector<32x32xf32>
    %40 = arith.truncf %39 : vector<32x32xf32> to vector<32x32xbf16>
    %c6 = arith.constant 6 : index
    %c0_21 = arith.constant 0 : index
    %c0_22 = arith.constant 0 : index
    %41 = vector.load %arg4[%c6, %c0_21, %c0_22] : memref<9x32x64xbf16, #tpu.memory_space<vmem>>, vector<1x32x64xbf16>
    %42 = vector.shape_cast %41 : vector<1x32x64xbf16> to vector<32x64xbf16>
    %cst_23 = arith.constant dense<0.000000e+00> : vector<32x64xf32>
    %43 = tpu.matmul %40, %42, %cst_23 {dimension_numbers = #tpu.dot_dimension_numbers<[1], [0], [0], [1], [0, 0, 1, 1], [], []>} : vector<32x32xbf16>, vector<32x64xbf16>, vector<32x64xf32> -> vector<32x64xf32>
    %44 = arith.addf %38, %43 : vector<32x64xf32>
    %45 = vector.extract_strided_slice %3 {offsets = [21, 0], sizes = [32, 32], strides = [1, 1]} : vector<64x32xf32> to vector<32x32xf32>
    %46 = arith.truncf %45 : vector<32x32xf32> to vector<32x32xbf16>
    %c7 = arith.constant 7 : index
    %c0_24 = arith.constant 0 : index
    %c0_25 = arith.constant 0 : index
    %47 = vector.load %arg4[%c7, %c0_24, %c0_25] : memref<9x32x64xbf16, #tpu.memory_space<vmem>>, vector<1x32x64xbf16>
    %48 = vector.shape_cast %47 : vector<1x32x64xbf16> to vector<32x64xbf16>
    %cst_26 = arith.constant dense<0.000000e+00> : vector<32x64xf32>
    %49 = tpu.matmul %46, %48, %cst_26 {dimension_numbers = #tpu.dot_dimension_numbers<[1], [0], [0], [1], [0, 0, 1, 1], [], []>} : vector<32x32xbf16>, vector<32x64xbf16>, vector<32x64xf32> -> vector<32x64xf32>
    %50 = arith.addf %44, %49 : vector<32x64xf32>
    %51 = vector.extract_strided_slice %3 {offsets = [22, 0], sizes = [32, 32], strides = [1, 1]} : vector<64x32xf32> to vector<32x32xf32>
    %52 = arith.truncf %51 : vector<32x32xf32> to vector<32x32xbf16>
    %c8 = arith.constant 8 : index
    %c0_27 = arith.constant 0 : index
    %c0_28 = arith.constant 0 : index
    %53 = vector.load %arg4[%c8, %c0_27, %c0_28] : memref<9x32x64xbf16, #tpu.memory_space<vmem>>, vector<1x32x64xbf16>
    %54 = vector.shape_cast %53 : vector<1x32x64xbf16> to vector<32x64xbf16>
    %cst_29 = arith.constant dense<0.000000e+00> : vector<32x64xf32>
    %55 = tpu.matmul %52, %54, %cst_29 {dimension_numbers = #tpu.dot_dimension_numbers<[1], [0], [0], [1], [0, 0, 1, 1], [], []>} : vector<32x32xbf16>, vector<32x64xbf16>, vector<32x64xf32> -> vector<32x64xf32>
    %56 = arith.addf %50, %55 : vector<32x64xf32>
    %57 = arith.truncf %56 : vector<32x64xf32> to vector<32x64xbf16>
    %c0_30 = arith.constant 0 : index
    %c0_31 = arith.constant 0 : index
    %58 = vector.load %arg5[%c0_30, %c0_31] : memref<32x64xbf16, #tpu.memory_space<vmem>>, vector<32x64xbf16>
    tpu.vector_store %arg5[%c0_30, %c0_31], %57 {strides = array<i32>} : memref<32x64xbf16, #tpu.memory_space<vmem>>, vector<32x64xbf16>,
    %c0_32 = arith.constant 0 : index
    %c0_33 = arith.constant 0 : index
    %59 = vector.load %arg3[%c0_32, %c0_33] : memref<32x1xf32, #tpu.memory_space<vmem>>, vector<32x1xf32>
    %60 = vector.broadcast %59 : vector<32x1xf32> to vector<32x64xf32>
    %61 = arith.mulf %56, %60 : vector<32x64xf32>
    %cst_34 = arith.constant dense<0.000000e+00> : vector<64xf32>
    %62 = vector.multi_reduction <add>, %61, %cst_34 [0] : vector<32x64xf32> to vector<64xf32>
    %63 = vector.shape_cast %62 : vector<64xf32> to vector<1x64xf32>
    %64 = arith.mulf %61, %61 : vector<32x64xf32>
    %cst_35 = arith.constant dense<0.000000e+00> : vector<64xf32>
    %65 = vector.multi_reduction <add>, %64, %cst_35 [0] : vector<32x64xf32> to vector<64xf32>
    %66 = vector.shape_cast %65 : vector<64xf32> to vector<1x64xf32>
    %67 = tpu.iota {dimensions = array<i32: 0>} : vector<8x64xi32>
    %c0_i32 = arith.constant 0 : i32
    %68 = vector.broadcast %c0_i32 : i32 to vector<8x64xi32>
    %69 = arith.cmpi eq, %67, %68 : vector<8x64xi32>
    %c1_i32 = arith.constant 1 : i32
    %70 = vector.broadcast %c1_i32 : i32 to vector<8x64xi32>
    %71 = arith.cmpi eq, %67, %70 : vector<8x64xi32>
    %cst_36 = arith.constant 0.000000e+00 : f32
    %72 = vector.shape_cast %66 : vector<1x64xf32> to vector<1x64xf32>
    %73 = vector.broadcast %72 : vector<1x64xf32> to vector<8x64xf32>
    %74 = vector.broadcast %cst_36 : f32 to vector<8x64xf32>
    %75 = arith.select %71, %73, %74 : vector<8x64xi1>, vector<8x64xf32>
    %76 = vector.shape_cast %63 : vector<1x64xf32> to vector<1x64xf32>
    %77 = vector.broadcast %76 : vector<1x64xf32> to vector<8x64xf32>
    %78 = arith.select %69, %77, %75 : vector<8x64xi1>, vector<8x64xf32>
    %c0_37 = arith.constant 0 : index
    %c0_38 = arith.constant 0 : index
    %79 = vector.load %arg6[%c0_37, %c0_38] : memref<8x64xf32, #tpu.memory_space<vmem>>, vector<8x64xf32>
    tpu.vector_store %arg6[%c0_37, %c0_38], %78 {strides = array<i32>} : memref<8x64xf32, #tpu.memory_space<vmem>>, vector<8x64xf32>,
    return
  }
  func.func @transform_0(%arg0: i32) -> (i32, i32) {
    %c0_i32 = arith.constant 0 : i32
    %c0_i32_0 = arith.constant 0 : i32
    return %arg0, %c0_i32 : i32, i32
  }
  func.func @transform_1(%arg0: i32) -> (i32, i32) {
    %c1_i32 = arith.constant 1 : i32
    %0 = arith.addi %arg0, %c1_i32 : i32
    %c1_i32_0 = arith.constant 1 : i32
    %1 = arith.muli %0, %c1_i32_0 : i32
    %c0_i32 = arith.constant 0 : i32
    %c0_i32_1 = arith.constant 0 : i32
    return %1, %c0_i32 : i32, i32
  }
  func.func @transform_2(%arg0: i32) -> (i32, i32) {
    %c0_i32 = arith.constant 0 : i32
    %c0_i32_0 = arith.constant 0 : i32
    return %arg0, %c0_i32 : i32, i32
  }
  func.func @transform_3(%arg0: i32) -> (i32, i32, i32) {
    %c0_i32 = arith.constant 0 : i32
    %c0_i32_0 = arith.constant 0 : i32
    %c0_i32_1 = arith.constant 0 : i32
    %c0_i32_2 = arith.constant 0 : i32
    return %c0_i32, %c0_i32_0, %c0_i32_1 : i32, i32, i32
  }
  func.func @transform_4(%arg0: i32) -> (i32, i32) {
    %c0_i32 = arith.constant 0 : i32
    %c0_i32_0 = arith.constant 0 : i32
    return %arg0, %c0_i32 : i32, i32
  }
  func.func @transform_5(%arg0: i32) -> (i32, i32) {
    %c0_i32 = arith.constant 0 : i32
    %c0_i32_0 = arith.constant 0 : i32
    return %arg0, %c0_i32 : i32, i32
  }
}

module attributes {stable_mosaic.version = 11 : i64} {
  func.func @kernel(%arg0: i32, %arg1: memref<96x16xbf16, #tpu.memory_space<vmem>>, %arg2: memref<48x16xbf16, #tpu.memory_space<vmem>>, %arg3: memref<96x1xf32, #tpu.memory_space<vmem>>, %arg4: memref<9x16x32xbf16, #tpu.memory_space<vmem>>, %arg5: memref<96x32xbf16, #tpu.memory_space<vmem>>, %arg6: memref<8x32xf32, #tpu.memory_space<vmem>>) attributes {dimension_semantics = [#tpu.dimension_semantics<parallel>], iteration_bounds = array<i64: 7>, scalar_prefetch = 0 : i64, scratch_operands = 0 : i64, tpu.core_type = #tpu.core_type<tc>, window_params = [{transform_indices = @transform_0, window_bounds = array<i64: 96, 16>}, {transform_indices = @transform_1, window_bounds = array<i64: 48, 16>}, {transform_indices = @transform_2, window_bounds = array<i64: 96, 1>}, {pipeline_mode = #tpu.pipeline_mode<synchronous>, transform_indices = @transform_3, window_bounds = array<i64: 9, 16, 32>}, {transform_indices = @transform_4, window_bounds = array<i64: 96, 32>}, {transform_indices = @transform_5, window_bounds = array<i64: 8, 32>}]} {
    %c0 = arith.constant 0 : index
    %c0_0 = arith.constant 0 : index
    %0 = vector.load %arg1[%c0, %c0_0] : memref<96x16xbf16, #tpu.memory_space<vmem>>, vector<96x16xbf16>
    %c0_1 = arith.constant 0 : index
    %c0_2 = arith.constant 0 : index
    %1 = vector.load %arg2[%c0_1, %c0_2] : memref<48x16xbf16, #tpu.memory_space<vmem>>, vector<48x16xbf16>
    %2 = tpu.concatenate %0, %1 in 0 : vector<96x16xbf16>, vector<48x16xbf16> -> vector<144x16xbf16>
    %3 = arith.extf %2 : vector<144x16xbf16> to vector<144x16xf32>
    %4 = vector.extract_strided_slice %3 {offsets = [0, 0], sizes = [96, 16], strides = [1, 1]} : vector<144x16xf32> to vector<96x16xf32>
    %5 = arith.truncf %4 : vector<96x16xf32> to vector<96x16xbf16>
    %c0_3 = arith.constant 0 : index
    %c0_4 = arith.constant 0 : index
    %c0_5 = arith.constant 0 : index
    %6 = vector.load %arg4[%c0_3, %c0_4, %c0_5] : memref<9x16x32xbf16, #tpu.memory_space<vmem>>, vector<1x16x32xbf16>
    %7 = vector.shape_cast %6 : vector<1x16x32xbf16> to vector<16x32xbf16>
    %cst = arith.constant dense<0.000000e+00> : vector<96x32xf32>
    %8 = tpu.matmul %5, %7, %cst {dimension_numbers = #tpu.dot_dimension_numbers<[1], [0], [0], [1], [0, 0, 1, 1], [], []>} : vector<96x16xbf16>, vector<16x32xbf16>, vector<96x32xf32> -> vector<96x32xf32>
    %9 = vector.extract_strided_slice %3 {offsets = [1, 0], sizes = [96, 16], strides = [1, 1]} : vector<144x16xf32> to vector<96x16xf32>
    %10 = arith.truncf %9 : vector<96x16xf32> to vector<96x16xbf16>
    %c1 = arith.constant 1 : index
    %c0_6 = arith.constant 0 : index
    %c0_7 = arith.constant 0 : index
    %11 = vector.load %arg4[%c1, %c0_6, %c0_7] : memref<9x16x32xbf16, #tpu.memory_space<vmem>>, vector<1x16x32xbf16>
    %12 = vector.shape_cast %11 : vector<1x16x32xbf16> to vector<16x32xbf16>
    %cst_8 = arith.constant dense<0.000000e+00> : vector<96x32xf32>
    %13 = tpu.matmul %10, %12, %cst_8 {dimension_numbers = #tpu.dot_dimension_numbers<[1], [0], [0], [1], [0, 0, 1, 1], [], []>} : vector<96x16xbf16>, vector<16x32xbf16>, vector<96x32xf32> -> vector<96x32xf32>
    %14 = arith.addf %8, %13 : vector<96x32xf32>
    %15 = vector.extract_strided_slice %3 {offsets = [2, 0], sizes = [96, 16], strides = [1, 1]} : vector<144x16xf32> to vector<96x16xf32>
    %16 = arith.truncf %15 : vector<96x16xf32> to vector<96x16xbf16>
    %c2 = arith.constant 2 : index
    %c0_9 = arith.constant 0 : index
    %c0_10 = arith.constant 0 : index
    %17 = vector.load %arg4[%c2, %c0_9, %c0_10] : memref<9x16x32xbf16, #tpu.memory_space<vmem>>, vector<1x16x32xbf16>
    %18 = vector.shape_cast %17 : vector<1x16x32xbf16> to vector<16x32xbf16>
    %cst_11 = arith.constant dense<0.000000e+00> : vector<96x32xf32>
    %19 = tpu.matmul %16, %18, %cst_11 {dimension_numbers = #tpu.dot_dimension_numbers<[1], [0], [0], [1], [0, 0, 1, 1], [], []>} : vector<96x16xbf16>, vector<16x32xbf16>, vector<96x32xf32> -> vector<96x32xf32>
    %20 = arith.addf %14, %19 : vector<96x32xf32>
    %21 = vector.extract_strided_slice %3 {offsets = [18, 0], sizes = [96, 16], strides = [1, 1]} : vector<144x16xf32> to vector<96x16xf32>
    %22 = arith.truncf %21 : vector<96x16xf32> to vector<96x16xbf16>
    %c3 = arith.constant 3 : index
    %c0_12 = arith.constant 0 : index
    %c0_13 = arith.constant 0 : index
    %23 = vector.load %arg4[%c3, %c0_12, %c0_13] : memref<9x16x32xbf16, #tpu.memory_space<vmem>>, vector<1x16x32xbf16>
    %24 = vector.shape_cast %23 : vector<1x16x32xbf16> to vector<16x32xbf16>
    %cst_14 = arith.constant dense<0.000000e+00> : vector<96x32xf32>
    %25 = tpu.matmul %22, %24, %cst_14 {dimension_numbers = #tpu.dot_dimension_numbers<[1], [0], [0], [1], [0, 0, 1, 1], [], []>} : vector<96x16xbf16>, vector<16x32xbf16>, vector<96x32xf32> -> vector<96x32xf32>
    %26 = arith.addf %20, %25 : vector<96x32xf32>
    %27 = vector.extract_strided_slice %3 {offsets = [19, 0], sizes = [96, 16], strides = [1, 1]} : vector<144x16xf32> to vector<96x16xf32>
    %28 = arith.truncf %27 : vector<96x16xf32> to vector<96x16xbf16>
    %c4 = arith.constant 4 : index
    %c0_15 = arith.constant 0 : index
    %c0_16 = arith.constant 0 : index
    %29 = vector.load %arg4[%c4, %c0_15, %c0_16] : memref<9x16x32xbf16, #tpu.memory_space<vmem>>, vector<1x16x32xbf16>
    %30 = vector.shape_cast %29 : vector<1x16x32xbf16> to vector<16x32xbf16>
    %cst_17 = arith.constant dense<0.000000e+00> : vector<96x32xf32>
    %31 = tpu.matmul %28, %30, %cst_17 {dimension_numbers = #tpu.dot_dimension_numbers<[1], [0], [0], [1], [0, 0, 1, 1], [], []>} : vector<96x16xbf16>, vector<16x32xbf16>, vector<96x32xf32> -> vector<96x32xf32>
    %32 = arith.addf %26, %31 : vector<96x32xf32>
    %33 = vector.extract_strided_slice %3 {offsets = [20, 0], sizes = [96, 16], strides = [1, 1]} : vector<144x16xf32> to vector<96x16xf32>
    %34 = arith.truncf %33 : vector<96x16xf32> to vector<96x16xbf16>
    %c5 = arith.constant 5 : index
    %c0_18 = arith.constant 0 : index
    %c0_19 = arith.constant 0 : index
    %35 = vector.load %arg4[%c5, %c0_18, %c0_19] : memref<9x16x32xbf16, #tpu.memory_space<vmem>>, vector<1x16x32xbf16>
    %36 = vector.shape_cast %35 : vector<1x16x32xbf16> to vector<16x32xbf16>
    %cst_20 = arith.constant dense<0.000000e+00> : vector<96x32xf32>
    %37 = tpu.matmul %34, %36, %cst_20 {dimension_numbers = #tpu.dot_dimension_numbers<[1], [0], [0], [1], [0, 0, 1, 1], [], []>} : vector<96x16xbf16>, vector<16x32xbf16>, vector<96x32xf32> -> vector<96x32xf32>
    %38 = arith.addf %32, %37 : vector<96x32xf32>
    %39 = vector.extract_strided_slice %3 {offsets = [36, 0], sizes = [96, 16], strides = [1, 1]} : vector<144x16xf32> to vector<96x16xf32>
    %40 = arith.truncf %39 : vector<96x16xf32> to vector<96x16xbf16>
    %c6 = arith.constant 6 : index
    %c0_21 = arith.constant 0 : index
    %c0_22 = arith.constant 0 : index
    %41 = vector.load %arg4[%c6, %c0_21, %c0_22] : memref<9x16x32xbf16, #tpu.memory_space<vmem>>, vector<1x16x32xbf16>
    %42 = vector.shape_cast %41 : vector<1x16x32xbf16> to vector<16x32xbf16>
    %cst_23 = arith.constant dense<0.000000e+00> : vector<96x32xf32>
    %43 = tpu.matmul %40, %42, %cst_23 {dimension_numbers = #tpu.dot_dimension_numbers<[1], [0], [0], [1], [0, 0, 1, 1], [], []>} : vector<96x16xbf16>, vector<16x32xbf16>, vector<96x32xf32> -> vector<96x32xf32>
    %44 = arith.addf %38, %43 : vector<96x32xf32>
    %45 = vector.extract_strided_slice %3 {offsets = [37, 0], sizes = [96, 16], strides = [1, 1]} : vector<144x16xf32> to vector<96x16xf32>
    %46 = arith.truncf %45 : vector<96x16xf32> to vector<96x16xbf16>
    %c7 = arith.constant 7 : index
    %c0_24 = arith.constant 0 : index
    %c0_25 = arith.constant 0 : index
    %47 = vector.load %arg4[%c7, %c0_24, %c0_25] : memref<9x16x32xbf16, #tpu.memory_space<vmem>>, vector<1x16x32xbf16>
    %48 = vector.shape_cast %47 : vector<1x16x32xbf16> to vector<16x32xbf16>
    %cst_26 = arith.constant dense<0.000000e+00> : vector<96x32xf32>
    %49 = tpu.matmul %46, %48, %cst_26 {dimension_numbers = #tpu.dot_dimension_numbers<[1], [0], [0], [1], [0, 0, 1, 1], [], []>} : vector<96x16xbf16>, vector<16x32xbf16>, vector<96x32xf32> -> vector<96x32xf32>
    %50 = arith.addf %44, %49 : vector<96x32xf32>
    %51 = vector.extract_strided_slice %3 {offsets = [38, 0], sizes = [96, 16], strides = [1, 1]} : vector<144x16xf32> to vector<96x16xf32>
    %52 = arith.truncf %51 : vector<96x16xf32> to vector<96x16xbf16>
    %c8 = arith.constant 8 : index
    %c0_27 = arith.constant 0 : index
    %c0_28 = arith.constant 0 : index
    %53 = vector.load %arg4[%c8, %c0_27, %c0_28] : memref<9x16x32xbf16, #tpu.memory_space<vmem>>, vector<1x16x32xbf16>
    %54 = vector.shape_cast %53 : vector<1x16x32xbf16> to vector<16x32xbf16>
    %cst_29 = arith.constant dense<0.000000e+00> : vector<96x32xf32>
    %55 = tpu.matmul %52, %54, %cst_29 {dimension_numbers = #tpu.dot_dimension_numbers<[1], [0], [0], [1], [0, 0, 1, 1], [], []>} : vector<96x16xbf16>, vector<16x32xbf16>, vector<96x32xf32> -> vector<96x32xf32>
    %56 = arith.addf %50, %55 : vector<96x32xf32>
    %57 = arith.truncf %56 : vector<96x32xf32> to vector<96x32xbf16>
    %c0_30 = arith.constant 0 : index
    %c0_31 = arith.constant 0 : index
    %58 = vector.load %arg5[%c0_30, %c0_31] : memref<96x32xbf16, #tpu.memory_space<vmem>>, vector<96x32xbf16>
    tpu.vector_store %arg5[%c0_30, %c0_31], %57 {strides = array<i32>} : memref<96x32xbf16, #tpu.memory_space<vmem>>, vector<96x32xbf16>,
    %c0_32 = arith.constant 0 : index
    %c0_33 = arith.constant 0 : index
    %59 = vector.load %arg3[%c0_32, %c0_33] : memref<96x1xf32, #tpu.memory_space<vmem>>, vector<96x1xf32>
    %60 = vector.broadcast %59 : vector<96x1xf32> to vector<96x32xf32>
    %61 = arith.mulf %56, %60 : vector<96x32xf32>
    %cst_34 = arith.constant dense<0.000000e+00> : vector<32xf32>
    %62 = vector.multi_reduction <add>, %61, %cst_34 [0] : vector<96x32xf32> to vector<32xf32>
    %63 = vector.shape_cast %62 : vector<32xf32> to vector<1x32xf32>
    %64 = arith.mulf %61, %61 : vector<96x32xf32>
    %cst_35 = arith.constant dense<0.000000e+00> : vector<32xf32>
    %65 = vector.multi_reduction <add>, %64, %cst_35 [0] : vector<96x32xf32> to vector<32xf32>
    %66 = vector.shape_cast %65 : vector<32xf32> to vector<1x32xf32>
    %67 = tpu.iota {dimensions = array<i32: 0>} : vector<8x32xi32>
    %c0_i32 = arith.constant 0 : i32
    %68 = vector.broadcast %c0_i32 : i32 to vector<8x32xi32>
    %69 = arith.cmpi eq, %67, %68 : vector<8x32xi32>
    %c1_i32 = arith.constant 1 : i32
    %70 = vector.broadcast %c1_i32 : i32 to vector<8x32xi32>
    %71 = arith.cmpi eq, %67, %70 : vector<8x32xi32>
    %cst_36 = arith.constant 0.000000e+00 : f32
    %72 = vector.shape_cast %66 : vector<1x32xf32> to vector<1x32xf32>
    %73 = vector.broadcast %72 : vector<1x32xf32> to vector<8x32xf32>
    %74 = vector.broadcast %cst_36 : f32 to vector<8x32xf32>
    %75 = arith.select %71, %73, %74 : vector<8x32xi1>, vector<8x32xf32>
    %76 = vector.shape_cast %63 : vector<1x32xf32> to vector<1x32xf32>
    %77 = vector.broadcast %76 : vector<1x32xf32> to vector<8x32xf32>
    %78 = arith.select %69, %77, %75 : vector<8x32xi1>, vector<8x32xf32>
    %c0_37 = arith.constant 0 : index
    %c0_38 = arith.constant 0 : index
    %79 = vector.load %arg6[%c0_37, %c0_38] : memref<8x32xf32, #tpu.memory_space<vmem>>, vector<8x32xf32>
    tpu.vector_store %arg6[%c0_37, %c0_38], %78 {strides = array<i32>} : memref<8x32xf32, #tpu.memory_space<vmem>>, vector<8x32xf32>,
    return
  }
  func.func @transform_0(%arg0: i32) -> (i32, i32) {
    %c0_i32 = arith.constant 0 : i32
    %c0_i32_0 = arith.constant 0 : i32
    return %arg0, %c0_i32 : i32, i32
  }
  func.func @transform_1(%arg0: i32) -> (i32, i32) {
    %c1_i32 = arith.constant 1 : i32
    %0 = arith.addi %arg0, %c1_i32 : i32
    %c2_i32 = arith.constant 2 : i32
    %1 = arith.muli %0, %c2_i32 : i32
    %c0_i32 = arith.constant 0 : i32
    %c0_i32_0 = arith.constant 0 : i32
    return %1, %c0_i32 : i32, i32
  }
  func.func @transform_2(%arg0: i32) -> (i32, i32) {
    %c0_i32 = arith.constant 0 : i32
    %c0_i32_0 = arith.constant 0 : i32
    return %arg0, %c0_i32 : i32, i32
  }
  func.func @transform_3(%arg0: i32) -> (i32, i32, i32) {
    %c0_i32 = arith.constant 0 : i32
    %c0_i32_0 = arith.constant 0 : i32
    %c0_i32_1 = arith.constant 0 : i32
    %c0_i32_2 = arith.constant 0 : i32
    return %c0_i32, %c0_i32_0, %c0_i32_1 : i32, i32, i32
  }
  func.func @transform_4(%arg0: i32) -> (i32, i32) {
    %c0_i32 = arith.constant 0 : i32
    %c0_i32_0 = arith.constant 0 : i32
    return %arg0, %c0_i32 : i32, i32
  }
  func.func @transform_5(%arg0: i32) -> (i32, i32) {
    %c0_i32 = arith.constant 0 : i32
    %c0_i32_0 = arith.constant 0 : i32
    return %arg0, %c0_i32 : i32, i32
  }
}

module attributes {stable_mosaic.version = 11 : i64} {
  func.func @kernel(%arg0: i32, %arg1: memref<320x8xbf16, #tpu.memory_space<vmem>>, %arg2: memref<80x8xbf16, #tpu.memory_space<vmem>>, %arg3: memref<9x8x12xbf16, #tpu.memory_space<vmem>>, %arg4: memref<1x12xf32, #tpu.memory_space<vmem>>, %arg5: memref<320x12xf32, #tpu.memory_space<vmem>>) attributes {dimension_semantics = [#tpu.dimension_semantics<parallel>], iteration_bounds = array<i64: 8>, scalar_prefetch = 0 : i64, scratch_operands = 0 : i64, tpu.core_type = #tpu.core_type<tc>, window_params = [{transform_indices = @transform_0, window_bounds = array<i64: 320, 8>}, {transform_indices = @transform_1, window_bounds = array<i64: 80, 8>}, {pipeline_mode = #tpu.pipeline_mode<synchronous>, transform_indices = @transform_2, window_bounds = array<i64: 9, 8, 12>}, {pipeline_mode = #tpu.pipeline_mode<synchronous>, transform_indices = @transform_3, window_bounds = array<i64: 1, 12>}, {transform_indices = @transform_4, window_bounds = array<i64: 320, 12>}]} {
    %c0 = arith.constant 0 : index
    %c0_0 = arith.constant 0 : index
    %0 = vector.load %arg1[%c0, %c0_0] : memref<320x8xbf16, #tpu.memory_space<vmem>>, vector<320x8xbf16>
    %c0_1 = arith.constant 0 : index
    %c0_2 = arith.constant 0 : index
    %1 = vector.load %arg2[%c0_1, %c0_2] : memref<80x8xbf16, #tpu.memory_space<vmem>>, vector<80x8xbf16>
    %2 = tpu.concatenate %0, %1 in 0 : vector<320x8xbf16>, vector<80x8xbf16> -> vector<400x8xbf16>
    %3 = arith.extf %2 : vector<400x8xbf16> to vector<400x8xf32>
    %4 = vector.extract_strided_slice %3 {offsets = [0, 0], sizes = [320, 8], strides = [1, 1]} : vector<400x8xf32> to vector<320x8xf32>
    %5 = arith.truncf %4 : vector<320x8xf32> to vector<320x8xbf16>
    %c0_3 = arith.constant 0 : index
    %c0_4 = arith.constant 0 : index
    %c0_5 = arith.constant 0 : index
    %6 = vector.load %arg3[%c0_3, %c0_4, %c0_5] : memref<9x8x12xbf16, #tpu.memory_space<vmem>>, vector<1x8x12xbf16>
    %7 = vector.shape_cast %6 : vector<1x8x12xbf16> to vector<8x12xbf16>
    %cst = arith.constant dense<0.000000e+00> : vector<320x12xf32>
    %8 = tpu.matmul %5, %7, %cst {dimension_numbers = #tpu.dot_dimension_numbers<[1], [0], [0], [1], [0, 0, 1, 1], [], []>} : vector<320x8xbf16>, vector<8x12xbf16>, vector<320x12xf32> -> vector<320x12xf32>
    %9 = vector.extract_strided_slice %3 {offsets = [1, 0], sizes = [320, 8], strides = [1, 1]} : vector<400x8xf32> to vector<320x8xf32>
    %10 = arith.truncf %9 : vector<320x8xf32> to vector<320x8xbf16>
    %c1 = arith.constant 1 : index
    %c0_6 = arith.constant 0 : index
    %c0_7 = arith.constant 0 : index
    %11 = vector.load %arg3[%c1, %c0_6, %c0_7] : memref<9x8x12xbf16, #tpu.memory_space<vmem>>, vector<1x8x12xbf16>
    %12 = vector.shape_cast %11 : vector<1x8x12xbf16> to vector<8x12xbf16>
    %cst_8 = arith.constant dense<0.000000e+00> : vector<320x12xf32>
    %13 = tpu.matmul %10, %12, %cst_8 {dimension_numbers = #tpu.dot_dimension_numbers<[1], [0], [0], [1], [0, 0, 1, 1], [], []>} : vector<320x8xbf16>, vector<8x12xbf16>, vector<320x12xf32> -> vector<320x12xf32>
    %14 = arith.addf %8, %13 : vector<320x12xf32>
    %15 = vector.extract_strided_slice %3 {offsets = [2, 0], sizes = [320, 8], strides = [1, 1]} : vector<400x8xf32> to vector<320x8xf32>
    %16 = arith.truncf %15 : vector<320x8xf32> to vector<320x8xbf16>
    %c2 = arith.constant 2 : index
    %c0_9 = arith.constant 0 : index
    %c0_10 = arith.constant 0 : index
    %17 = vector.load %arg3[%c2, %c0_9, %c0_10] : memref<9x8x12xbf16, #tpu.memory_space<vmem>>, vector<1x8x12xbf16>
    %18 = vector.shape_cast %17 : vector<1x8x12xbf16> to vector<8x12xbf16>
    %cst_11 = arith.constant dense<0.000000e+00> : vector<320x12xf32>
    %19 = tpu.matmul %16, %18, %cst_11 {dimension_numbers = #tpu.dot_dimension_numbers<[1], [0], [0], [1], [0, 0, 1, 1], [], []>} : vector<320x8xbf16>, vector<8x12xbf16>, vector<320x12xf32> -> vector<320x12xf32>
    %20 = arith.addf %14, %19 : vector<320x12xf32>
    %21 = vector.extract_strided_slice %3 {offsets = [34, 0], sizes = [320, 8], strides = [1, 1]} : vector<400x8xf32> to vector<320x8xf32>
    %22 = arith.truncf %21 : vector<320x8xf32> to vector<320x8xbf16>
    %c3 = arith.constant 3 : index
    %c0_12 = arith.constant 0 : index
    %c0_13 = arith.constant 0 : index
    %23 = vector.load %arg3[%c3, %c0_12, %c0_13] : memref<9x8x12xbf16, #tpu.memory_space<vmem>>, vector<1x8x12xbf16>
    %24 = vector.shape_cast %23 : vector<1x8x12xbf16> to vector<8x12xbf16>
    %cst_14 = arith.constant dense<0.000000e+00> : vector<320x12xf32>
    %25 = tpu.matmul %22, %24, %cst_14 {dimension_numbers = #tpu.dot_dimension_numbers<[1], [0], [0], [1], [0, 0, 1, 1], [], []>} : vector<320x8xbf16>, vector<8x12xbf16>, vector<320x12xf32> -> vector<320x12xf32>
    %26 = arith.addf %20, %25 : vector<320x12xf32>
    %27 = vector.extract_strided_slice %3 {offsets = [35, 0], sizes = [320, 8], strides = [1, 1]} : vector<400x8xf32> to vector<320x8xf32>
    %28 = arith.truncf %27 : vector<320x8xf32> to vector<320x8xbf16>
    %c4 = arith.constant 4 : index
    %c0_15 = arith.constant 0 : index
    %c0_16 = arith.constant 0 : index
    %29 = vector.load %arg3[%c4, %c0_15, %c0_16] : memref<9x8x12xbf16, #tpu.memory_space<vmem>>, vector<1x8x12xbf16>
    %30 = vector.shape_cast %29 : vector<1x8x12xbf16> to vector<8x12xbf16>
    %cst_17 = arith.constant dense<0.000000e+00> : vector<320x12xf32>
    %31 = tpu.matmul %28, %30, %cst_17 {dimension_numbers = #tpu.dot_dimension_numbers<[1], [0], [0], [1], [0, 0, 1, 1], [], []>} : vector<320x8xbf16>, vector<8x12xbf16>, vector<320x12xf32> -> vector<320x12xf32>
    %32 = arith.addf %26, %31 : vector<320x12xf32>
    %33 = vector.extract_strided_slice %3 {offsets = [36, 0], sizes = [320, 8], strides = [1, 1]} : vector<400x8xf32> to vector<320x8xf32>
    %34 = arith.truncf %33 : vector<320x8xf32> to vector<320x8xbf16>
    %c5 = arith.constant 5 : index
    %c0_18 = arith.constant 0 : index
    %c0_19 = arith.constant 0 : index
    %35 = vector.load %arg3[%c5, %c0_18, %c0_19] : memref<9x8x12xbf16, #tpu.memory_space<vmem>>, vector<1x8x12xbf16>
    %36 = vector.shape_cast %35 : vector<1x8x12xbf16> to vector<8x12xbf16>
    %cst_20 = arith.constant dense<0.000000e+00> : vector<320x12xf32>
    %37 = tpu.matmul %34, %36, %cst_20 {dimension_numbers = #tpu.dot_dimension_numbers<[1], [0], [0], [1], [0, 0, 1, 1], [], []>} : vector<320x8xbf16>, vector<8x12xbf16>, vector<320x12xf32> -> vector<320x12xf32>
    %38 = arith.addf %32, %37 : vector<320x12xf32>
    %39 = vector.extract_strided_slice %3 {offsets = [68, 0], sizes = [320, 8], strides = [1, 1]} : vector<400x8xf32> to vector<320x8xf32>
    %40 = arith.truncf %39 : vector<320x8xf32> to vector<320x8xbf16>
    %c6 = arith.constant 6 : index
    %c0_21 = arith.constant 0 : index
    %c0_22 = arith.constant 0 : index
    %41 = vector.load %arg3[%c6, %c0_21, %c0_22] : memref<9x8x12xbf16, #tpu.memory_space<vmem>>, vector<1x8x12xbf16>
    %42 = vector.shape_cast %41 : vector<1x8x12xbf16> to vector<8x12xbf16>
    %cst_23 = arith.constant dense<0.000000e+00> : vector<320x12xf32>
    %43 = tpu.matmul %40, %42, %cst_23 {dimension_numbers = #tpu.dot_dimension_numbers<[1], [0], [0], [1], [0, 0, 1, 1], [], []>} : vector<320x8xbf16>, vector<8x12xbf16>, vector<320x12xf32> -> vector<320x12xf32>
    %44 = arith.addf %38, %43 : vector<320x12xf32>
    %45 = vector.extract_strided_slice %3 {offsets = [69, 0], sizes = [320, 8], strides = [1, 1]} : vector<400x8xf32> to vector<320x8xf32>
    %46 = arith.truncf %45 : vector<320x8xf32> to vector<320x8xbf16>
    %c7 = arith.constant 7 : index
    %c0_24 = arith.constant 0 : index
    %c0_25 = arith.constant 0 : index
    %47 = vector.load %arg3[%c7, %c0_24, %c0_25] : memref<9x8x12xbf16, #tpu.memory_space<vmem>>, vector<1x8x12xbf16>
    %48 = vector.shape_cast %47 : vector<1x8x12xbf16> to vector<8x12xbf16>
    %cst_26 = arith.constant dense<0.000000e+00> : vector<320x12xf32>
    %49 = tpu.matmul %46, %48, %cst_26 {dimension_numbers = #tpu.dot_dimension_numbers<[1], [0], [0], [1], [0, 0, 1, 1], [], []>} : vector<320x8xbf16>, vector<8x12xbf16>, vector<320x12xf32> -> vector<320x12xf32>
    %50 = arith.addf %44, %49 : vector<320x12xf32>
    %51 = vector.extract_strided_slice %3 {offsets = [70, 0], sizes = [320, 8], strides = [1, 1]} : vector<400x8xf32> to vector<320x8xf32>
    %52 = arith.truncf %51 : vector<320x8xf32> to vector<320x8xbf16>
    %c8 = arith.constant 8 : index
    %c0_27 = arith.constant 0 : index
    %c0_28 = arith.constant 0 : index
    %53 = vector.load %arg3[%c8, %c0_27, %c0_28] : memref<9x8x12xbf16, #tpu.memory_space<vmem>>, vector<1x8x12xbf16>
    %54 = vector.shape_cast %53 : vector<1x8x12xbf16> to vector<8x12xbf16>
    %cst_29 = arith.constant dense<0.000000e+00> : vector<320x12xf32>
    %55 = tpu.matmul %52, %54, %cst_29 {dimension_numbers = #tpu.dot_dimension_numbers<[1], [0], [0], [1], [0, 0, 1, 1], [], []>} : vector<320x8xbf16>, vector<8x12xbf16>, vector<320x12xf32> -> vector<320x12xf32>
    %56 = arith.addf %50, %55 : vector<320x12xf32>
    %c0_30 = arith.constant 0 : index
    %c0_31 = arith.constant 0 : index
    %57 = vector.load %arg4[%c0_30, %c0_31] : memref<1x12xf32, #tpu.memory_space<vmem>>, vector<1x12xf32>
    %58 = vector.broadcast %57 : vector<1x12xf32> to vector<320x12xf32>
    %59 = arith.addf %56, %58 : vector<320x12xf32>
    %60 = math.tanh %59 : vector<320x12xf32>
    %c0_32 = arith.constant 0 : index
    %c0_33 = arith.constant 0 : index
    %61 = vector.load %arg5[%c0_32, %c0_33] : memref<320x12xf32, #tpu.memory_space<vmem>>, vector<320x12xf32>
    tpu.vector_store %arg5[%c0_32, %c0_33], %60 {strides = array<i32>} : memref<320x12xf32, #tpu.memory_space<vmem>>, vector<320x12xf32>,
    return
  }
  func.func @transform_0(%arg0: i32) -> (i32, i32) {
    %c0_i32 = arith.constant 0 : i32
    %c0_i32_0 = arith.constant 0 : i32
    return %arg0, %c0_i32 : i32, i32
  }
  func.func @transform_1(%arg0: i32) -> (i32, i32) {
    %c1_i32 = arith.constant 1 : i32
    %0 = arith.addi %arg0, %c1_i32 : i32
    %c4_i32 = arith.constant 4 : i32
    %1 = arith.muli %0, %c4_i32 : i32
    %c0_i32 = arith.constant 0 : i32
    %c0_i32_0 = arith.constant 0 : i32
    return %1, %c0_i32 : i32, i32
  }
  func.func @transform_2(%arg0: i32) -> (i32, i32, i32) {
    %c0_i32 = arith.constant 0 : i32
    %c0_i32_0 = arith.constant 0 : i32
    %c0_i32_1 = arith.constant 0 : i32
    %c0_i32_2 = arith.constant 0 : i32
    return %c0_i32, %c0_i32_0, %c0_i32_1 : i32, i32, i32
  }
  func.func @transform_3(%arg0: i32) -> (i32, i32) {
    %c0_i32 = arith.constant 0 : i32
    %c0_i32_0 = arith.constant 0 : i32
    %c0_i32_1 = arith.constant 0 : i32
    return %c0_i32, %c0_i32_0 : i32, i32
  }
  func.func @transform_4(%arg0: i32) -> (i32, i32) {
    %c0_i32 = arith.constant 0 : i32
    %c0_i32_0 = arith.constant 0 : i32
    return %arg0, %c0_i32 : i32, i32
  }
}

</mosaic_0001>

<bundles_post_ra>
// kernel: tile.43
= control target key start
LH: loop header
LB: loop body
LE: loop exit
PB: predicated region body
PF: predicated region fallthrough
CT: control target
= control target key end

     0   :  { %s28_s0 = inlined_call_operand.vmem [shape: f32[64], index: 0, kind: input, shape index: {}]   ;;  %s29_s1 = inlined_call_operand.vmem [shape: f32[16,64], index: 1, kind: output, shape index: {}]  }
   0x1   :  { %v4_v0 = vld [vmem:[%s28_s0] ss:$0 sm:$0xff] }
   0x2   :  { %5 = vst [vmem:[%s29_s1] sm:$0xff] %v4_v0 }
   0x3   :  { %8 = vst [vmem:[%s29_s1 + $0x8] sm:$0xff] %v4_v0 }

// kernel: mul.32
= control target key start
LH: loop header
LB: loop body
LE: loop exit
PB: predicated region body
PF: predicated region fallthrough
CT: control target
= control target key end

     0   :  { %vm3_vm0 = vcmask 523264   ;;  %s13_s11 = smov 64   ;;  %vm9_vm1 = vcmask 1048064   ;;  %s36_s0 = inlined_call_operand.vmem [shape: f32[16,64], index: 0, kind: input, shape index: {}]   ;;  %s37_s1 = inlined_call_operand.vmem [shape: f32[1024], index: 1, kind: output, shape index: {}]  }
   0x1   :  { %v2_v0 = vld [vmem:[%s36_s0] ss:$2 sm:$0xff]   ;;  %v11_v1 = vld [vmem:[%s36_s0 + $0x1] ss:$2 sm:$0xff]  }
   0x2   :  { %4 = vst.msk [vmem:[%s37_s1] sm:$0xff] %vm3_vm0, %v2_v0   ;;  %7 = vrot.lane.b32.xlu0 %v11_v1, %s13_s11 }
  0x74   :  { %v8_v2 = vpop.permute.xlu0 %7  }
  0x75   :  { %10 = vst.msk [vmem:[%s37_s1] sm:$0xff] %vm9_vm1, %v8_v2  }

// kernel: tile.53
= control target key start
LH: loop header
LB: loop body
LE: loop exit
PB: predicated region body
PF: predicated region fallthrough
CT: control target
= control target key end

     0   :  { %s22_s0 = inlined_call_operand.vmem [shape: f32[32], index: 0, kind: input, shape index: {}]   ;;  %s23_s1 = inlined_call_operand.vmem [shape: f32[4,32], index: 1, kind: output, shape index: {}]  }
   0x1   :  { %v4_v0 = vld [vmem:[%s22_s0] ss:$0 sm:$0xff] }
   0x2   :  { %5 = vst [vmem:[%s23_s1] sm:$0xf] %v4_v0 }

// kernel: mul.39
= control target key start
LH: loop header
LB: loop body
LE: loop exit
PB: predicated region body
PF: predicated region fallthrough
CT: control target
= control target key end

     0   :  { %s37_s8 = smov 32   ;;  %s38_s9 = smov 64   ;;  %vm7_vm0 = vcmask 261120   ;;  %vm13_vm1 = vcmask 1048320   ;;  %vm19_vm2 = vcmask 785920   ;;  %vm25_vm3 = vcmask 523520   ;;  %s55_s0 = inlined_call_operand.vmem [shape: f32[4,32], index: 0, kind: input, shape index: {}]   ;;  %s56_s1 = inlined_call_operand.vmem [shape: f32[128], index: 1, kind: output, shape index: {}]  }
   0x1   :  { %v4_v0 = vld [vmem:[%s55_s0] sm:$0xf]  ;;  %s36_s0 = smov 96  }
   0x2   :  { %5 = vst [vmem:[#allocation1] sm:$0xf] %v4_v0 }
   0x9   :  { %v10_v1 = vld [vmem:[#allocation1 + $0x3] sm:$0x1]   ;;  %v22_v2 = vld [vmem:[#allocation1 + $0x1] sm:$0x1]   ;;  %v16_v3 = vld [vmem:[#allocation1 + $0x2] sm:$0x1]  }
   0xa   :  { %11 = vrot.lane.b32.xlu0 %v10_v1, %s36_s0  ;;  %23 = vrot.lane.b32.xlu1 %v22_v2, %s37_s8  ;;  %v6_v4 = vld [vmem:[#allocation1] sm:$0x1]  }
   0xb   :  { %8 = vst.msk [vmem:[#allocation0] sm:$0x1] %vm7_vm0, %v6_v4  }
  0x12   :  { %17 = vrot.lane.b32.xlu0 %v16_v3, %s38_s9 }
  0x7c   :  { %v12_v5 = vpop.permute.xlu0 %11   ;;  %v24_v6 = vpop.permute.xlu1 %23  }
  0x7d   :  { %14 = vst.msk [vmem:[#allocation0] sm:$0x1] %vm13_vm1, %v12_v5  }
  0x84   :  { %v18_v7 = vpop.permute.xlu0 %17  }
  0x85   :  { %20 = vst.msk [vmem:[#allocation0] sm:$0x1] %vm19_vm2, %v18_v7  }
  0x86   :  { %26 = vst.msk [vmem:[#allocation0] sm:$0x1] %vm25_vm3, %v24_v6  }
  0x8d   :  { %v29_v8 = vld [vmem:[#allocation0] sm:$0x1] }
  0x8e   :  { %32 = vst [vmem:[%s56_s1] sm:$0x1] %v29_v8 }

// kernel: _lambda_.5
= control target key start
LH: loop header
LB: loop body
LE: loop exit
PB: predicated region body
PF: predicated region fallthrough
CT: control target
= control target key end

     0   :  { %9 = vsyncpa [#allocation3], 0  ;;  %s464_s15 = smov [#allocation2]   ;;  %s465_s17 = smov 512   ;;  %s591_s0 = inlined_call_operand.vmem [shape: bf16[16,16], index: 0, kind: input, shape index: {}]   ;;  %s592_s1 = inlined_call_operand.hbm [shape: bf16[16,1024], index: 1, kind: input, shape index: {}]   ;;  %s593_s2 = inlined_call_operand.vmem [shape: bf16[16,1024], index: 2, kind: output, shape index: {0}]   ;;  %s594_s3 = inlined_call_operand.vmem [shape: f32[8,1024], index: 3, kind: output, shape index: {1}]  }
   0x1   :  { %s16_s14 = sshll.u32 %s592_s1, 4  ;;  %s18_s16 = sshll.u32 %s464_s15, 4  ;;  %s17_s14 = int_to_ptr.hbm [resolvable:$true] %s16_s14  ;;  %s19_s16 = int_to_ptr.vmem [resolvable:$true] %s18_s16 }
   0x2   :  { %s466_s18 = smov 32  }
   0x3   :  { %24 = dma.hbm_to_vmem [thread:$0]  %s17_s14, 1024, %s19_s16, [#allocation3], %s465_s17, %s465_s17, %s466_s18  }
   0x4   :  { %462 = dma.done.wait [#allocation3], 1024  }
   0x5   :  { %463 = vsyncadd [#allocation3], 4294966272  ;;  %v388_v0 = vld [vmem:[#allocation2] sm:$0xf]  ;;  %v427_v2 = vld [vmem:[#allocation2 + $0x4] sm:$0xf]  ;;  %v345_v29 = vlaneseq }
   0x6   :  { %v431_v1 = vld [vmem:[#allocation2 + $0x1c] sm:$0xf0]  ;;  %v390_v4 = vld [vmem:[#allocation2 + $0x20] sm:$0xf0]  ;;  %v396_v5 = vld [vmem:[#allocation2 + $0x8] sm:$0xf] }
   0x7   :  { %v389_v3 = vor.u32 %v431_v1, %v388_v0  ;;  %v432_v6 = vld [vmem:[#allocation2 + $0x24] sm:$0xf0]  ;;  %v393_v7 = vor.u32 %v427_v2, %v390_v4  ;;  %v428_v9 = vld [vmem:[#allocation2 + $0xc] sm:$0xf]  ;;  %v426_v11 = vld [vmem:[%s591_s0] sm:$0xff]  ;;  %vm85_vm0 = vcmask 130048  }
   0x8   :  { %v397_v8 = vor.u32 %v432_v6, %v396_v5  ;;  %v398_v10 = vld [vmem:[#allocation2 + $0x28] sm:$0xf0]  ;;  %v412_v13 = vld [vmem:[#allocation2 + $0x18] sm:$0xf]  ;;  %v430_v15 = vld [vmem:[#allocation2 + $0x1c] sm:$0xf] }
   0x9   :  { %96 = vmatpush.bf16.msra.mxu0 %v389_v3  ;;  %v401_v12 = vor.u32 %v428_v9, %v398_v10  ;;  %v434_v14 = vld [vmem:[#allocation2 + $0x34] sm:$0xf0]  ;;  %110 = vmatpush.bf16.msra.mxu1 %v393_v7  ;;  %v414_v17 = vld [vmem:[#allocation2 + $0x38] sm:$0xf0]  ;;  %v404_v18 = vld [vmem:[#allocation2 + $0x10] sm:$0xf] }
   0xa   :  { %124 = vmatpush.bf16.msra.mxu2 %v397_v8  ;;  %v413_v16 = vor.u32 %v434_v14, %v412_v13  ;;  %v433_v19 = vld [vmem:[#allocation2 + $0x2c] sm:$0xf0]  ;;  %v417_v20 = vor.u32 %v430_v15, %v414_v17  ;;  %v429_v22 = vld [vmem:[#allocation2 + $0x14] sm:$0xf]  ;;  %v507_v43 = vshrl.u32 %v345_v29, 7 }
   0xb   :  { %138 = vmatpush.bf16.msra.mxu3 %v401_v12  ;;  %v405_v21 = vor.u32 %v433_v19, %v404_v18  ;;  %v406_v23 = vld [vmem:[#allocation2 + $0x30] sm:$0xf0] }
   0xc   :  { %418 = vmatmul.msk.bf16.vlgmr.msra.gmra.mxu0 %vm85_vm0, %v426_v11  ;;  %v409_v24 = vor.u32 %v429_v22, %v406_v23  ;;  %419 = vmatmul.msk.bf16.vlgmr.msra.gmra.mxu1 %vm85_vm0, %v426_v11  ;;  %vm347_vm1 = vcmp.eq.s32.totalorder %v507_v43, 0  ;;  %vm348_vm2 = vcmp.eq.s32.totalorder %v507_v43, 1 }
   0xd   :  { %420 = vmatmul.msk.bf16.vlgmr.msra.gmra.mxu2 %vm85_vm0, %v426_v11  ;;  %152 = vmatpush.bf16.msrb.mxu0 %v405_v21 }
   0xe   :  { %180 = vmatpush.bf16.msrb.mxu2 %v413_v16  ;;  %421 = vmatmul.msk.bf16.vlgmr.msra.gmra.mxu3 %vm85_vm0, %v426_v11 }
   0xf   :  { %194 = vmatpush.bf16.msrb.mxu3 %v417_v20  ;;  %166 = vmatpush.bf16.msrb.mxu1 %v409_v24 }
  0x1c   :  { %422 = vmatmul.msk.bf16.vlgmr.msrb.gmra.mxu0 %vm85_vm0, %v426_v11  ;;  %423 = vmatmul.msk.bf16.vlgmr.msrb.gmra.mxu1 %vm85_vm0, %v426_v11 }
  0x1d   :  { %424 = vmatmul.msk.bf16.vlgmr.msrb.gmra.mxu2 %vm85_vm0, %v426_v11 }
  0x1e   :  { %425 = vmatmul.msk.bf16.vlgmr.msrb.gmra.mxu3 %vm85_vm0, %v426_v11 }
  0x89   :  { %v98_v25 = vpop.f32.mrf.mxu0  ;;  %v112_v26 = vpop.f32.mrf.mxu1 }
  0x8a   :  { %v201_v27 = vpack.c.bf16 %v112_v26, %v98_v25  ;;  %v273_v32 = vmul.f32 %v98_v25, %v98_v25  ;;  %v274_v37 = vmul.f32 %v112_v26, %v112_v26 }
  0x8c   :  { %209 = vst [vmem:[%s593_s2] sm:$0xff] %v201_v27 }
  0x90   :  { %v126_v28 = vpop.f32.mrf.mxu2 }
  0x91   :  { %v140_v30 = vpop.f32.mrf.mxu3  ;;  %v100_v31 = vpop.f32.mrf.mxu0  ;;  %v275_v50 = vmul.f32 %v126_v28, %v126_v28 }
  0x92   :  { %v202_v33 = vpack.c.bf16 %v140_v30, %v126_v28  ;;  %v217_v34 = vadd.f32 %v100_v31, %v98_v25  ;;  %v281_v35 = vmul.f32 %v100_v31, %v100_v31  ;;  %v114_v36 = vpop.f32.mrf.mxu1  ;;  %v276_v51 = vmul.f32 %v140_v30, %v140_v30 }
  0x93   :  { %v205_v38 = vpack.c.bf16 %v114_v36, %v100_v31  ;;  %v224_v39 = vadd.f32 %v114_v36, %v112_v26  ;;  %v282_v40 = vmul.f32 %v114_v36, %v114_v36 }
  0x94   :  { %210 = vst [vmem:[%s593_s2 + $0x8] sm:$0xff] %v202_v33  ;;  %v218_v41 = vrot.slane %v217_v34, 4  ;;  %v289_v42 = vadd.f32 %v281_v35, %v273_v32 }
  0x95   :  { %213 = vst [vmem:[%s593_s2 + $0x20] sm:$0xff] %v205_v38  ;;  %v225_v44 = vrot.slane %v224_v39, 4  ;;  %v296_v45 = vadd.f32 %v282_v40, %v274_v37 }
  0x96   :  { %v219_v46 = vadd.f32 %v218_v41, %v217_v34  ;;  %v290_v47 = vrot.slane %v289_v42, 4 }
  0x97   :  { %v226_v48 = vadd.f32 %v225_v44, %v224_v39  ;;  %v297_v49 = vrot.slane %v296_v45, 4 }
  0x98   :  { %v220_v52 = vrot.slane %v219_v46, 2  ;;  %v291_v53 = vadd.f32 %v290_v47, %v289_v42  ;;  %v128_v54 = vpop.f32.mrf.mxu2 }
  0x99   :  { %v227_v55 = vrot.slane %v226_v48, 2  ;;  %v298_v56 = vadd.f32 %v297_v49, %v296_v45  ;;  %v231_v57 = vadd.f32 %v128_v54, %v126_v28  ;;  %v283_v58 = vmul.f32 %v128_v54, %v128_v54  ;;  %v142_v59 = vpop.f32.mrf.mxu3  ;;  %v154_v60 = vpop.f32.mrf.mxu0 }
  0x9a   :  { %v221_v61 = vadd.f32 %v220_v52, %v219_v46  ;;  %v292_v62 = vrot.slane %v291_v53, 2  ;;  %v206_v63 = vpack.c.bf16 %v142_v59, %v128_v54  ;;  %v238_v0 = vadd.f32 %v142_v59, %v140_v30  ;;  %v168_v1 = vpop.f32.mrf.mxu1 }
  0x9b   :  { %v228_v2 = vadd.f32 %v227_v55, %v226_v48  ;;  %v299_v3 = vrot.slane %v298_v56, 2  ;;  %v232_v4 = vrot.slane %v231_v57, 4  ;;  %v303_v5 = vadd.f32 %v283_v58, %v275_v50 }
  0x9c   :  { %v222_v6 = vrot.slane %v221_v61, 1  ;;  %v293_v7 = vadd.f32 %v292_v62, %v291_v53  ;;  %214 = vst [vmem:[%s593_s2 + $0x28] sm:$0xff] %v206_v63  ;;  %v239_v8 = vrot.slane %v238_v0, 4  ;;  %v284_v9 = vmul.f32 %v142_v59, %v142_v59 }
  0x9d   :  { %v229_v10 = vrot.slane %v228_v2, 1  ;;  %v300_v11 = vadd.f32 %v299_v3, %v298_v56  ;;  %v233_v12 = vadd.f32 %v232_v4, %v231_v57  ;;  %v304_v13 = vrot.slane %v303_v5, 4 }
  0x9e   :  { %v294_v14 = vrot.slane %v293_v7, 1  ;;  %v240_v15 = vadd.f32 %v239_v8, %v238_v0  ;;  %v310_v16 = vadd.f32 %v284_v9, %v276_v51  ;;  %v223_v17 = vadd.f32 %v222_v6, %v221_v61 }
  0x9f   :  { %v301_v18 = vrot.slane %v300_v11, 1  ;;  %v234_v19 = vrot.slane %v233_v12, 2  ;;  %v305_v20 = vadd.f32 %v304_v13, %v303_v5  ;;  %v230_v22 = vadd.f32 %v229_v10, %v228_v2 }
  0xa0   :  { %v295_v21 = vadd.f32 %v294_v14, %v293_v7  ;;  %v241_v23 = vrot.slane %v240_v15, 2  ;;  %v311_v24 = vrot.slane %v310_v16, 4  ;;  %v182_v25 = vpop.f32.mrf.mxu2  ;;  %v203_v29 = vpack.c.bf16 %v168_v1, %v154_v60 }
  0xa1   :  { %v302_v26 = vadd.f32 %v301_v18, %v300_v11  ;;  %v235_v27 = vadd.f32 %v234_v19, %v233_v12  ;;  %v306_v28 = vrot.slane %v305_v20, 2  ;;  %v517_v30 = vpop.f32.mrf.mxu3  ;;  %v277_v34 = vmul.f32 %v154_v60, %v154_v60  ;;  %v156_v39 = vpop.f32.mrf.mxu0 }
  0xa2   :  { %v349_v31 = vsel %vm348_vm2, %v295_v21, 0.0  ;;  %v242_v32 = vadd.f32 %v241_v23, %v240_v15  ;;  %v312_v33 = vadd.f32 %v311_v24, %v310_v16  ;;  %211 = vst [vmem:[%s593_s2 + $0x10] sm:$0xff] %v203_v29  ;;  %v278_v44 = vmul.f32 %v168_v1, %v168_v1  ;;  %v170_v45 = vpop.f32.mrf.mxu1 }
  0xa3   :  { %v357_v35 = vsel %vm347_vm1, %v223_v17, %v349_v31  ;;  %v350_v36 = vsel %vm348_vm2, %v302_v26, 0.0  ;;  %v236_v37 = vrot.slane %v235_v27, 1  ;;  %v307_v38 = vadd.f32 %v306_v28, %v305_v20 }
  0xa4   :  { %365 = vst [vmem:[%s594_s3] sm:$0xff] %v357_v35  ;;  %v358_v40 = vsel %vm347_vm1, %v230_v22, %v350_v36  ;;  %v243_v41 = vrot.slane %v242_v32, 1  ;;  %v313_v42 = vrot.slane %v312_v33, 2  ;;  %v279_v48 = vmul.f32 %v182_v25, %v182_v25 }
  0xa5   :  { %366 = vst [vmem:[%s594_s3 + $0x8] sm:$0xff] %v358_v40  ;;  %v237_v46 = vadd.f32 %v236_v37, %v235_v27  ;;  %v308_v47 = vrot.slane %v307_v38, 1  ;;  %v204_v49 = vpack.c.bf16 %v517_v30, %v182_v25  ;;  %v280_v51 = vmul.f32 %v517_v30, %v517_v30 }
  0xa6   :  { %v314_v50 = vadd.f32 %v313_v42, %v312_v33  ;;  %v245_v52 = vadd.f32 %v156_v39, %v154_v60  ;;  %v285_v53 = vmul.f32 %v156_v39, %v156_v39  ;;  %v207_v55 = vpack.c.bf16 %v170_v45, %v156_v39 }
  0xa7   :  { %v309_v54 = vadd.f32 %v308_v47, %v307_v38  ;;  %212 = vst [vmem:[%s593_s2 + $0x18] sm:$0xff] %v204_v49  ;;  %v252_v56 = vadd.f32 %v170_v45, %v168_v1  ;;  %v286_v57 = vmul.f32 %v170_v45, %v170_v45  ;;  %v244_v58 = vadd.f32 %v243_v41, %v242_v32 }
  0xa8   :  { %v315_v59 = vrot.slane %v314_v50, 1  ;;  %v246_v61 = vrot.slane %v245_v52, 4  ;;  %v317_v62 = vadd.f32 %v285_v53, %v277_v34  ;;  %v184_v63 = vpop.f32.mrf.mxu2  ;;  %215 = vst [vmem:[%s593_s2 + $0x30] sm:$0xff] %v207_v55 }
  0xa9   :  { %v351_v0 = vsel %vm348_vm2, %v309_v54, 0.0  ;;  %v253_v60 = vrot.slane %v252_v56, 4  ;;  %v324_v2 = vadd.f32 %v286_v57, %v278_v44  ;;  %v259_v3 = vadd.f32 %v184_v63, %v182_v25  ;;  %v198_v4 = vpop.f32.mrf.mxu3 }
  0xaa   :  { %v359_v1 = vsel %vm347_vm1, %v237_v46, %v351_v0  ;;  %v316_v5 = vadd.f32 %v315_v59, %v314_v50  ;;  %v247_v6 = vadd.f32 %v246_v61, %v245_v52  ;;  %v318_v7 = vrot.slane %v317_v62, 4 }
  0xab   :  { %367 = vst [vmem:[%s594_s3 + $0x10] sm:$0xff] %v359_v1  ;;  %v254_v8 = vadd.f32 %v253_v60, %v252_v56  ;;  %v325_v9 = vrot.slane %v324_v2, 4  ;;  %v260_v10 = vrot.slane %v259_v3, 4  ;;  %v287_v11 = vmul.f32 %v184_v63, %v184_v63 }
  0xac   :  { %v352_v12 = vsel %vm348_vm2, %v316_v5, 0.0  ;;  %v248_v13 = vrot.slane %v247_v6, 2  ;;  %v319_v14 = vadd.f32 %v318_v7, %v317_v62  ;;  %v208_v15 = vpack.c.bf16 %v198_v4, %v184_v63 }
  0xad   :  { %v360_v16 = vsel %vm347_vm1, %v244_v58, %v352_v12  ;;  %v255_v17 = vrot.slane %v254_v8, 2  ;;  %v326_v18 = vadd.f32 %v325_v9, %v324_v2  ;;  %v261_v19 = vadd.f32 %v260_v10, %v259_v3 }
  0xae   :  { %368 = vst [vmem:[%s594_s3 + $0x18] sm:$0xff] %v360_v16  ;;  %v249_v20 = vadd.f32 %v248_v13, %v247_v6  ;;  %v320_v21 = vrot.slane %v319_v14, 2  ;;  %v331_v22 = vadd.f32 %v287_v11, %v279_v48  ;;  %v266_v23 = vadd.f32 %v198_v4, %v517_v30 }
  0xaf   :  { %v256_v24 = vadd.f32 %v255_v17, %v254_v8  ;;  %v327_v25 = vrot.slane %v326_v18, 2  ;;  %v262_v26 = vrot.slane %v261_v19, 2  ;;  %216 = vst [vmem:[%s593_s2 + $0x38] sm:$0xff] %v208_v15  ;;  %v288_v27 = vmul.f32 %v198_v4, %v198_v4 }
  0xb0   :  { %v321_v28 = vadd.f32 %v320_v21, %v319_v14  ;;  %v332_v29 = vrot.slane %v331_v22, 4  ;;  %v267_v31 = vrot.slane %v266_v23, 4  ;;  %v250_v32 = vrot.slane %v249_v20, 1 }
  0xb1   :  { %v328_v33 = vadd.f32 %v327_v25, %v326_v18  ;;  %v338_v34 = vadd.f32 %v288_v27, %v280_v51  ;;  %v257_v36 = vrot.slane %v256_v24, 1  ;;  %v263_v30 = vadd.f32 %v262_v26, %v261_v19 }
  0xb2   :  { %v322_v35 = vrot.slane %v321_v28, 1  ;;  %v333_v37 = vadd.f32 %v332_v29, %v331_v22  ;;  %v268_v38 = vadd.f32 %v267_v31, %v266_v23  ;;  %v251_v45 = vadd.f32 %v250_v32, %v249_v20 }
  0xb3   :  { %v329_v39 = vrot.slane %v328_v33, 1  ;;  %v339_v40 = vrot.slane %v338_v34, 4  ;;  %v258_v49 = vadd.f32 %v257_v36, %v256_v24  ;;  %v264_v54 = vrot.slane %v263_v30, 1 }
  0xb4   :  { %v323_v41 = vadd.f32 %v322_v35, %v321_v28  ;;  %v334_v42 = vrot.slane %v333_v37, 2  ;;  %v269_v44 = vrot.slane %v268_v38, 2 }
  0xb5   :  { %v330_v46 = vadd.f32 %v329_v39, %v328_v33  ;;  %v340_v47 = vadd.f32 %v339_v40, %v338_v34  ;;  %v265_v62 = vadd.f32 %v264_v54, %v263_v30 }
  0xb6   :  { %v353_v48 = vsel %vm348_vm2, %v323_v41, 0.0  ;;  %v335_v50 = vadd.f32 %v334_v42, %v333_v37  ;;  %v270_v52 = vadd.f32 %v269_v44, %v268_v38 }
  0xb7   :  { %v361_v51 = vsel %vm347_vm1, %v251_v45, %v353_v48  ;;  %v354_v53 = vsel %vm348_vm2, %v330_v46, 0.0  ;;  %v341_v55 = vrot.slane %v340_v47, 2 }
  0xb8   :  { %369 = vst [vmem:[%s594_s3 + $0x20] sm:$0xff] %v361_v51  ;;  %v362_v56 = vsel %vm347_vm1, %v258_v49, %v354_v53  ;;  %v336_v57 = vrot.slane %v335_v50, 1  ;;  %v271_v61 = vrot.slane %v270_v52, 1 }
  0xb9   :  { %370 = vst [vmem:[%s594_s3 + $0x28] sm:$0xff] %v362_v56  ;;  %v342_v58 = vadd.f32 %v341_v55, %v340_v47 }
  0xba   :  { %v337_v59 = vadd.f32 %v336_v57, %v335_v50  ;;  %v272_v3 = vadd.f32 %v271_v61, %v270_v52 }
  0xbb   :  { %v343_v63 = vrot.slane %v342_v58, 1 }
  0xbc   :  { %v355_v0 = vsel %vm348_vm2, %v337_v59, 0.0 }
  0xbd   :  { %v363_v60 = vsel %vm347_vm1, %v265_v62, %v355_v0  ;;  %v344_v2 = vadd.f32 %v343_v63, %v342_v58 }
  0xbe   :  { %371 = vst [vmem:[%s594_s3 + $0x30] sm:$0xff] %v363_v60 }
  0xbf   :  { %v356_v4 = vsel %vm348_vm2, %v344_v2, 0.0 }
  0xc0   :  { %v364_v1 = vsel %vm347_vm1, %v272_v3, %v356_v4 }
  0xc1   :  { %372 = vst [vmem:[%s594_s3 + $0x38] sm:$0xff] %v364_v1 }
  0xc2   :  { %381 = vsyncpa [#allocation3], 1 }

// kernel: tile.63
= control target key start
LH: loop header
LB: loop body
LE: loop exit
PB: predicated region body
PF: predicated region fallthrough
CT: control target
= control target key end

     0   :  { %s22_s0 = inlined_call_operand.vmem [shape: f32[16], index: 0, kind: input, shape index: {}]   ;;  %s23_s1 = inlined_call_operand.vmem [shape: f32[4,16], index: 1, kind: output, shape index: {}]  }
   0x1   :  { %v4_v0 = vld [vmem:[%s22_s0] ss:$0 sm:$0xff] }
   0x2   :  { %5 = vst [vmem:[%s23_s1] sm:$0xf] %v4_v0 }

// kernel: mul.46
= control target key start
LH: loop header
LB: loop body
LE: loop exit
PB: predicated region body
PF: predicated region fallthrough
CT: control target
= control target key end

     0   :  { %s37_s8 = smov 16   ;;  %s38_s9 = smov 32   ;;  %vm7_vm0 = vcmask 130048   ;;  %vm13_vm1 = vcmask 523648   ;;  %vm19_vm2 = vcmask 392448   ;;  %vm25_vm3 = vcmask 261248   ;;  %s55_s0 = inlined_call_operand.vmem [shape: f32[4,16], index: 0, kind: input, shape index: {}]   ;;  %s56_s1 = inlined_call_operand.vmem [shape: f32[64], index: 1, kind: output, shape index: {}]  }
   0x1   :  { %v4_v0 = vld [vmem:[%s55_s0] sm:$0xf]  ;;  %s36_s0 = smov 48  }
   0x2   :  { %5 = vst [vmem:[#allocation1] sm:$0xf] %v4_v0 }
   0x9   :  { %v10_v1 = vld [vmem:[#allocation1 + $0x3] sm:$0x1]   ;;  %v22_v2 = vld [vmem:[#allocation1 + $0x1] sm:$0x1]   ;;  %v16_v3 = vld [vmem:[#allocation1 + $0x2] sm:$0x1]  }
   0xa   :  { %11 = vrot.lane.b32.xlu0 %v10_v1, %s36_s0  ;;  %23 = vrot.lane.b32.xlu1 %v22_v2, %s37_s8  ;;  %v6_v4 = vld [vmem:[#allocation1] sm:$0x1]  }
   0xb   :  { %8 = vst.msk [vmem:[#allocation0] sm:$0x1] %vm7_vm0, %v6_v4  }
  0x12   :  { %17 = vrot.lane.b32.xlu0 %v16_v3, %s38_s9 }
  0x7c   :  { %v12_v5 = vpop.permute.xlu0 %11   ;;  %v24_v6 = vpop.permute.xlu1 %23  }
  0x7d   :  { %14 = vst.msk [vmem:[#allocation0] sm:$0x1] %vm13_vm1, %v12_v5  }
  0x84   :  { %v18_v7 = vpop.permute.xlu0 %17  }
  0x85   :  { %20 = vst.msk [vmem:[#allocation0] sm:$0x1] %vm19_vm2, %v18_v7  }
  0x86   :  { %26 = vst.msk [vmem:[#allocation0] sm:$0x1] %vm25_vm3, %v24_v6  }
  0x8d   :  { %v29_v8 = vld [vmem:[#allocation0] sm:$0x1] }
  0x8e   :  { %32 = vst [vmem:[%s56_s1] sm:$0x1] %v29_v8 }

// kernel: _lambda_.6
= control target key start
LH: loop header
LB: loop body
LE: loop exit
PB: predicated region body
PF: predicated region fallthrough
CT: control target
= control target key end

     0   :  { %11 = vsyncpa [#allocation3], 0  ;;  %s1633_s0 = inlined_call_operand.vmem [shape: bf16[96,64], index: 0, kind: input, shape index: {}, may-alias: {0,1}]   ;;  %s1634_s1 = inlined_call_operand.vmem [shape: bf16[96,64], index: 1, kind: input, shape index: {}, may-alias: {0,1}]   ;;  %s1635_s2 = inlined_call_operand.hbm [shape: f32[80,1], index: 2, kind: input, shape index: {}]   ;;  %s1636_s3 = inlined_call_operand.hbm [shape: bf16[9,64,128], index: 3, kind: input, shape index: {}]   ;;  %s1637_s4 = inlined_call_operand.vmem [shape: bf16[80,128], index: 4, kind: output, shape index: {0}]   ;;  %s1638_s5 = inlined_call_operand.vmem [shape: f32[40,128], index: 5, kind: output, shape index: {1}]  }
   0x1   :  { %13 = vsyncpa [#allocation3 + $0x1], 0 }
   0x2   :  { %14 = vsyncpa [#allocation5], 0  ;;  %s1467_s18 = smov 0   ;;  %s1469_s19 = smov 0  }
   0x3   :  { %s1471_s20 = smov 0   ;;  %s1473_s21 = smov 0  }
   0x4 LB: > { %s1486_s22 = sadd.s32 4294967295, %s1429_s21   ;;  %p94_p0 = scmp.ne.s32.totalorder %s1421_s19, %s1417_s18  ;;  %s1429_s21 = sphi %s1473_s21, %s1645_s21   ;;  %s1425_s20 = sphi %s1471_s20, %s1644_s20   ;;  %s1421_s19 = sphi %s1469_s19, %s1643_s19   ;;  %s1417_s18 = sphi %s1467_s18, %s1642_s18  }
   0x5   : > { %p95_p1 = scmp.eq.s32.totalorder %s1486_s22, 0  ;;  %p1050_p2 = scmp.ge.s32.totalorder %s1429_s21, 1 }
   0x6   : > { %p178_p3 = scmp.lt.s32.totalorder %s1429_s21, 6  ;;  %s189_s26 = sshll.u32 %s1636_s3, 4  ;;  %s190_s26 = int_to_ptr.hbm [resolvable:$true] %s189_s26 }
   0x7   : > { %p1494_p4 = por %p95_p1, %p94_p0  ;;  %s1431_s28 = smov [#allocation4]  }
   0x8   : > { %p1501_p5 = pnand %p1050_p2, %p178_p3  ;;  %s191_s29 = sshll.u32 %s1431_s28, 4  ;;  %s192_s29 = int_to_ptr.vmem [resolvable:$true] %s191_s29 }
   0x9   : > { %s1510_s30 = sadd.s32 1, %s1429_s21   ;;  %s1432_s6 = smov 64  }
   0xa   : > { %p1281_p6 = pneg %p1501_p5  ;;  %s1433_s7 = smov 4  }
   0xb   : > { %s78_s8 = ssub.s32 %s1429_s21, %s1510_s30  ;;  %s81_s9 = sadd.s32 1, %s1425_s20 }
   0xc   : > { %p1282_p7 = pnand %p1281_p6, %p95_p1  ;;  %p79_p8 = scmp.eq.s32.totalorder %s78_s8, 0 }
   0xd   : > { %p88_p9 = scmp.ne.s32.totalorder %s1425_s20, %s1421_s19  ;;  %p89_p10 = scmp.eq.s32.totalorder %s1429_s21, 0 }
   0xe   : > { %1284 = dma.hbm_to_vmem [thread:$0]  (!%p1282_p7), %s190_s26, 4608, %s192_s29, [#allocation5], %s1432_s6, %s1432_s6, %s1433_s7  }
   0xf   : > { %p1290_p11 = scmp.lt.s32.totalorder %s1429_s21, 5  ;;  %p90_p12 = por %p89_p10, %p88_p9 }
  0x10   : > { %s1520_s10 = scalar_select %p79_p8, %s1425_s20, %s81_s9  }
  0x11   : > { %s225_s11 = sand.u32 1, %s1425_s20   ;;  %s1229_s13 = sshll.u32 %s1429_s21, 4 }
  0x12   : > { %s1053_s12 = sshll.u32 %s225_s11, 4  ;;  %s234_s16 = scalar_lea.hbm %s1635_s2, %s1229_s13 }
  0x13   : > { %s229_s17 = scalar_lea.vmem [#allocation2], %s1053_s12  ;;  %s235_s24 = sshll.u32 %s234_s16, 4  ;;  %s236_s24 = int_to_ptr.hbm [resolvable:$true] %s235_s24 }
  0x14   : > { %s237_s18 = sshll.u32 %s229_s17, 4  ;;  %p1527_p13 = pnand %p1290_p11, %p90_p12  ;;  %s238_s18 = int_to_ptr.vmem [resolvable:$true] %s237_s18 }
  0x15   : > { %s226_s26 = scalar_lea.sflag [#allocation3], %s225_s11  ;;  %s1361_s28 = sshra.s32 %s236_s24, 4  ;;  %s1362_s28 = int_to_ptr.hbm [resolvable:$true] %s1361_s28 }
  0x16   : > { %s1363_s29 = scalar_lea.hbm %s1362_s28, 16  ;;  %p1365_p2 = pneg %p1527_p13 }
  0x17   : > { %p1364_p0 = scmp.ne.s32.totalorder %s1362_s28, %s1363_s29  ;;  %s1368_s7 = scalar_lea.hbm %s1635_s2, 80 }
  0x18   : > { %p1369_p7 = scmp.lt.s32.totalorder %s1362_s28, %s1635_s2  ;;  %p1370_p8 = scmp.lt.s32.totalorder %s1368_s7, %s1363_s29 }
  0x19   : > { %p1366_p3 = pnand %p1365_p2, %p1364_p0 }
  0x1a   : > { %p1371_p9 = por %p1370_p8, %p1369_p7 }
  0x1b   : > { %p1367_p6 = pneg %p1366_p3 }
  0x1d   : > { %p1372_p10 = pnand %p1371_p9, %p1367_p6 }
  0x1f   : > { %1375 = shalt.err (!%p1372_p10)
}
  0x20   : > { %s1434_s11 = smov 128   ;;  %s1435_s12 = smov 8  }
  0x21   : > { %1288 = dma.hbm_to_vmem [thread:$0]  (!%p1527_p13), %s236_s24, 256, %s238_s18, %s226_s26, %s1434_s11, %s1434_s11, %s1435_s12  }
  0x22   : > { %249 = sbr.rel (%p1501_p5) target bundleno = 249 (0xf9), region = 36  ;;  %s251_s13 = sand.u32 (!%p1501_p5), 1, %s1421_s19  }
  0x23   : > { %s1544_s14 = sshll.u32 (!%p1501_p5), %s251_s13, 4  ;;  %s252_s15 = scalar_lea.sflag (!%p1501_p5), [#allocation3], %s251_s13 }
  0x24   : > { %s255_s16 = scalar_lea.vmem (!%p1501_p5), [#allocation2], %s1544_s14 }
  0x27   : > { %1408 = dma.done.wait (%p1494_p4), %s252_s15, 256  }
  0x28   : > { %1410 = vsyncadd (%p1494_p4), %s252_s15, 4294967040 }
  0x29   : > { %1412 = dma.done.wait (%p95_p1), [#allocation5], 4608  }
  0x2a   : > { %1414 = vsyncadd (%p95_p1), [#allocation5], 4294962688  ;;  %s1556_s27 = sshll.u32 %s1486_s22, 1  ;;  %v1241_v0 = vld [vmem:[#allocation4 + $0x38] sm:$0xff]  ;;  %v1240_v4 = vld [vmem:[#allocation4 + $0x30] sm:$0xff]  ;;  %vm474_vm1 = vcmask 1046528  }
  0x2b   : > { %p304_p5 = scmp.lt.s32.totalorder %s1556_s27, 11  ;;  %s1231_s17 = sadd.s32 2, %s1556_s27  ;;  %v1237_v1 = vld [vmem:[#allocation4 + $0x18] sm:$0xff]  ;;  %413 = vmatpush.bf16.msra.mxu0 %v1241_v0  ;;  %v1236_v5 = vld [vmem:[#allocation4 + $0x10] sm:$0xff]  ;;  %v1239_v10 = vld [vmem:[#allocation4 + $0x28] sm:$0xff]  ;;  %vm530_vm2 = vcmask 1044480  }
  0x2c   : > { %p311_p11 = scmp.lt.s32.totalorder %s1231_s17, 11  ;;  %v1245_v2 = vld [vmem:[#allocation4 + $0x58] sm:$0xff]  ;;  %453 = vmatpush.bf16.msra.mxu1 %v1237_v1  ;;  %v1244_v6 = vld [vmem:[#allocation4 + $0x50] sm:$0xff]  ;;  %v1235_v11 = vld [vmem:[#allocation4 + $0x8] sm:$0xff]  ;;  %vm368_vm0 = vsmask.f32 7424 }
  0x2d   : > { %s305_s18 = scalar_select %p304_p5, %s1556_s27, 11  ;;  %v1249_v3 = vld [vmem:[#allocation4 + $0x78] sm:$0xff]  ;;  %509 = vmatpush.bf16.msra.mxu2 %v1245_v2  ;;  %v1248_v7 = vld [vmem:[#allocation4 + $0x70] sm:$0xff]  ;;  %v1243_v12 = vld [vmem:[#allocation4 + $0x48] sm:$0xff]  ;;  %vm405_vm3 = vcmask 523264   ;;  %v1436_v53 = vmov 0  }
  0x2e   : > { %s1647_s17 = smov (!%p311_p11, %s1231_s17), 11  ;;  %565 = vmatpush.bf16.msra.mxu3 %v1249_v3  ;;  %v1247_v13 = vld [vmem:[#allocation4 + $0x68] sm:$0xff]  ;;  %v1238_v19 = vld [vmem:[#allocation4 + $0x20] sm:$0xff]  ;;  %v1253_v31 = vld [vmem:[#allocation4 + $0x98] sm:$0xff]  ;;  %1330 = vset.pattern.permute.xlu0 %v1436_v53  ;;  %vm586_vm4 = vsmask.f32 4352 }
  0x2f   : > { %s1060_s24 = sshll.u32 %s305_s18, 2  ;;  %s1062_s23 = sshll.u32 %s1647_s17, 2  ;;  %414 = vmatpush.bf16.msra.mxu0 %v1240_v4  ;;  %v1234_v20 = vld [vmem:[#allocation4] sm:$0xff]  ;;  %v1261_v32 = vld [vmem:[#allocation4 + $0xd8] sm:$0xff]  ;;  %v1252_v41 = vld [vmem:[#allocation4 + $0x90] sm:$0xff]  ;;  %vm704_vm5 = vcmask 1045504  }
  0x30   : > { %s307_s28 = scalar_lea.vmem %s1633_s0, %s1060_s24  ;;  %s314_s6 = scalar_lea.vmem %s1634_s1, %s1062_s23  ;;  %454 = vmatpush.bf16.msra.mxu1 %v1236_v5  ;;  %v1242_v25 = vld [vmem:[#allocation4 + $0x40] sm:$0xff]  ;;  %v1265_v39 = vld [vmem:[#allocation4 + $0xf8] sm:$0xff]  ;;  %v1260_v42 = vld [vmem:[#allocation4 + $0xd0] sm:$0xff]  ;;  %vm760_vm6 = vsmask.f32 5376 }
  0x31   : > { %v1567_v8 = vld [vmem:[%s307_s28] sm:$0xff]  ;;  %510 = vmatpush.bf16.msra.mxu2 %v1244_v6  ;;  %v1257_v40 = vld [vmem:[#allocation4 + $0xb8] sm:$0xff]  ;;  %v1264_v43 = vld [vmem:[#allocation4 + $0xf0] sm:$0xff]  ;;  %p319_p1 = scmp.lt.s32.totalorder %s1556_s27, 9  ;;  %p324_p4 = scmp.lt.s32.totalorder %s1486_s22, 4 }
  0x32   : > { %v1233_v9 = vld [vmem:[%s314_s6] sm:$0xff]  ;;  %566 = vmatpush.bf16.msra.mxu3 %v1248_v7  ;;  %v370_v15 = vshrl.u32 %v1567_v8, 16  ;;  %v372_v16 = vshll.u32 %v1567_v8, 16  ;;  %v346_v21 = vunpack.c.h.bf16 %v1567_v8  ;;  %v475_v22 = vrot.slane %v1567_v8, 1  ;;  %v1256_v45 = vld [vmem:[#allocation4 + $0xb0] sm:$0xff]  ;;  %v1251_v51 = vld [vmem:[#allocation4 + $0x88] sm:$0xff] }
  0x33   : > { %v347_v14 = vunpack.c.l.bf16 %v1233_v9  ;;  %415 = vmatpush.bf16.msra.mxu0 %v1239_v10  ;;  %v531_v23 = vrot.slane %v1567_v8, 3  ;;  %v348_v24 = vunpack.c.h.bf16 %v1233_v9  ;;  %v1246_v26 = vld [vmem:[#allocation4 + $0x60] sm:$0xff]  ;;  %v1259_v52 = vld [vmem:[#allocation4 + $0xc8] sm:$0xff]  ;;  %v1269_v2 = vld [vmem:[#allocation4 + $0x118] sm:$0xff]  ;;  %s1649_s27 = smov (!%p319_p1, %s1556_s27), 9  ;;  %s1651_s22 = smov (!%p324_p4, %s1486_s22), 4 }
  0x34   : > { %v374_v18 = vrot.slane %v372_v16, 1  ;;  %455 = vmatpush.bf16.msra.mxu1 %v1235_v11  ;;  %v879_v50 = vld [vmem:[%s255_s16] sm:$0xff]  ;;  %v587_v54 = vrot.slane %v370_v15, 3  ;;  %v588_v55 = vrot.slane %v372_v16, 4  ;;  %v1263_v58 = vld [vmem:[#allocation4 + $0xe8] sm:$0xff]  ;;  %s1064_s7 = sshll.u32 %s1649_s27, 2 }
  0x35   : > { %v1571_v17 = vpack.c.bf16 %v347_v14, %v347_v14  ;;  %511 = vmatpush.bf16.msra.mxu2 %v1243_v12  ;;  %v1579_v34 = vpack.c.bf16 %v347_v14, %v346_v21  ;;  %v1581_v35 = vpack.c.bf16 %v348_v24, %v348_v24  ;;  %883 = vperm.xlu0 %1330, %v879_v50   ;;  %v1255_v59 = vld [vmem:[#allocation4 + $0xa8] sm:$0xff]  ;;  %v1250_v0 = vld [vmem:[#allocation4 + $0x80] sm:$0xff]  ;;  %s322_s11 = scalar_lea.vmem %s1637_s4, %s1064_s7  ;;  %s1065_s12 = sshll.u32 %s1651_s22, 3 }
  0x36   : > { %567 = vmatpush.bf16.msra.mxu3 %v1247_v13  ;;  %v375_v27 = vor.u32 %v374_v18, %v370_v15  ;;  %v1258_v1 = vld [vmem:[#allocation4 + $0xc0] sm:$0xff]  ;;  %v589_v3 = vor.u32 %v588_v55, %v587_v54  ;;  %v880_v11 = vld [vmem:[%s255_s16 + $0x8] sm:$0xff]  ;;  %v1268_v15 = vld [vmem:[#allocation4 + $0x110] sm:$0xff]  ;;  %s327_s15 = scalar_lea.vmem %s1638_s5, %s1065_s12 }
  0x37   : > { %v377_v28 = vshll.u32 %v1571_v17, 16  ;;  %v476_v29 = vrot.slane %v1571_v17, 1  ;;  %v532_v30 = vrot.slane %v1571_v17, 3  ;;  %416 = vmatpush.bf16.msra.mxu0 %v1238_v19  ;;  %v590_v44 = vshrl.u32 %v1571_v17, 16  ;;  %v1262_v5 = vld [vmem:[#allocation4 + $0xe0] sm:$0xff]  ;;  %v1267_v16 = vld [vmem:[#allocation4 + $0x108] sm:$0xff] }
  0x38   : > { %456 = vmatpush.bf16.msra.mxu1 %v1234_v20  ;;  %v761_v46 = vshrl.u32 %v1579_v34, 16  ;;  %v764_v47 = vshll.u32 %v1579_v34, 16  ;;  %v769_v48 = vshrl.u32 %v1581_v35, 16  ;;  %v772_v49 = vshll.u32 %v1581_v35, 16  ;;  %v1254_v6 = vld [vmem:[#allocation4 + $0xa0] sm:$0xff] }
  0x39   : > { %v379_v33 = vrot.slane %v377_v28, 1  ;;  %512 = vmatpush.bf16.msra.mxu2 %v1242_v25  ;;  %v477_v37 = vsel %vm474_vm1, %v475_v22, %v476_v29  ;;  %v533_v38 = vsel %vm530_vm2, %v531_v23, %v532_v30  ;;  %v592_v56 = vrot.slane %v590_v44, 3  ;;  %v1266_v17 = vld [vmem:[#allocation4 + $0x100] sm:$0xff] }
  0x3a   : > { %568 = vmatpush.bf16.msra.mxu3 %v1246_v26  ;;  %v593_v57 = vrot.slane %v377_v28, 4  ;;  %v763_v60 = vrot.slane %v761_v46, 2  ;;  %v766_v61 = vrot.slane %v764_v47, 3  ;;  %v771_v62 = vrot.slane %v769_v48, 2 }
  0x3b   : > { %v380_v36 = vsel %vm368_vm0, %v375_v27, %v379_v33  ;;  %627 = vmatpush.bf16.msrb.mxu0 %v1253_v31  ;;  %1107 = vmatmul.msk.bf16.vlgmr.msra.gmra.mxu1 %vm405_vm3, %v1567_v8  ;;  %v774_v63 = vrot.slane %v772_v49, 3  ;;  %v705_v7 = vrot.slane %v1579_v34, 2  ;;  %v706_v8 = vrot.slane %v1581_v35, 2 }
  0x3c   : > { %1090 = vmatmul.msk.bf16.vlgmr.msra.gmra.mxu0 %vm405_vm3, %v380_v36  ;;  %1124 = vmatmul.msk.bf16.vlgmr.msra.gmra.mxu2 %vm405_vm3, %v477_v37  ;;  %v594_v4 = vor.u32 %v593_v57, %v592_v56  ;;  %v767_v9 = vor.u32 %v766_v61, %v763_v60  ;;  %v829_v18 = vrot.slane %v1579_v34, 3  ;;  %v830_v19 = vrot.slane %v1581_v35, 3 }
  0x3d   : > { %739 = vmatpush.bf16.msrb.mxu2 %v1261_v32  ;;  %1141 = vmatmul.msk.bf16.vlgmr.msra.gmra.mxu3 %vm405_vm3, %v533_v38  ;;  %v775_v10 = vor.u32 %v774_v63, %v771_v62  ;;  %v707_v13 = vsel %vm704_vm5, %v705_v7, %v706_v8 }
  0x3e   : > { %808 = vmatpush.bf16.msrb.mxu3 %v1265_v39  ;;  %680 = vmatpush.bf16.msrb.mxu1 %v1257_v40  ;;  %v595_v12 = vsel %vm586_vm4, %v589_v3, %v594_v4  ;;  %v831_v20 = vsel %vm530_vm2, %v829_v18, %v830_v19  ;;  %v909_v3 = vlaneseq }
  0x3f   : > { %628 = vmatpush.bf16.msrb.mxu0 %v1252_v41  ;;  %888 = vperm.xlu0 %1330, %v880_v11   ;;  %v776_v14 = vsel %vm760_vm6, %v767_v9, %v775_v10 }
  0x40   : > { %v910_v8 = vshrl.u32 %v909_v3, 7 }
  0x41   : > { %740 = vmatpush.bf16.msrb.mxu2 %v1260_v42 }
  0x42   : > { %809 = vmatpush.bf16.msrb.mxu3 %v1264_v43  ;;  %681 = vmatpush.bf16.msrb.mxu1 %v1256_v45  ;;  %vm912_vm7 = vcmp.eq.s32.totalorder %v910_v8, 1  ;;  %vm911_vm8 = vcmp.eq.s32.totalorder %v910_v8, 0 }
  0x43   : > { %629 = vmatpush.bf16.msrb.mxu0 %v1251_v51 }
  0x45   : > { %741 = vmatpush.bf16.msrb.mxu2 %v1259_v52 }
  0x46   : > { %810 = vmatpush.bf16.msrb.mxu3 %v1263_v58  ;;  %682 = vmatpush.bf16.msrb.mxu1 %v1255_v59 }
  0x47   : > { %630 = vmatpush.bf16.msrb.mxu0 %v1250_v0 }
  0x49   : > { %742 = vmatpush.bf16.msrb.mxu2 %v1258_v1 }
  0x4a   : > { %811 = vmatpush.bf16.msrb.mxu3 %v1262_v5  ;;  %683 = vmatpush.bf16.msrb.mxu1 %v1254_v6 }
  0x4b   : > { %863 = vmatpush.bf16.msra.mxu0 %v1269_v2 }
  0x4c   : > { %1158 = vmatmul.msk.bf16.vlgmr.msrb.gmra.mxu0 %vm405_vm3, %v595_v12  ;;  %1192 = vmatmul.msk.bf16.vlgmr.msrb.gmra.mxu2 %vm405_vm3, %v707_v13 }
  0x4d   : > { %1209 = vmatmul.msk.bf16.vlgmr.msrb.gmra.mxu3 %vm405_vm3, %v776_v14  ;;  %1175 = vmatmul.msk.bf16.vlgmr.msrb.gmra.mxu1 %vm405_vm3, %v1579_v34 }
  0x4f   : > { %864 = vmatpush.bf16.msra.mxu0 %v1268_v15 }
  0x53   : > { %865 = vmatpush.bf16.msra.mxu0 %v1267_v16 }
  0x57   : > { %866 = vmatpush.bf16.msra.mxu0 %v1266_v17 }
  0x5c   : > { %1226 = vmatmul.msk.bf16.vlgmr.msra.gmra.mxu0 %vm405_vm3, %v831_v20 }
  0xa7   : > { %v884_v45 = vpop.permute.xlu0 %883 }
  0xb1   : > { %v889_v57 = vpop.permute.xlu0 %888 }
  0xb8   : > { %v458_v22 = vpop.f32.mrf.mxu1 }
  0xb9   : > { %v418_v21 = vpop.f32.mrf.mxu0 }
  0xba   : > { %v459_v29 = vadd.f32 %v458_v22, %v418_v21 }
  0xbf   : > { %v514_v23 = vpop.f32.mrf.mxu2 }
  0xc0   : > { %v570_v24 = vpop.f32.mrf.mxu3  ;;  %v460_v26 = vpop.f32.mrf.mxu1  ;;  %v519_v31 = vadd.f32 %v514_v23, %v459_v29 }
  0xc1   : > { %v420_v25 = vpop.f32.mrf.mxu0 }
  0xc2   : > { %v461_v33 = vadd.f32 %v460_v26, %v420_v25  ;;  %v575_v34 = vadd.f32 %v570_v24, %v519_v31 }
  0xc7   : > { %v516_v27 = vpop.f32.mrf.mxu2 }
  0xc8   : > { %v572_v30 = vpop.f32.mrf.mxu3  ;;  %v520_v35 = vadd.f32 %v516_v27, %v461_v33 }
  0xc9   : > { %v632_v28 = vpop.f32.mrf.mxu0 }
  0xca   : > { %v685_v32 = vpop.f32.mrf.mxu1  ;;  %v637_v38 = vadd.f32 %v632_v28, %v575_v34  ;;  %v576_v39 = vadd.f32 %v572_v30, %v520_v35 }
  0xcc   : > { %v690_v41 = vadd.f32 %v685_v32, %v637_v38 }
  0xcf   : > { %v744_v36 = vpop.f32.mrf.mxu2 }
  0xd0   : > { %v813_v40 = vpop.f32.mrf.mxu3  ;;  %v749_v44 = vadd.f32 %v744_v36, %v690_v41 }
  0xd1   : > { %v634_v37 = vpop.f32.mrf.mxu0 }
  0xd2   : > { %v638_v42 = vadd.f32 %v634_v37, %v576_v39  ;;  %v687_v43 = vpop.f32.mrf.mxu1  ;;  %v818_v49 = vadd.f32 %v813_v40, %v749_v44 }
  0xd4   : > { %v691_v48 = vadd.f32 %v687_v43, %v638_v42 }
  0xd7   : > { %v746_v46 = vpop.f32.mrf.mxu2 }
  0xd8   : > { %v750_v50 = vadd.f32 %v746_v46, %v691_v48  ;;  %v815_v52 = vpop.f32.mrf.mxu3 }
  0xd9   : > { %v868_v47 = vpop.f32.mrf.mxu0 }
  0xda   : > { %v873_v51 = vadd.f32 %v868_v47, %v818_v49  ;;  %v819_v53 = vadd.f32 %v815_v52, %v750_v50 }
  0xdc   : > { %v891_v55 = vmul.f32 %v884_v45, %v873_v51 }
  0xde   : > { %v900_v60 = vmul.f32 %v891_v55, %v891_v55 }
  0xe1   : > { %v870_v54 = vpop.f32.mrf.mxu0 }
  0xe2   : > { %v874_v56 = vadd.f32 %v870_v54, %v819_v53 }
  0xe4   : > { %v1273_v58 = vpack.c.bf16 %v874_v56, %v873_v51  ;;  %v892_v59 = vmul.f32 %v889_v57, %v874_v56 }
  0xe6   : > { %1274 = vst [vmem:[%s322_s11] sm:$0xff] %v1273_v58   ;;  %v893_v61 = vadd.f32 %v892_v59, %v891_v55  ;;  %v901_v62 = vmul.f32 %v892_v59, %v892_v59 }
  0xe8   : > { %v894_v63 = vrot.slane %v893_v61, 4  ;;  %v902_v0 = vadd.f32 %v901_v62, %v900_v60 }
  0xea   : > { %v895_v1 = vadd.f32 %v894_v63, %v893_v61  ;;  %v903_v2 = vrot.slane %v902_v0, 4 }
  0xec   : > { %v896_v4 = vrot.slane %v895_v1, 2  ;;  %v904_v5 = vadd.f32 %v903_v2, %v902_v0 }
  0xee   : > { %v897_v6 = vadd.f32 %v896_v4, %v895_v1  ;;  %v905_v7 = vrot.slane %v904_v5, 2 }
  0xf0   : > { %v906_v9 = vadd.f32 %v905_v7, %v904_v5  ;;  %v898_v10 = vrot.slane %v897_v6, 1 }
  0xf2   : > { %v907_v11 = vrot.slane %v906_v9, 1  ;;  %v899_v13 = vadd.f32 %v898_v10, %v897_v6 }
  0xf4   : > { %v908_v12 = vadd.f32 %v907_v11, %v906_v9 }
  0xf6   : > { %v913_v14 = vsel %vm912_vm7, %v908_v12, 0.0 }
  0xf7   : > { %v914_v15 = vsel %vm911_vm8, %v899_v13, %v913_v14 }
  0xf8   : > { %915 = vst [vmem:[%s327_s15] sm:$0xff] %v914_v15 }
  0xf9 PF: > { %p17_p12 = scmp.ge.s32.totalorder %s1510_s30, 7   ;;  %s1642_s18 = smov %s1421_s19 }
  0xfa   : > { %s1643_s19 = smov %s1425_s20  ;;  %s1644_s20 = smov %s1520_s10 }
  0xfb   : > { %s1645_s21 = smov %s1510_s30  ;;  %19 = sbr.rel (!%p17_p12) target bundleno = 4 (0x4), region = 106 }
 0x100   :  { %952 = vsyncpa [#allocation3], 1 }
 0x101   :  { %954 = vsyncpa [#allocation3 + $0x1], 1 }
 0x102   :  { %955 = vsyncpa [#allocation5], 1 }

// kernel: _lambda_.7
= control target key start
LH: loop header
LB: loop body
LE: loop exit
PB: predicated region body
PF: predicated region fallthrough
CT: control target
= control target key end

     0   :  { %11 = vsyncpa [#allocation3], 0  ;;  %s1682_s0 = inlined_call_operand.vmem [shape: bf16[256,32], index: 0, kind: input, shape index: {}, may-alias: {0,1}]   ;;  %s1683_s1 = inlined_call_operand.vmem [shape: bf16[256,32], index: 1, kind: input, shape index: {}, may-alias: {0,1}]   ;;  %s1684_s2 = inlined_call_operand.hbm [shape: f32[224,1], index: 2, kind: input, shape index: {}]   ;;  %s1685_s3 = inlined_call_operand.hbm [shape: bf16[9,32,64], index: 3, kind: input, shape index: {}]   ;;  %s1686_s4 = inlined_call_operand.vmem [shape: bf16[224,64], index: 4, kind: output, shape index: {0}]   ;;  %s1687_s5 = inlined_call_operand.vmem [shape: f32[56,64], index: 5, kind: output, shape index: {1}]  }
   0x1   :  { %13 = vsyncpa [#allocation3 + $0x1], 0 }
   0x2   :  { %14 = vsyncpa [#allocation5], 0  ;;  %s1446_s18 = smov 0   ;;  %s1448_s19 = smov 0  }
   0x3   :  { %s1450_s20 = smov 0   ;;  %s1452_s21 = smov 0  }
   0x4 LB: > { %s1465_s22 = sadd.s32 4294967295, %s1408_s21   ;;  %p94_p0 = scmp.ne.s32.totalorder %s1400_s19, %s1396_s18  ;;  %s1408_s21 = sphi %s1452_s21, %s1694_s21   ;;  %s1404_s20 = sphi %s1450_s20, %s1693_s20   ;;  %s1400_s19 = sphi %s1448_s19, %s1692_s19   ;;  %s1396_s18 = sphi %s1446_s18, %s1691_s18  }
   0x5   : > { %p95_p1 = scmp.eq.s32.totalorder %s1465_s22, 0  ;;  %p1095_p2 = scmp.ge.s32.totalorder %s1408_s21, 1 }
   0x6   : > { %p178_p3 = scmp.lt.s32.totalorder %s1408_s21, 8  ;;  %s189_s26 = sshll.u32 %s1685_s3, 4  ;;  %s190_s26 = int_to_ptr.hbm [resolvable:$true] %s189_s26 }
   0x7   : > { %p1473_p4 = por %p95_p1, %p94_p0  ;;  %s1410_s28 = smov [#allocation4]  }
   0x8   : > { %p1480_p5 = pnand %p1095_p2, %p178_p3  ;;  %s191_s29 = sshll.u32 %s1410_s28, 4  ;;  %s192_s29 = int_to_ptr.vmem [resolvable:$true] %s191_s29 }
   0x9   : > { %s1489_s30 = sadd.s32 1, %s1408_s21   ;;  %s1411_s6 = smov 64  }
   0xa   : > { %p1252_p6 = pneg %p1480_p5  ;;  %s1412_s7 = smov 4  }
   0xb   : > { %s78_s8 = ssub.s32 %s1408_s21, %s1489_s30  ;;  %s81_s9 = sadd.s32 1, %s1404_s20 }
   0xc   : > { %p1253_p7 = pnand %p1252_p6, %p95_p1  ;;  %p79_p8 = scmp.eq.s32.totalorder %s78_s8, 0 }
   0xd   : > { %p88_p9 = scmp.ne.s32.totalorder %s1404_s20, %s1400_s19  ;;  %p89_p10 = scmp.eq.s32.totalorder %s1408_s21, 0 }
   0xe   : > { %1255 = dma.hbm_to_vmem [thread:$0]  (!%p1253_p7), %s190_s26, 2304, %s192_s29, [#allocation5], %s1411_s6, %s1411_s6, %s1412_s7  }
   0xf   : > { %p1261_p11 = scmp.lt.s32.totalorder %s1408_s21, 7  ;;  %p90_p12 = por %p89_p10, %p88_p9 }
  0x10   : > { %s1499_s10 = scalar_select %p79_p8, %s1404_s20, %s81_s9  }
  0x11   : > { %s225_s11 = sand.u32 1, %s1404_s20   ;;  %s1219_s13 = sshll.u32 %s1408_s21, 5 }
  0x12   : > { %s1098_s12 = sshll.u32 %s225_s11, 5  ;;  %s234_s16 = scalar_lea.hbm %s1684_s2, %s1219_s13 }
  0x13   : > { %s229_s17 = scalar_lea.vmem [#allocation2], %s1098_s12  ;;  %s235_s24 = sshll.u32 %s234_s16, 4  ;;  %s236_s24 = int_to_ptr.hbm [resolvable:$true] %s235_s24 }
  0x14   : > { %s237_s18 = sshll.u32 %s229_s17, 4  ;;  %p1506_p13 = pnand %p1261_p11, %p90_p12  ;;  %s238_s18 = int_to_ptr.vmem [resolvable:$true] %s237_s18 }
  0x15   : > { %s226_s26 = scalar_lea.sflag [#allocation3], %s225_s11  ;;  %s1338_s28 = sshra.s32 %s236_s24, 4  ;;  %s1339_s28 = int_to_ptr.hbm [resolvable:$true] %s1338_s28 }
  0x16   : > { %s1340_s29 = scalar_lea.hbm %s1339_s28, 32  ;;  %p1342_p2 = pneg %p1506_p13 }
  0x17   : > { %p1341_p0 = scmp.ne.s32.totalorder %s1339_s28, %s1340_s29  ;;  %s1345_s7 = scalar_lea.hbm %s1684_s2, 224 }
  0x18   : > { %p1346_p7 = scmp.lt.s32.totalorder %s1339_s28, %s1684_s2  ;;  %p1347_p8 = scmp.lt.s32.totalorder %s1345_s7, %s1340_s29 }
  0x19   : > { %p1343_p3 = pnand %p1342_p2, %p1341_p0 }
  0x1a   : > { %p1348_p9 = por %p1347_p8, %p1346_p7 }
  0x1b   : > { %p1344_p6 = pneg %p1343_p3 }
  0x1d   : > { %p1349_p10 = pnand %p1348_p9, %p1344_p6 }
  0x1f   : > { %1352 = shalt.err (!%p1349_p10)
}
  0x20   : > { %s1413_s11 = smov 128   ;;  %s1414_s12 = smov 8  }
  0x21   : > { %1259 = dma.hbm_to_vmem [thread:$0]  (!%p1506_p13), %s236_s24, 512, %s238_s18, %s226_s26, %s1413_s11, %s1413_s11, %s1414_s12  }
  0x22   : > { %249 = sbr.rel (%p1480_p5) target bundleno = 289 (0x121), region = 36  ;;  %s251_s13 = sand.u32 (!%p1480_p5), 1, %s1400_s19  }
  0x23   : > { %s1102_s14 = sshll.u32 (!%p1480_p5), %s251_s13, 5  ;;  %s252_s15 = scalar_lea.sflag (!%p1480_p5), [#allocation3], %s251_s13 }
  0x24   : > { %s1523_s16 = scalar_lea.vmem (!%p1480_p5), [#allocation2], %s1102_s14 }
  0x27   : > { %1385 = dma.done.wait (%p1473_p4), %s252_s15, 512  }
  0x28   : > { %1387 = vsyncadd (%p1473_p4), %s252_s15, 4294966784 }
  0x29   : > { %1389 = dma.done.wait (%p95_p1), [#allocation5], 2304  }
  0x2a   : > { %1391 = vsyncadd (%p95_p1), [#allocation5], 4294964992  ;;  %s1534_s27 = sshll.u32 %s1465_s22, 2  ;;  %v1229_v0 = vld [vmem:[#allocation4 + $0x18] sm:$0xff]  ;;  %v1231_v1 = vld [vmem:[#allocation4 + $0x28] sm:$0xff]  ;;  %vm482_vm0 = vcmask 1046528  }
  0x2b   : > { %p304_p5 = scmp.lt.s32.totalorder %s1534_s27, 31  ;;  %s1221_s17 = sadd.s32 4, %s1534_s27  ;;  %v1233_v6 = vld [vmem:[#allocation4 + $0x38] sm:$0xff]  ;;  %426 = vmatpush.bf16.msra.mxu0 %v1229_v0  ;;  %1244 = vmatpush.bf16.msra.mxu1 %v1229_v0  ;;  %v1228_v7 = vld [vmem:[#allocation4 + $0x10] sm:$0xff]  ;;  %v1227_v13 = vld [vmem:[#allocation4 + $0x8] sm:$0xff]  ;;  %vm413_vm2 = vcmask 261120  }
  0x2c   : > { %p311_p11 = scmp.lt.s32.totalorder %s1221_s17, 31  ;;  %512 = vmatpush.bf16.msra.mxu2 %v1231_v1  ;;  %569 = vmatpush.bf16.msra.mxu3 %v1233_v6  ;;  %v1230_v14 = vld [vmem:[#allocation4 + $0x20] sm:$0xff]  ;;  %v1232_v17 = vld [vmem:[#allocation4 + $0x30] sm:$0xff]  ;;  %v1235_v20 = vld [vmem:[#allocation4 + $0x48] sm:$0xff]  ;;  %vm380_vm1 = vsmask.f32 7424 }
  0x2d   : > { %s305_s18 = scalar_select %p304_p5, %s1534_s27, 31  ;;  %v1239_v23 = vld [vmem:[#allocation4 + $0x68] sm:$0xff]  ;;  %v1241_v24 = vld [vmem:[#allocation4 + $0x78] sm:$0xff]  ;;  %v1226_v30 = vld [vmem:[#allocation4] sm:$0xff]  ;;  %vm591_vm3 = vsmask.f32 6400 }
  0x2e   : > { %s1696_s17 = smov (!%p311_p11, %s1221_s17), 31  ;;  %v1234_v34 = vld [vmem:[#allocation4 + $0x40] sm:$0xff]  ;;  %v1243_v37 = vld [vmem:[#allocation4 + $0x88] sm:$0xff]  ;;  %v1237_v40 = vld [vmem:[#allocation4 + $0x58] sm:$0xff]  ;;  %vm664_vm4 = vcmask 1045504   ;;  %vm839_vm6 = vcmask 1044480  }
  0x2f   : > { %s1105_s24 = sshll.u32 %s305_s18, 2  ;;  %s1107_s28 = sshll.u32 %s1696_s17, 2  ;;  %427 = vmatpush.bf16.msra.mxu0 %v1228_v7  ;;  %1245 = vmatpush.bf16.msra.mxu1 %v1228_v7  ;;  %v1238_v41 = vld [vmem:[#allocation4 + $0x60] sm:$0xff]  ;;  %v1240_v46 = vld [vmem:[#allocation4 + $0x70] sm:$0xff]  ;;  %vm771_vm5 = vsmask.f32 5376 }
  0x30   : > { %s307_s26 = scalar_lea.vmem %s1682_s0, %s1105_s24  ;;  %s1545_s6 = scalar_lea.vmem %s1683_s1, %s1107_s28  ;;  %513 = vmatpush.bf16.msra.mxu2 %v1230_v14  ;;  %570 = vmatpush.bf16.msra.mxu3 %v1232_v17  ;;  %v1242_v49 = vld [vmem:[#allocation4 + $0x80] sm:$0xff]  ;;  %v1236_v50 = vld [vmem:[#allocation4 + $0x50] sm:$0xff]  ;;  %vm890_vm7 = vcmask 519168   ;;  %vm923_vm8 = vcmask 523264  }
  0x31   : > { %v1547_v2 = vld [vmem:[%s307_s26] sm:$0xff]  ;;  %v1549_v4 = vld [vmem:[%s307_s26 + $0x8] sm:$0xff]  ;;  %p319_p1 = scmp.lt.s32.totalorder %s1534_s27, 27  ;;  %p324_p4 = scmp.lt.s32.totalorder %s1465_s22, 6 }
  0x32   : > { %v1392_v3 = vld [vmem:[%s307_s26 + $0x4] sm:$0xf]  ;;  %v1393_v5 = vld [vmem:[%s307_s26 + $0x4] sm:$0xf0]  ;;  %v382_v9 = vshrl.u32 %v1547_v2, 16  ;;  %v384_v10 = vshll.u32 %v1547_v2, 16  ;;  %v364_v12 = vunpack.c.h.bf16 %v1549_v4 }
  0x33   : > { %v1552_v8 = vld [vmem:[%s1545_s6] sm:$0xff]  ;;  %v389_v11 = vshll.u32 %v1549_v4, 16  ;;  %v393_v16 = vshrl.u32 %v1549_v4, 16  ;;  %v483_v18 = vrot.slane %v1547_v2, 1  ;;  %v484_v19 = vrot.slane %v1549_v4, 1  ;;  %461 = vmatpush.bf16.msrb.mxu1 %v1227_v13  ;;  %642 = vmatpush.bf16.msrb.mxu0 %v1235_v20  ;;  %s1698_s27 = smov (!%p319_p1, %s1534_s27), 27 }
  0x34   : > { %v365_v15 = vunpack.c.l.bf16 %v1552_v8  ;;  %v386_v21 = vrot.slane %v384_v10, 1  ;;  %v1569_v29 = vor.u32 %v1393_v5, %v1392_v3  ;;  %749 = vmatpush.bf16.msrb.mxu2 %v1239_v23  ;;  %817 = vmatpush.bf16.msrb.mxu3 %v1241_v24  ;;  %v366_v48 = vunpack.c.h.bf16 %v1552_v8  ;;  %v1225_v13 = vld [vmem:[%s1545_s6 + $0x8] sm:$0xf]  ;;  %v895_v24 = vld [vmem:[%s1523_s16] sm:$0xff]  ;;  %s1109_s7 = sshll.u32 %s1698_s27, 2  ;;  %s1700_s22 = smov (!%p324_p4, %s1465_s22), 6 }
  0x35   : > { %v391_v22 = vrot.slane %v389_v11, 1  ;;  %v485_v28 = vsel %vm482_vm0, %v483_v18, %v484_v19  ;;  %v776_v1 = vshrl.u32 %v1552_v8, 16  ;;  %v779_v3 = vshll.u32 %v1552_v8, 16  ;;  %s1645_s11 = scalar_lea.vmem %s1686_s4, %s1109_s7  ;;  %s1110_s12 = sshll.u32 %s1700_s22, 3 }
  0x36   : > { %v374_v25 = vpack.c.bf16 %v365_v15, %v365_v15  ;;  %v1564_v26 = vpack.c.bf16 %v365_v15, %v364_v12  ;;  %v387_v27 = vor.u32 %v386_v21, %v382_v9  ;;  %v540_v36 = vrot.slane %v1569_v29, 1  ;;  %1155 = vmatmul.msk.bf16.vlgmr.msra.gmra.mxu2 %vm413_vm2, %v485_v28  ;;  %s327_s15 = scalar_lea.vmem %s1687_s5, %s1110_s12 }
  0x37   : > { %v395_v31 = vor.u32 %v393_v16, %v391_v22  ;;  %462 = vmatpush.bf16.msrb.mxu1 %v1226_v30  ;;  %v593_v43 = vshrl.u32 %v1569_v29, 16  ;;  %v596_v44 = vshll.u32 %v1569_v29, 16  ;;  %643 = vmatpush.bf16.msrb.mxu0 %v1234_v34  ;;  %v1587_v55 = vpack.c.bf16 %v366_v48, %v366_v48  ;;  %v896_v34 = vld [vmem:[%s1523_s16 + $0x8] sm:$0xff] }
  0x38   : > { %v397_v32 = vshll.u32 %v374_v25, 16  ;;  %v541_v33 = vrot.slane %v1564_v26, 1  ;;  %v392_v35 = vsel %vm380_vm1, %v387_v27, %v391_v22  ;;  %v601_v39 = vshrl.u32 %v1564_v26, 16  ;;  %750 = vmatpush.bf16.msrb.mxu2 %v1238_v41  ;;  %818 = vmatpush.bf16.msrb.mxu3 %v1240_v46 }
  0x39   : > { %1135 = vmatmul.msk.bf16.vlgmr.msra.gmra.mxu0 %vm413_vm2, %v392_v35  ;;  %v604_v45 = vshll.u32 %v1564_v26, 16  ;;  %v595_v51 = vrot.slane %v593_v43, 1  ;;  %v598_v52 = vrot.slane %v596_v44, 2  ;;  %v486_v58 = vrot.slane %v374_v25, 1  ;;  %v897_v25 = vld [vmem:[%s1523_s16 + $0x10] sm:$0xff]  ;;  %v898_v35 = vld [vmem:[%s1523_s16 + $0x18] sm:$0xff] }
  0x3a   : > { %v399_v38 = vrot.slane %v397_v32, 1  ;;  %v542_v42 = vsel %vm482_vm0, %v540_v36, %v541_v33  ;;  %v603_v53 = vrot.slane %v601_v39, 1  ;;  %v543_v59 = vrot.slane %v1587_v55, 1 }
  0x3b   : > { %1165 = vmatmul.msk.bf16.vlgmr.msra.gmra.mxu3 %vm413_vm2, %v542_v42  ;;  %869 = vmatpush.bf16.msra.mxu0 %v1243_v37  ;;  %v606_v54 = vrot.slane %v604_v45, 2  ;;  %v599_v56 = vor.u32 %v598_v52, %v595_v51  ;;  %v487_v61 = vsel %vm482_vm0, %v484_v19, %v486_v58  ;;  %v610_v63 = vshrl.u32 %v1587_v55, 16 }
  0x3c   : > { %v400_v47 = vsel %vm380_vm1, %v395_v31, %v399_v38  ;;  %v544_v62 = vsel %vm482_vm0, %v541_v33, %v543_v59  ;;  %v613_v0 = vshll.u32 %v1587_v55, 16  ;;  %v772_v7 = vrot.slane %v393_v16, 2 }
  0x3d   : > { %1136 = vmatmul.msk.bf16.vlgmr.msra.gmra.mxu1 %vm413_vm2, %v400_v47  ;;  %v607_v57 = vor.u32 %v606_v54, %v603_v53  ;;  %v612_v5 = vrot.slane %v610_v63, 1  ;;  %v773_v9 = vrot.slane %v389_v11, 3  ;;  %v778_v10 = vrot.slane %v776_v1, 2 }
  0x3e   : > { %694 = vmatpush.bf16.msra.mxu1 %v1237_v40  ;;  %v615_v6 = vrot.slane %v613_v0, 2  ;;  %v781_v12 = vrot.slane %v779_v3, 3  ;;  %v720_v15 = vrot.slane %v1549_v4, 2  ;;  %v367_v19 = vunpack.c.l.bf16 %v1225_v13 }
  0x3f   : > { %870 = vmatpush.bf16.msra.mxu0 %v1242_v49  ;;  %v608_v60 = vsel %vm591_vm3, %v599_v56, %v607_v57  ;;  %v774_v17 = vor.u32 %v773_v9, %v772_v7  ;;  %v1415_v27 = vmov 0   ;;  %v840_v31 = vrot.slane %v1549_v4, 3 }
  0x40   : > { %v616_v14 = vor.u32 %v615_v6, %v612_v5  ;;  %v782_v18 = vor.u32 %v781_v12, %v778_v10  ;;  %v712_v21 = vpack.c.bf16 %v367_v19, %v367_v19  ;;  %1301 = vset.pattern.permute.xlu0 %v1415_v27  ;;  %1302 = vset.pattern.permute.xlu1 %v1415_v27  ;;  %v841_v32 = vrot.slane %v1552_v8, 3 }
  0x41   : > { %901 = vperm.xlu0 %1301, %v895_v24   ;;  %911 = vperm.xlu1 %1302, %v897_v25   ;;  %v665_v37 = vrot.slane %v1569_v29, 2  ;;  %v666_v38 = vrot.slane %v1564_v26, 2  ;;  %v668_v26 = vrot.slane %v1587_v55, 2 }
  0x42   : > { %695 = vmatpush.bf16.msra.mxu1 %v1236_v50  ;;  %v617_v16 = vsel %vm591_vm3, %v607_v57, %v616_v14  ;;  %v783_v11 = vsel %vm771_vm5, %v774_v17, %v782_v18  ;;  %v785_v22 = vshrl.u32 %v712_v21, 16  ;;  %v788_v23 = vshll.u32 %v712_v21, 16 }
  0x43   : > { %v723_v33 = vrot.slane %v712_v21, 2  ;;  %v842_v39 = vsel %vm839_vm6, %v840_v31, %v841_v32  ;;  %v669_v42 = vsel %vm664_vm4, %v666_v38, %v668_v26 }
  0x44   : > { %v787_v28 = vrot.slane %v785_v22, 2  ;;  %v790_v30 = vrot.slane %v788_v23, 3 }
  0x46   : > { %1156 = vmatmul.msk.bf16.gmra.mxu2 %vm413_vm2, %v487_v61  ;;  %v791_v36 = vor.u32 %v790_v30, %v787_v28 }
  0x48   : > { %v792_v41 = vsel %vm771_vm5, %v782_v18, %v791_v36 }
  0x49   : > { %1175 = vmatmul.msk.bf16.vlgmr.msrb.gmra.mxu0 %vm413_vm2, %v608_v60  ;;  %906 = vperm.xlu0 %1301, %v896_v34  }
  0x4a   : > { %916 = vperm.xlu1 %1302, %v898_v35  }
  0x4b   : > { %1166 = vmatmul.msk.bf16.gmra.mxu3 %vm413_vm2, %v544_v62 }
  0x4d   : > { %1145 = vmatmul.msk.bf16.vlgmr.msrb.gmra.mxu1 %vm413_vm2, %v1547_v2  ;;  %v721_v2 = vrot.slane %v1552_v8, 2  ;;  %v843_v8 = vrot.slane %v712_v21, 3 }
  0x4f   : > { %v722_v20 = vsel %vm664_vm4, %v720_v15, %v721_v2  ;;  %v724_v40 = vsel %vm664_vm4, %v721_v2, %v723_v33  ;;  %v844_v29 = vsel %vm839_vm6, %v841_v32, %v843_v8 }
  0x56   : > { %1195 = vmatmul.msk.bf16.vlgmr.msrb.gmra.mxu2 %vm413_vm2, %v722_v20 }
  0x59   : > { %1176 = vmatmul.msk.bf16.gmra.mxu0 %vm413_vm2, %v617_v16 }
  0x5b   : > { %1205 = vmatmul.msk.bf16.vlgmr.msrb.gmra.mxu3 %vm413_vm2, %v783_v11 }
  0x5d   : > { %1146 = vmatmul.msk.bf16.gmra.mxu1 %vm413_vm2, %v1549_v4  ;;  %v667_v4 = vsel %vm664_vm4, %v665_v37, %v666_v38 }
  0x66   : > { %1196 = vmatmul.msk.bf16.gmra.mxu2 %vm413_vm2, %v724_v40 }
  0x69   : > { %1215 = vmatmul.msk.bf16.vlgmr.msra.gmra.mxu0 %vm413_vm2, %v842_v39 }
  0x6b   : > { %1206 = vmatmul.msk.bf16.gmra.mxu3 %vm413_vm2, %v792_v41 }
  0x6d   : > { %1185 = vmatmul.msk.bf16.vlgmr.msra.gmra.mxu1 %vm413_vm2, %v667_v4 }
  0x79   : > { %1216 = vmatmul.msk.bf16.gmra.mxu0 %vm413_vm2, %v844_v29 }
  0x7d   : > { %1186 = vmatmul.msk.bf16.gmra.mxu1 %vm413_vm2, %v669_v42 }
  0xb3   : > { %v902_v25 = vpop.permute.xlu0 %901  ;;  %v912_v29 = vpop.permute.xlu1 %911 }
  0xb6   : > { %v429_v43 = vpop.f32.mrf.mxu0 }
  0xb9   : > { %v515_v45 = vpop.f32.mrf.mxu2 }
  0xba   : > { %v434_v44 = vpop.f32.mrf.mxu1 }
  0xbb   : > { %v907_v8 = vpop.permute.xlu0 %906 }
  0xbe   : > { %v431_v46 = vpop.f32.mrf.mxu0  ;;  %v572_v47 = vpop.f32.mrf.mxu3 }
  0xc1   : > { %v517_v50 = vpop.f32.mrf.mxu2 }
  0xc2   : > { %v436_v48 = vpop.f32.mrf.mxu1 }
  0xc6   : > { %v645_v49 = vpop.f32.mrf.mxu0  ;;  %v574_v52 = vpop.f32.mrf.mxu3 }
  0xc9   : > { %v520_v55 = vpop.f32.mrf.mxu2 }
  0xca   : > { %v464_v51 = vpop.f32.mrf.mxu1 }
  0xcb   : > { %v465_v60 = vadd.f32 %v464_v51, %v429_v43 }
  0xcd   : > { %v525_v63 = vadd.f32 %v515_v45, %v465_v60 }
  0xce   : > { %v647_v53 = vpop.f32.mrf.mxu0  ;;  %v577_v56 = vpop.f32.mrf.mxu3 }
  0xcf   : > { %v582_v3 = vadd.f32 %v572_v47, %v525_v63 }
  0xd1   : > { %v522_v59 = vpop.f32.mrf.mxu2  ;;  %v655_v9 = vadd.f32 %v645_v49, %v582_v3 }
  0xd2   : > { %v466_v54 = vpop.f32.mrf.mxu1 }
  0xd3   : > { %v467_v1 = vadd.f32 %v466_v54, %v431_v46 }
  0xd5   : > { %v526_v7 = vadd.f32 %v517_v50, %v467_v1 }
  0xd6   : > { %v650_v57 = vpop.f32.mrf.mxu0  ;;  %v579_v61 = vpop.f32.mrf.mxu3 }
  0xd7   : > { %v583_v2 = vadd.f32 %v574_v52, %v526_v7 }
  0xd9   : > { %v752_v5 = vpop.f32.mrf.mxu2  ;;  %v656_v20 = vadd.f32 %v647_v53, %v583_v2 }
  0xda   : > { %v469_v58 = vpop.f32.mrf.mxu1 }
  0xdb   : > { %v470_v14 = vadd.f32 %v469_v58, %v434_v44 }
  0xdd   : > { %v527_v19 = vadd.f32 %v520_v55, %v470_v14 }
  0xde   : > { %v652_v62 = vpop.f32.mrf.mxu0  ;;  %v820_v6 = vpop.f32.mrf.mxu3 }
  0xdf   : > { %v584_v30 = vadd.f32 %v577_v56, %v527_v19 }
  0xe1   : > { %v754_v18 = vpop.f32.mrf.mxu2  ;;  %v657_v34 = vadd.f32 %v650_v57, %v584_v30 }
  0xe2   : > { %v471_v0 = vpop.f32.mrf.mxu1 }
  0xe3   : > { %v472_v27 = vadd.f32 %v471_v0, %v436_v48  ;;  %v917_v0 = vpop.permute.xlu1 %916 }
  0xe5   : > { %v528_v32 = vadd.f32 %v522_v59, %v472_v27 }
  0xe6   : > { %v872_v10 = vpop.f32.mrf.mxu0  ;;  %v822_v11 = vpop.f32.mrf.mxu3 }
  0xe7   : > { %v585_v41 = vadd.f32 %v579_v61, %v528_v32 }
  0xe9   : > { %v757_v35 = vpop.f32.mrf.mxu2  ;;  %v658_v44 = vadd.f32 %v652_v62, %v585_v41 }
  0xea   : > { %v697_v12 = vpop.f32.mrf.mxu1 }
  0xeb   : > { %v707_v13 = vadd.f32 %v697_v12, %v655_v9 }
  0xed   : > { %v762_v15 = vadd.f32 %v752_v5, %v707_v13 }
  0xee   : > { %v874_v24 = vpop.f32.mrf.mxu0  ;;  %v825_v39 = vpop.f32.mrf.mxu3 }
  0xef   : > { %v830_v17 = vadd.f32 %v820_v6, %v762_v15 }
  0xf1   : > { %v882_v16 = vadd.f32 %v872_v10, %v830_v17  ;;  %v759_v50 = vpop.f32.mrf.mxu2 }
  0xf2   : > { %v699_v21 = vpop.f32.mrf.mxu1 }
  0xf3   : > { %v886_v22 = vpack.c.bf16 %v882_v16, %v882_v16  ;;  %v708_v23 = vadd.f32 %v699_v21, %v656_v20  ;;  %v919_v46 = vmul.f32 %v902_v25, %v882_v16  ;;  %v954_v16 = vlaneseq }
  0xf5   : > { %891 = vst.msk [vmem:[%s1645_s11] sm:$0xf] %vm890_vm7, %v886_v22  ;;  %v763_v28 = vadd.f32 %v754_v18, %v708_v23  ;;  %v937_v54 = vmul.f32 %v919_v46, %v919_v46  ;;  %v924_v59 = vsel %vm923_vm8, %v919_v46, 0.0  ;;  %v955_v23 = vshrl.u32 %v954_v16, 7 }
  0xf6   : > { %v877_v4 = vpop.f32.mrf.mxu0  ;;  %v827_v53 = vpop.f32.mrf.mxu3 }
  0xf7   : > { %v831_v31 = vadd.f32 %v822_v11, %v763_v28  ;;  %v941_v1 = vsel %vm923_vm8, %v937_v54, 0.0  ;;  %vm957_vm9 = vcmp.eq.s32.totalorder %v955_v23, 1  ;;  %vm956_vm10 = vcmp.eq.s32.totalorder %v955_v23, 0 }
  0xf9   : > { %v883_v33 = vadd.f32 %v874_v24, %v831_v31 }
  0xfa   : > { %v702_v36 = vpop.f32.mrf.mxu1 }
  0xfb   : > { %v887_v37 = vpack.c.bf16 %v883_v33, %v883_v33  ;;  %v709_v38 = vadd.f32 %v702_v36, %v657_v34  ;;  %v920_v42 = vmul.f32 %v907_v8, %v883_v33 }
  0xfd   : > { %892 = vst.msk [vmem:[%s1645_s11 + $0x4] sm:$0xf] %vm890_vm7, %v887_v37  ;;  %v764_v40 = vadd.f32 %v757_v35, %v709_v38  ;;  %v938_v51 = vmul.f32 %v920_v42, %v920_v42  ;;  %v925_v55 = vsel %vm923_vm8, %v920_v42, 0.0 }
  0xfe   : > { %v879_v58 = vpop.f32.mrf.mxu0  ;;  %v926_v63 = vadd.f32 %v925_v55, %v924_v59 }
  0xff   : > { %v832_v26 = vadd.f32 %v825_v39, %v764_v40  ;;  %v942_v60 = vsel %vm923_vm8, %v938_v51, 0.0 }
 0x100   : > { %v943_v7 = vadd.f32 %v942_v60, %v941_v1 }
 0x101   : > { %v884_v43 = vadd.f32 %v877_v4, %v832_v26 }
 0x102   : > { %v704_v45 = vpop.f32.mrf.mxu1 }
 0x103   : > { %v888_v47 = vpack.c.bf16 %v884_v43, %v884_v43  ;;  %v921_v48 = vmul.f32 %v912_v29, %v884_v43  ;;  %v710_v49 = vadd.f32 %v704_v45, %v658_v44 }
 0x105   : > { %893 = vst.msk [vmem:[%s1645_s11 + $0x8] sm:$0xf] %vm890_vm7, %v888_v47  ;;  %v765_v52 = vadd.f32 %v759_v50, %v710_v49  ;;  %v939_v56 = vmul.f32 %v921_v48, %v921_v48  ;;  %v927_v61 = vsel %vm923_vm8, %v921_v48, 0.0 }
 0x106   : > { %v928_v9 = vadd.f32 %v927_v61, %v926_v63 }
 0x107   : > { %v833_v57 = vadd.f32 %v827_v53, %v765_v52  ;;  %v944_v3 = vsel %vm923_vm8, %v939_v56, 0.0 }
 0x108   : > { %v945_v13 = vadd.f32 %v944_v3, %v943_v7 }
 0x109   : > { %v885_v62 = vadd.f32 %v879_v58, %v833_v57 }
 0x10b   : > { %v889_v5 = vpack.c.bf16 %v885_v62, %v885_v62  ;;  %v922_v6 = vmul.f32 %v917_v0, %v885_v62 }
 0x10d   : > { %894 = vst.msk [vmem:[%s1645_s11 + $0xc] sm:$0xf] %vm890_vm7, %v889_v5  ;;  %v929_v10 = vsel %vm923_vm8, %v922_v6, 0.0  ;;  %v940_v12 = vmul.f32 %v922_v6, %v922_v6 }
 0x10e   : > { %v930_v14 = vadd.f32 %v929_v10, %v928_v9 }
 0x10f   : > { %v946_v15 = vsel %vm923_vm8, %v940_v12, 0.0 }
 0x110   : > { %v931_v2 = vrot.slane %v930_v14, 4  ;;  %v947_v17 = vadd.f32 %v946_v15, %v945_v13 }
 0x112   : > { %v932_v18 = vadd.f32 %v931_v2, %v930_v14  ;;  %v948_v19 = vrot.slane %v947_v17, 4 }
 0x114   : > { %v933_v20 = vrot.slane %v932_v18, 2  ;;  %v949_v11 = vadd.f32 %v948_v19, %v947_v17 }
 0x116   : > { %v934_v21 = vadd.f32 %v933_v20, %v932_v18  ;;  %v950_v22 = vrot.slane %v949_v11, 2 }
 0x118   : > { %v951_v24 = vadd.f32 %v950_v22, %v949_v11  ;;  %v935_v25 = vrot.slane %v934_v21, 1 }
 0x11a   : > { %v952_v27 = vrot.slane %v951_v24, 1  ;;  %v936_v30 = vadd.f32 %v935_v25, %v934_v21 }
 0x11c   : > { %v953_v28 = vadd.f32 %v952_v27, %v951_v24 }
 0x11e   : > { %v958_v31 = vsel %vm957_vm9, %v953_v28, 0.0 }
 0x11f   : > { %v959_v32 = vsel %vm956_vm10, %v936_v30, %v958_v31 }
 0x120   : > { %960 = vst.msk [vmem:[%s327_s15] sm:$0xff] %vm923_vm8, %v959_v32 }
 0x121 PF: > { %p17_p12 = scmp.ge.s32.totalorder %s1489_s30, 9   ;;  %s1691_s18 = smov %s1400_s19 }
 0x122   : > { %s1692_s19 = smov %s1404_s20  ;;  %s1693_s20 = smov %s1499_s10 }
 0x123   : > { %s1694_s21 = smov %s1489_s30  ;;  %19 = sbr.rel (!%p17_p12) target bundleno = 4 (0x4), region = 106 }
 0x128   :  { %997 = vsyncpa [#allocation3], 1 }
 0x129   :  { %999 = vsyncpa [#allocation3 + $0x1], 1 }
 0x12a   :  { %1000 = vsyncpa [#allocation5], 1 }

// kernel: tile.73
= control target key start
LH: loop header
LB: loop body
LE: loop exit
PB: predicated region body
PF: predicated region fallthrough
CT: control target
= control target key end

     0   :  { %s22_s0 = inlined_call_operand.vmem [shape: f32[8], index: 0, kind: input, shape index: {}]   ;;  %s23_s1 = inlined_call_operand.vmem [shape: f32[4,8], index: 1, kind: output, shape index: {}]  }
   0x1   :  { %v4_v0 = vld [vmem:[%s22_s0] ss:$0 sm:$0xff] }
   0x2   :  { %5 = vst [vmem:[%s23_s1] sm:$0xf] %v4_v0 }

// kernel: mul.53
= control target key start
LH: loop header
LB: loop body
LE: loop exit
PB: predicated region body
PF: predicated region fallthrough
CT: control target
= control target key end

     0   :  { %s37_s8 = smov 8   ;;  %s38_s9 = smov 16   ;;  %vm7_vm0 = vcmask 64512   ;;  %vm13_vm1 = vcmask 261312   ;;  %vm19_vm2 = vcmask 195712   ;;  %vm25_vm3 = vcmask 130112   ;;  %s55_s0 = inlined_call_operand.vmem [shape: f32[4,8], index: 0, kind: input, shape index: {}]   ;;  %s56_s1 = inlined_call_operand.vmem [shape: f32[32], index: 1, kind: output, shape index: {}]  }
   0x1   :  { %v4_v0 = vld [vmem:[%s55_s0] sm:$0xf]  ;;  %s36_s0 = smov 24  }
   0x2   :  { %5 = vst [vmem:[#allocation1] sm:$0xf] %v4_v0 }
   0x9   :  { %v10_v1 = vld [vmem:[#allocation1 + $0x3] sm:$0x1]   ;;  %v22_v2 = vld [vmem:[#allocation1 + $0x1] sm:$0x1]   ;;  %v16_v3 = vld [vmem:[#allocation1 + $0x2] sm:$0x1]  }
   0xa   :  { %11 = vrot.lane.b32.xlu0 %v10_v1, %s36_s0  ;;  %23 = vrot.lane.b32.xlu1 %v22_v2, %s37_s8  ;;  %v6_v4 = vld [vmem:[#allocation1] sm:$0x1]  }
   0xb   :  { %8 = vst.msk [vmem:[#allocation0] sm:$0x1] %vm7_vm0, %v6_v4  }
  0x12   :  { %17 = vrot.lane.b32.xlu0 %v16_v3, %s38_s9 }
  0x7c   :  { %v12_v5 = vpop.permute.xlu0 %11   ;;  %v24_v6 = vpop.permute.xlu1 %23  }
  0x7d   :  { %14 = vst.msk [vmem:[#allocation0] sm:$0x1] %vm13_vm1, %v12_v5  }
  0x84   :  { %v18_v7 = vpop.permute.xlu0 %17  }
  0x85   :  { %20 = vst.msk [vmem:[#allocation0] sm:$0x1] %vm19_vm2, %v18_v7  }
  0x86   :  { %26 = vst.msk [vmem:[#allocation0] sm:$0x1] %vm25_vm3, %v24_v6  }
  0x8d   :  { %v29_v8 = vld [vmem:[#allocation0] sm:$0x1] }
  0x8e   :  { %32 = vst [vmem:[%s56_s1] sm:$0x1] %v29_v8 }

// kernel: _lambda_.8
= control target key start
LH: loop header
LB: loop body
LE: loop exit
PB: predicated region body
PF: predicated region fallthrough
CT: control target
= control target key end

     0   :  { %s1790_s18 = smov 0   ;;  %s2212_s0 = inlined_call_operand.vmem [shape: bf16[720,16], index: 0, kind: input, shape index: {}, may-alias: {0,1}]   ;;  %s2213_s1 = inlined_call_operand.vmem [shape: bf16[720,16], index: 1, kind: input, shape index: {}, may-alias: {0,1}]   ;;  %s2214_s2 = inlined_call_operand.vmem [shape: f32[672,1], index: 2, kind: input, shape index: {}]   ;;  %s2215_s3 = inlined_call_operand.vmem [shape: bf16[9,16,32], index: 3, kind: input, shape index: {}]   ;;  %s2216_s4 = inlined_call_operand.vmem [shape: bf16[672,32], index: 4, kind: output, shape index: {0}]   ;;  %s2217_s5 = inlined_call_operand.vmem [shape: f32[56,32], index: 5, kind: output, shape index: {1}]  }
   0x1 LB: > { %s1796_s19 = sadd.s32 4294967295, %s1757_s18   ;;  %p1560_p0 = scmp.ge.s32.totalorder %s1757_s18, 1  ;;  %s1757_s18 = sphi %s1790_s18, %s16_s18  }
   0x2   : > { %p229_p1 = scmp.lt.s32.totalorder %s1757_s18, 8 }
   0x4   : > { %p230_p2 = pnand %p1560_p0, %p229_p1 }
   0x5   : > { %s1804_s22 = smul.u32 (!%p230_p2), 12, %s1796_s19  ;;  %s291_s27 = sadd.s32 (!%p230_p2), 1, %s1796_s19 }
   0x6   : > { %233 = sbr.rel (%p230_p2) target bundleno = 399 (0x18f), region = 36  ;;  %p313_p6 = scmp.lt.s32.totalorder (!%p230_p2), %s1796_s19, 6 }
   0x7   : > { %p282_p3 = scmp.lt.s32.totalorder (!%p230_p2), %s1804_s22, 89  ;;  %s1563_s30 = smul.u32 (!%p230_p2), 12, %s291_s27 }
   0x8   : > { %p302_p5 = scmp.lt.s32.totalorder (!%p230_p2), %s1804_s22, 83 }
   0x9   : > { %p294_p4 = scmp.lt.s32.totalorder (!%p230_p2), %s1563_s30, 89 }
   0xb   : > { %v1728_v0 = vld [vmem:[%s2215_s3 + $0x8] sm:$0xff]  ;;  %v1729_v1 = vld [vmem:[%s2215_s3 + $0x10] sm:$0xff]  ;;  %v1727_v2 = vld [vmem:[%s2215_s3] sm:$0xff]  ;;  %s283_s6 = scalar_select %p282_p3, %s1804_s22, 89  ;;  %vm419_vm0 = vsmask.f32 7424 }
   0xc   : > { %v1730_v3 = vld [vmem:[%s2215_s3 + $0x18] sm:$0xff]  ;;  %1736 = vmatpush.bf16.msra.mxu1 %v1728_v0  ;;  %1737 = vmatpush.bf16.msra.mxu2 %v1728_v0  ;;  %v1731_v4 = vld [vmem:[%s2215_s3 + $0x20] sm:$0xff]  ;;  %s2219_s30 = smov (!%p294_p4, %s1563_s30), 89  ;;  %vm478_vm1 = vcmask 130048   ;;  %v1733_v34 = vld [vmem:[%s2215_s3 + $0x30] sm:$0xff]  ;;  %vm603_vm3 = vcmask 1046528  }
   0xd   : > { %1738 = vmatpush.bf16.msra.mxu3 %v1728_v0  ;;  %504 = vmatpush.bf16.msra.mxu0 %v1728_v0  ;;  %s1561_s7 = sshll.u32 %s283_s6, 2  ;;  %s1564_s13 = sshll.u32 %s2219_s30, 2  ;;  %v1732_v35 = vld [vmem:[%s2215_s3 + $0x28] sm:$0xff]  ;;  %v1734_v40 = vld [vmem:[%s2215_s3 + $0x38] sm:$0xff]  ;;  %v1735_v45 = vld [vmem:[%s2215_s3 + $0x40] sm:$0xff]  ;;  %vm1167_vm4 = vcmask 1044480  }
   0xe   : > { %s285_s10 = scalar_lea.vmem %s2212_s0, %s1561_s7  ;;  %s1851_s16 = scalar_lea.vmem %s2213_s1, %s1564_s13  ;;  %vm769_vm2 = vsmask.f32 6400  ;;  %vm1051_vm5 = vsmask.f32 5376  ;;  %vm885_vm6 = vcmask 1045504   ;;  %vm1268_vm7 = vcmask 257024  }
   0xf   : > { %v1824_v5 = vld [vmem:[%s285_s10 + $0x8] sm:$0xff]  ;;  %v1826_v6 = vld [vmem:[%s285_s10 + $0x10] sm:$0xff]  ;;  %v1828_v7 = vld [vmem:[%s285_s10 + $0x18] sm:$0xff]  ;;  %s2221_s22 = smov (!%p302_p5, %s1804_s22), 83  ;;  %vm1365_vm8 = vcmask 261120   ;;  %s2223_s19 = smov (!%p313_p6, %s1796_s19), 6 }
  0x10   : > { %648 = vmatpush.bf16.msrb.mxu2 %v1729_v1  ;;  %561 = vmatpush.bf16.msrb.mxu1 %v1727_v2  ;;  %v1830_v8 = vld [vmem:[%s285_s10 + $0x20] sm:$0xff]  ;;  %v1832_v9 = vld [vmem:[%s285_s10 + $0x28] sm:$0xff]  ;;  %v428_v10 = vshll.u32 %v1824_v5, 16  ;;  %v432_v11 = vshrl.u32 %v1824_v5, 16  ;;  %v1837_v12 = vshll.u32 %v1826_v6, 16  ;;  %v1840_v13 = vshll.u32 %v1828_v7, 16 }
  0x11   : > { %722 = vmatpush.bf16.msrb.mxu3 %v1730_v3  ;;  %838 = vmatpush.bf16.msrb.mxu0 %v1731_v4  ;;  %v1843_v14 = vshrl.u32 %v1828_v7, 16  ;;  %v1846_v15 = vshll.u32 %v1830_v8, 16  ;;  %v1854_v16 = vshll.u32 %v1832_v9, 16  ;;  %v1856_v17 = vld [vmem:[%s285_s10] sm:$0xff]  ;;  %v1865_v23 = vshrl.u32 %v1832_v9, 16  ;;  %s1565_s28 = sshll.u32 %s2221_s22, 3 }
  0x12   : > { %v430_v18 = vrot.slane %v428_v10, 1  ;;  %v438_v19 = vrot.slane %v1837_v12, 1  ;;  %v446_v20 = vrot.slane %v1840_v13, 1  ;;  %v1861_v21 = vld [vmem:[%s1851_s16] sm:$0xff]  ;;  %v421_v28 = vshrl.u32 %v1856_v17, 16  ;;  %s1998_s6 = scalar_lea.vmem %s2214_s2, %s1565_s28  ;;  %s1566_s7 = sshll.u32 %s2221_s22, 2 }
  0x13   : > { %v454_v22 = vrot.slane %v1846_v15, 1  ;;  %v402_v26 = vunpack.c.l.bf16 %v1861_v21  ;;  %v462_v27 = vrot.slane %v1854_v16, 1  ;;  %v423_v29 = vshll.u32 %v1856_v17, 16  ;;  %s2142_s10 = scalar_lea.vmem %s2216_s4, %s1566_s7  ;;  %s1567_s22 = sshll.u32 %s2223_s19, 3 }
  0x14   : > { %v434_v24 = vor.u32 %v432_v11, %v430_v18  ;;  %v450_v25 = vor.u32 %v1843_v14, %v446_v20  ;;  %v1892_v43 = vshrl.u32 %v1826_v6, 16  ;;  %v1895_v44 = vshrl.u32 %v1830_v8, 16  ;;  %s316_s13 = scalar_lea.vmem %s2217_s5, %s1567_s22 }
  0x15   : > { %v1874_v32 = vpack.c.bf16 %v402_v26, %v402_v26  ;;  %v425_v33 = vrot.slane %v423_v29, 1  ;;  %v466_v36 = vor.u32 %v1865_v23, %v462_v27  ;;  %v770_v48 = vrot.slane %v432_v11, 1 }
  0x16   : > { %v439_v30 = vsel %vm419_vm0, %v434_v24, %v438_v19  ;;  %v455_v31 = vsel %vm419_vm0, %v450_v25, %v454_v22  ;;  %v442_v46 = vor.u32 %v1892_v43, %v438_v19  ;;  %v458_v47 = vor.u32 %v1895_v44, %v454_v22 }
  0x17   : > { %1611 = vmatmul.msk.bf16.vlgmr.msra.gmra.mxu1 %vm478_vm1, %v439_v30  ;;  %1613 = vmatmul.msk.bf16.vlgmr.msra.gmra.mxu2 %vm478_vm1, %v455_v31  ;;  %v468_v37 = vshll.u32 %v1874_v32, 16  ;;  %v426_v38 = vor.u32 %v425_v33, %v421_v28  ;;  %v771_v49 = vrot.slane %v428_v10, 2  ;;  %v773_v50 = vrot.slane %v1892_v43, 1  ;;  %v1955_v33 = vld [vmem:[%s1851_s16 + $0x8] sm:$0xff] }
  0x18   : > { %1004 = vmatpush.bf16.msra.mxu2 %v1733_v34  ;;  %930 = vmatpush.bf16.msra.mxu1 %v1732_v35  ;;  %v774_v51 = vrot.slane %v1837_v12, 2  ;;  %v447_v52 = vsel %vm419_vm0, %v442_v46, %v446_v20  ;;  %v463_v53 = vsel %vm419_vm0, %v458_v47, %v462_v27  ;;  %v605_v56 = vrot.slane %v1824_v5, 1 }
  0x19   : > { %v470_v39 = vrot.slane %v468_v37, 1  ;;  %v431_v41 = vsel %vm419_vm0, %v426_v38, %v430_v18  ;;  %v772_v54 = vor.u32 %v771_v49, %v770_v48  ;;  %v607_v57 = vrot.slane %v1826_v6, 1 }
  0x1a   : > { %1610 = vmatmul.msk.bf16.vlgmr.msra.gmra.mxu0 %vm478_vm1, %v431_v41  ;;  %v775_v55 = vor.u32 %v774_v51, %v773_v50  ;;  %v604_v60 = vrot.slane %v1856_v17, 1  ;;  %v777_v61 = vrot.slane %v1843_v14, 1  ;;  %v778_v62 = vrot.slane %v1840_v13, 2 }
  0x1b   : > { %v471_v42 = vsel %vm419_vm0, %v466_v36, %v470_v39  ;;  %1212 = vmatpush.bf16.msra.mxu0 %v1735_v45  ;;  %v608_v59 = vsel %vm603_vm3, %v605_v56, %v607_v57  ;;  %v609_v1 = vrot.slane %v1828_v7, 1  ;;  %v781_v4 = vrot.slane %v1895_v44, 1 }
  0x1c   : > { %1615 = vmatmul.msk.bf16.vlgmr.msra.gmra.mxu3 %vm478_vm1, %v471_v42  ;;  %v776_v58 = vsel %vm769_vm2, %v772_v54, %v775_v55  ;;  %v606_v63 = vsel %vm603_vm3, %v604_v60, %v605_v56  ;;  %v779_v0 = vor.u32 %v778_v62, %v777_v61  ;;  %v782_v10 = vrot.slane %v1846_v15, 2 }
  0x1d   : > { %1120 = vmatpush.bf16.msra.mxu3 %v1734_v40  ;;  %v610_v3 = vsel %vm603_vm3, %v607_v57, %v609_v1  ;;  %v611_v18 = vrot.slane %v1830_v8, 1  ;;  %v785_v20 = vrot.slane %v1865_v23, 1  ;;  %v786_v22 = vrot.slane %v1854_v16, 2 }
  0x1e   : > { %v780_v2 = vsel %vm769_vm2, %v775_v55, %v779_v0  ;;  %v783_v11 = vor.u32 %v782_v10, %v781_v4  ;;  %v613_v25 = vrot.slane %v1832_v9, 1  ;;  %v790_v28 = vshrl.u32 %v1861_v21, 16  ;;  %v1282_v4 = vld [vmem:[%s1998_s6 + $0x8] sm:$0xff] }
  0x1f   : > { %v612_v19 = vsel %vm603_vm3, %v609_v1, %v611_v18  ;;  %v787_v24 = vor.u32 %v786_v22, %v785_v20  ;;  %v793_v29 = vshll.u32 %v1861_v21, 16  ;;  %v699_v35 = vrot.slane %v1861_v21, 1 }
  0x20   : > { %v614_v27 = vsel %vm603_vm3, %v611_v18, %v613_v25  ;;  %v792_v30 = vrot.slane %v790_v28, 1  ;;  %v404_v36 = vunpack.c.l.bf16 %v1955_v33  ;;  %v615_v50 = vrot.slane %v1874_v32, 1 }
  0x21   : > { %v788_v26 = vsel %vm769_vm2, %v783_v11, %v787_v24  ;;  %v795_v31 = vrot.slane %v793_v29, 2  ;;  %v700_v38 = vsel %vm603_vm3, %v613_v25, %v699_v35  ;;  %v1052_v51 = vrot.slane %v1892_v43, 2 }
  0x22   : > { %v1964_v39 = vpack.c.bf16 %v404_v36, %v404_v36  ;;  %v1056_v54 = vrot.slane %v1840_v13, 3  ;;  %v616_v55 = vsel %vm603_vm3, %v613_v25, %v615_v50  ;;  %v1168_v56 = vrot.slane %v1826_v6, 3 }
  0x23   : > { %v796_v34 = vor.u32 %v795_v31, %v792_v30  ;;  %v1169_v57 = vrot.slane %v1828_v7, 3  ;;  %v1759_v32 = vmov 0   ;;  %v886_v43 = vrot.slane %v1824_v5, 2  ;;  %v1284_v30 = vld [vmem:[%s1998_s6 + $0x18] sm:$0xff] }
  0x24   : > { %v799_v40 = vshrl.u32 %v1964_v39, 16  ;;  %v802_v41 = vshll.u32 %v1964_v39, 16  ;;  %v701_v47 = vrot.slane %v1964_v39, 1  ;;  %1748 = vset.pattern.permute.xlu0 %v1759_v32  ;;  %1749 = vset.pattern.permute.xlu1 %v1759_v32  ;;  %v887_v60 = vrot.slane %v1826_v6, 2 }
  0x25   : > { %v797_v37 = vsel %vm769_vm2, %v787_v24, %v796_v34  ;;  %1750 = vset.pattern.permute.xlu2 %v1759_v32  ;;  %v889_v61 = vrot.slane %v1828_v7, 2  ;;  %v1059_v62 = vrot.slane %v1895_v44, 2  ;;  %v1063_v22 = vrot.slane %v1865_v23, 2 }
  0x26   : > { %v801_v42 = vrot.slane %v799_v40, 1  ;;  %v804_v45 = vrot.slane %v802_v41, 2  ;;  %v702_v49 = vsel %vm603_vm3, %v699_v35, %v701_v47  ;;  %v888_v1 = vsel %vm885_vm6, %v886_v43, %v887_v60 }
  0x27   : > { %1612 = vmatmul.msk.bf16.gmra.mxu1 %vm478_vm1, %v447_v52  ;;  %1614 = vmatmul.msk.bf16.gmra.mxu2 %vm478_vm1, %v463_v53  ;;  %v1053_v52 = vrot.slane %v1837_v12, 3  ;;  %v1055_v53 = vrot.slane %v1843_v14, 2  ;;  %v1170_v12 = vsel %vm1167_vm4, %v1168_v56, %v1169_v57  ;;  %v1281_v14 = vld [vmem:[%s1998_s6] sm:$0xff]  ;;  %v1064_v24 = vrot.slane %v1854_v16, 3 }
  0x28   : > { %v805_v46 = vor.u32 %v804_v45, %v801_v42  ;;  %1295 = vperm.xlu0 %1748, %v1281_v14   ;;  %v1067_v42 = vrot.slane %v790_v28, 2  ;;  %v1068_v45 = vrot.slane %v793_v29, 3  ;;  %v2071_v14 = vrot.slane %v1861_v21, 2 }
  0x29   : > { %v1065_v31 = vor.u32 %v1064_v24, %v1063_v22 }
  0x2a   : > { %1656 = vmatmul.msk.bf16.vlgmr.msrb.gmra.mxu0 %vm478_vm1, %v776_v58  ;;  %v806_v48 = vsel %vm769_vm2, %v796_v34, %v805_v46  ;;  %v1054_v58 = vor.u32 %v1053_v52, %v1052_v51  ;;  %v1069_v50 = vor.u32 %v1068_v45, %v1067_v42 }
  0x2c   : > { %1644 = vmatmul.msk.bf16.vlgmr.msrb.gmra.mxu3 %vm478_vm1, %v608_v59 }
  0x30   : > { %1300 = vperm.xlu0 %1748, %v1282_v4  }
  0x37   : > { %1620 = vmatmul.msk.bf16.vlgmr.msrb.gmra.mxu1 %vm478_vm1, %v1856_v17  ;;  %1632 = vmatmul.msk.bf16.vlgmr.msrb.gmra.mxu2 %vm478_vm1, %v606_v63  ;;  %v784_v17 = vsel %vm769_vm2, %v779_v0, %v783_v11  ;;  %v1060_v63 = vrot.slane %v1846_v15, 3  ;;  %v1283_v11 = vld [vmem:[%s1998_s6 + $0x10] sm:$0xff] }
  0x38   : > { %1305 = vperm.xlu1 %1749, %v1283_v11   ;;  %v1290_v11 = vld [vmem:[%s1998_s6 + $0x48] sm:$0xff] }
  0x3a   : > { %1657 = vmatmul.msk.bf16.gmra.mxu0 %vm478_vm1, %v780_v2  ;;  %v890_v2 = vsel %vm885_vm6, %v887_v60, %v889_v61 }
  0x3c   : > { %1645 = vmatmul.msk.bf16.gmra.mxu3 %vm478_vm1, %v610_v3 }
  0x40   : > { %1310 = vperm.xlu1 %1749, %v1284_v30  }
  0x47   : > { %1621 = vmatmul.msk.bf16.gmra.mxu1 %vm478_vm1, %v1824_v5  ;;  %1633 = vmatmul.msk.bf16.gmra.mxu2 %vm478_vm1, %v608_v59  ;;  %v1057_v59 = vor.u32 %v1056_v54, %v1055_v53  ;;  %v1061_v5 = vor.u32 %v1060_v63, %v1059_v62  ;;  %v1070_v53 = vsel %vm1051_vm5, %v1065_v31, %v1069_v50  ;;  %v1726_v62 = vld [vmem:[%s1851_s16 + $0x10] sm:$0xf] }
  0x49   : > { %v1058_v13 = vsel %vm1051_vm5, %v1054_v58, %v1057_v59  ;;  %v1062_v44 = vsel %vm1051_vm5, %v1057_v59, %v1061_v5  ;;  %v1066_v16 = vsel %vm1051_vm5, %v1061_v5, %v1065_v31  ;;  %v1072_v58 = vshrl.u32 %v1955_v33, 16  ;;  %v1291_v31 = vld [vmem:[%s1998_s6 + $0x50] sm:$0xff] }
  0x4a   : > { %1658 = vmatmul.msk.bf16.gmra.mxu0 %vm478_vm1, %v784_v17  ;;  %v891_v17 = vrot.slane %v1830_v8, 2  ;;  %v1075_v59 = vshll.u32 %v1955_v33, 16 }
  0x4b   : > { %v1074_v60 = vrot.slane %v1072_v58, 2 }
  0x4c   : > { %1646 = vmatmul.msk.bf16.gmra.mxu3 %vm478_vm1, %v612_v19 }
  0x57   : > { %1622 = vmatmul.msk.bf16.gmra.mxu1 %vm478_vm1, %v1826_v6  ;;  %1634 = vmatmul.msk.bf16.gmra.mxu2 %vm478_vm1, %v610_v3  ;;  %v1171_v3 = vrot.slane %v1830_v8, 3 }
  0x5a   : > { %1659 = vmatmul.msk.bf16.gmra.mxu0 %vm478_vm1, %v788_v26  ;;  %v892_v26 = vsel %vm885_vm6, %v889_v61, %v891_v17  ;;  %v1077_v61 = vrot.slane %v1075_v59, 3 }
  0x5c   : > { %1647 = vmatmul.msk.bf16.gmra.mxu3 %vm478_vm1, %v614_v27 }
  0x67   : > { %1623 = vmatmul.msk.bf16.gmra.mxu1 %vm478_vm1, %v1828_v7  ;;  %1635 = vmatmul.msk.bf16.gmra.mxu2 %vm478_vm1, %v612_v19  ;;  %v1172_v7 = vsel %vm1167_vm4, %v1169_v57, %v1171_v3  ;;  %v1287_v57 = vld [vmem:[%s1998_s6 + $0x30] sm:$0xff] }
  0x68   : > { %1325 = vperm.xlu0 %1748, %v1287_v57  }
  0x6a   : > { %1660 = vmatmul.msk.bf16.gmra.mxu0 %vm478_vm1, %v797_v37 }
  0x6c   : > { %1648 = vmatmul.msk.bf16.gmra.mxu3 %vm478_vm1, %v700_v38  ;;  %v893_v38 = vrot.slane %v1832_v9, 2 }
  0x6e   : > { %v894_v47 = vsel %vm885_vm6, %v891_v17, %v893_v38 }
  0x70   : > { %1340 = vperm.xlu0 %1748, %v1290_v11  }
  0x77   : > { %1624 = vmatmul.msk.bf16.gmra.mxu1 %vm478_vm1, %v1830_v8  ;;  %1636 = vmatmul.msk.bf16.gmra.mxu2 %vm478_vm1, %v614_v27  ;;  %v1173_v27 = vrot.slane %v1832_v9, 3 }
  0x79   : > { %v1174_v23 = vsel %vm1167_vm4, %v1171_v3, %v1173_v27  ;;  %v896_v3 = vsel %vm885_vm6, %v893_v38, %v2071_v14 }
  0x7a   : > { %1661 = vmatmul.msk.bf16.gmra.mxu0 %vm478_vm1, %v806_v48 }
  0x7c   : > { %1649 = vmatmul.msk.bf16.gmra.mxu3 %vm478_vm1, %v702_v49  ;;  %v1175_v49 = vrot.slane %v1861_v21, 3  ;;  %v1285_v21 = vld [vmem:[%s1998_s6 + $0x20] sm:$0xff] }
  0x7d   : > { %1315 = vperm.xlu2 %1750, %v1285_v21   ;;  %v1292_v21 = vld [vmem:[%s1998_s6 + $0x58] sm:$0xff] }
  0x7e   : > { %v1176_v52 = vsel %vm1167_vm4, %v1173_v27, %v1175_v49 }
  0x87   : > { %1625 = vmatmul.msk.bf16.gmra.mxu1 %vm478_vm1, %v1832_v9  ;;  %1637 = vmatmul.msk.bf16.gmra.mxu2 %vm478_vm1, %v616_v55 }
  0x8a   : > { %1704 = vmatmul.msk.bf16.vlgmr.msra.gmra.mxu0 %vm478_vm1, %v1170_v12 }
  0x8c   : > { %1692 = vmatmul.msk.bf16.vlgmr.msra.gmra.mxu3 %vm478_vm1, %v1058_v13 }
  0x94   : > { %v2009_v0 = vpop.f32.mrf.mxu1 }
  0x97   : > { %1668 = vmatmul.msk.bf16.vlgmr.msra.gmra.mxu1 %vm478_vm1, %v888_v1  ;;  %1680 = vmatmul.msk.bf16.vlgmr.msra.gmra.mxu2 %vm478_vm1, %v890_v2  ;;  %v506_v6 = vpop.f32.mrf.mxu0  ;;  %v1288_v1 = vld [vmem:[%s1998_s6 + $0x38] sm:$0xff] }
  0x98   : > { %1330 = vperm.xlu1 %1749, %v1288_v1  }
  0x9a   : > { %v2018_v15 = vpop.f32.mrf.mxu2  ;;  %1705 = vmatmul.msk.bf16.gmra.mxu0 %vm478_vm1, %v1172_v7  ;;  %v1078_v7 = vor.u32 %v1077_v61, %v1074_v60  ;;  %v1289_v60 = vld [vmem:[%s1998_s6 + $0x40] sm:$0xff] }
  0x9c   : > { %v2021_v10 = vpop.f32.mrf.mxu1  ;;  %1693 = vmatmul.msk.bf16.gmra.mxu3 %vm478_vm1, %v1062_v44  ;;  %v406_v44 = vunpack.c.l.bf16 %v1726_v62  ;;  %v897_v62 = vrot.slane %v1964_v39, 2 }
  0x9e   : > { %v975_v27 = vpack.c.bf16 %v406_v44, %v406_v44 }
  0x9f   : > { %v2026_v18 = vpop.f32.mrf.mxu3  ;;  %v508_v19 = vpop.f32.mrf.mxu0 }
  0xa0   : > { %1345 = vperm.xlu1 %1749, %v1291_v31   ;;  %v1081_v38 = vshrl.u32 %v975_v27, 16 }
  0xa2   : > { %v2029_v20 = vpop.f32.mrf.mxu2 }
  0xa4   : > { %v2033_v25 = vpop.f32.mrf.mxu1 }
  0xa7   : > { %1669 = vmatmul.msk.bf16.gmra.mxu1 %vm478_vm1, %v890_v2  ;;  %1681 = vmatmul.msk.bf16.gmra.mxu2 %vm478_vm1, %v892_v26  ;;  %v2040_v8 = vpop.f32.mrf.mxu3  ;;  %v840_v34 = vpop.f32.mrf.mxu0 }
  0xaa   : > { %v2043_v35 = vpop.f32.mrf.mxu2  ;;  %1706 = vmatmul.msk.bf16.gmra.mxu0 %vm478_vm1, %v1174_v23 }
  0xac   : > { %v2046_v36 = vpop.f32.mrf.mxu1  ;;  %1694 = vmatmul.msk.bf16.gmra.mxu3 %vm478_vm1, %v1066_v16 }
  0xaf   : > { %v724_v37 = vpop.f32.mrf.mxu3  ;;  %v842_v40 = vpop.f32.mrf.mxu0 }
  0xb2   : > { %v2051_v41 = vpop.f32.mrf.mxu2 }
  0xb4   : > { %v563_v46 = vpop.f32.mrf.mxu1 }
  0xb5   : > { %v564_v48 = vadd.f32 %v563_v46, %v506_v6  ;;  %v1177_v6 = vrot.slane %v1955_v33, 3  ;;  %v981_v46 = vrot.slane %v1955_v33, 2 }
  0xb7   : > { %1670 = vmatmul.msk.bf16.gmra.mxu1 %vm478_vm1, %v892_v26  ;;  %1682 = vmatmul.msk.bf16.gmra.mxu2 %vm478_vm1, %v894_v47  ;;  %v726_v9 = vpop.f32.mrf.mxu3  ;;  %v845_v51 = vpop.f32.mrf.mxu0  ;;  %v1079_v26 = vsel %vm1051_vm5, %v1069_v50, %v1078_v7 }
  0xba   : > { %v650_v28 = vpop.f32.mrf.mxu2  ;;  %1707 = vmatmul.msk.bf16.gmra.mxu0 %vm478_vm1, %v1176_v52 }
  0xbb   : > { %v680_v29 = vadd.f32 %v650_v28, %v564_v48 }
  0xbc   : > { %v565_v54 = vpop.f32.mrf.mxu1  ;;  %1695 = vmatmul.msk.bf16.gmra.mxu3 %vm478_vm1, %v1070_v53 }
  0xbd   : > { %v754_v55 = vadd.f32 %v724_v37, %v680_v29  ;;  %v566_v56 = vadd.f32 %v565_v54, %v508_v19  ;;  %v1286_v37 = vld [vmem:[%s1998_s6 + $0x28] sm:$0xff]  ;;  %v1179_v29 = vrot.slane %v975_v27, 3 }
  0xbe   : > { %1320 = vperm.xlu2 %1750, %v1286_v37  }
  0xbf   : > { %v2068_v12 = vadd.f32 %v840_v34, %v754_v55  ;;  %v729_v13 = vpop.f32.mrf.mxu3  ;;  %v847_v32 = vpop.f32.mrf.mxu0 }
  0xc2   : > { %v652_v43 = vpop.f32.mrf.mxu2 }
  0xc3   : > { %v681_v63 = vadd.f32 %v652_v43, %v566_v56  ;;  %v1180_v56 = vsel %vm1167_vm4, %v1177_v6, %v1179_v29 }
  0xc4   : > { %v568_v2 = vpop.f32.mrf.mxu1 }
  0xc5   : > { %v755_v4 = vadd.f32 %v726_v9, %v681_v63  ;;  %v569_v5 = vadd.f32 %v568_v2, %v2009_v0  ;;  %v1178_v0 = vsel %vm1167_vm4, %v1175_v49, %v1177_v6  ;;  %v1083_v49 = vrot.slane %v1081_v38, 2 }
  0xc6   : > { %1335 = vperm.xlu2 %1750, %v1289_v60   ;;  %v983_v63 = vrot.slane %v975_v27, 2 }
  0xc7   : > { %1671 = vmatmul.msk.bf16.gmra.mxu1 %vm478_vm1, %v894_v47  ;;  %1683 = vmatmul.msk.bf16.gmra.mxu2 %vm478_vm1, %v896_v3  ;;  %v2083_v17 = vadd.f32 %v842_v40, %v755_v4  ;;  %v731_v19 = vpop.f32.mrf.mxu3  ;;  %v850_v22 = vpop.f32.mrf.mxu0  ;;  %v1084_v40 = vshll.u32 %v975_v27, 16 }
  0xc8   : > { %v984_v6 = vsel %vm885_vm6, %v981_v46, %v983_v63 }
  0xc9   : > { %v1086_v50 = vrot.slane %v1084_v40, 3 }
  0xca   : > { %v655_v24 = vpop.f32.mrf.mxu2  ;;  %1708 = vmatmul.msk.bf16.gmra.mxu0 %vm478_vm1, %v1178_v0 }
  0xcb   : > { %v682_v30 = vadd.f32 %v655_v24, %v569_v5  ;;  %v1087_v54 = vor.u32 %v1086_v50, %v1083_v49  ;;  %v898_v5 = vsel %vm885_vm6, %v2071_v14, %v897_v62 }
  0xcc   : > { %v570_v34 = vpop.f32.mrf.mxu1  ;;  %1696 = vmatmul.msk.bf16.gmra.mxu3 %vm478_vm1, %v1079_v26 }
  0xcd   : > { %v756_v23 = vadd.f32 %v729_v13, %v682_v30  ;;  %v571_v16 = vadd.f32 %v570_v34, %v2021_v10  ;;  %v982_v10 = vsel %vm885_vm6, %v2071_v14, %v981_v46  ;;  %v1088_v58 = vsel %vm1051_vm5, %v1078_v7, %v1087_v54 }
  0xce   : > { %1350 = vperm.xlu2 %1750, %v1292_v21  }
  0xcf   : > { %v2092_v42 = vadd.f32 %v845_v51, %v756_v23  ;;  %v734_v45 = vpop.f32.mrf.mxu3  ;;  %v852_v47 = vpop.f32.mrf.mxu0 }
  0xd2   : > { %v657_v48 = vpop.f32.mrf.mxu2 }
  0xd3   : > { %v683_v9 = vadd.f32 %v657_v48, %v571_v16 }
  0xd4   : > { %v573_v52 = vpop.f32.mrf.mxu1 }
  0xd5   : > { %v757_v28 = vadd.f32 %v731_v19, %v683_v9  ;;  %v574_v53 = vadd.f32 %v573_v52, %v2033_v25 }
  0xd7   : > { %1672 = vmatmul.msk.bf16.gmra.mxu1 %vm478_vm1, %v896_v3  ;;  %1684 = vmatmul.msk.bf16.gmra.mxu2 %vm478_vm1, %v982_v10  ;;  %v2100_v33 = vadd.f32 %v847_v32, %v757_v28  ;;  %v736_v51 = vpop.f32.mrf.mxu3  ;;  %v855_v55 = vpop.f32.mrf.mxu0 }
  0xda   : > { %v660_v57 = vpop.f32.mrf.mxu2  ;;  %1709 = vmatmul.msk.bf16.gmra.mxu0 %vm478_vm1, %v1180_v56 }
  0xdb   : > { %v684_v59 = vadd.f32 %v660_v57, %v574_v53 }
  0xdc   : > { %v575_v13 = vpop.f32.mrf.mxu1  ;;  %1697 = vmatmul.msk.bf16.gmra.mxu3 %vm478_vm1, %v1088_v58 }
  0xdd   : > { %v758_v25 = vadd.f32 %v734_v45, %v684_v59  ;;  %v576_v43 = vadd.f32 %v575_v13, %v2046_v36 }
  0xdf   : > { %v2108_v32 = vadd.f32 %v850_v22, %v758_v25  ;;  %v739_v61 = vpop.f32.mrf.mxu3  ;;  %v857_v1 = vpop.f32.mrf.mxu0 }
  0xe2   : > { %v662_v2 = vpop.f32.mrf.mxu2 }
  0xe3   : > { %v685_v3 = vadd.f32 %v662_v2, %v576_v43 }
  0xe4   : > { %v578_v4 = vpop.f32.mrf.mxu1 }
  0xe5   : > { %v759_v36 = vadd.f32 %v736_v51, %v685_v3  ;;  %v579_v44 = vadd.f32 %v578_v4, %v2018_v15  ;;  %v1296_v4 = vpop.permute.xlu0 %1295 }
  0xe7   : > { %1673 = vmatmul.msk.bf16.gmra.mxu1 %vm478_vm1, %v898_v5  ;;  %1685 = vmatmul.msk.bf16.gmra.mxu2 %vm478_vm1, %v984_v6  ;;  %v2117_v7 = vadd.f32 %v852_v47, %v759_v36  ;;  %v741_v39 = vpop.f32.mrf.mxu3  ;;  %v860_v11 = vpop.f32.mrf.mxu0 }
  0xea   : > { %v665_v19 = vpop.f32.mrf.mxu2 }
  0xeb   : > { %v686_v22 = vadd.f32 %v665_v19, %v579_v44 }
  0xec   : > { %v580_v0 = vpop.f32.mrf.mxu1 }
  0xed   : > { %v760_v24 = vadd.f32 %v739_v61, %v686_v22  ;;  %v581_v27 = vadd.f32 %v580_v0, %v2029_v20 }
  0xef   : > { %v2120_v14 = vadd.f32 %v855_v55, %v760_v24  ;;  %v744_v26 = vpop.f32.mrf.mxu3  ;;  %v862_v30 = vpop.f32.mrf.mxu0 }
  0xf0   : > { %v1301_v24 = vpop.permute.xlu0 %1300 }
  0xf2   : > { %v667_v31 = vpop.f32.mrf.mxu2 }
  0xf3   : > { %v687_v34 = vadd.f32 %v667_v31, %v581_v27 }
  0xf4   : > { %v583_v23 = vpop.f32.mrf.mxu1 }
  0xf5   : > { %v761_v16 = vadd.f32 %v741_v39, %v687_v34  ;;  %v584_v15 = vadd.f32 %v583_v23, %v2043_v35 }
  0xf7   : > { %v2123_v37 = vadd.f32 %v857_v1, %v761_v16  ;;  %v746_v38 = vpop.f32.mrf.mxu3  ;;  %v865_v40 = vpop.f32.mrf.mxu0 }
  0xfa   : > { %v670_v45 = vpop.f32.mrf.mxu2 }
  0xfb   : > { %v688_v46 = vadd.f32 %v670_v45, %v584_v15 }
  0xfc   : > { %v585_v47 = vpop.f32.mrf.mxu1 }
  0xfd   : > { %v762_v48 = vadd.f32 %v744_v26, %v688_v46  ;;  %v586_v20 = vadd.f32 %v585_v47, %v2051_v41 }
  0xff   : > { %v2126_v49 = vadd.f32 %v860_v11, %v762_v48  ;;  %v749_v50 = vpop.f32.mrf.mxu3  ;;  %v867_v9 = vpop.f32.mrf.mxu0 }
 0x100   : > { %v1306_v48 = vpop.permute.xlu1 %1305 }
 0x102   : > { %v672_v52 = vpop.f32.mrf.mxu2 }
 0x103   : > { %v689_v10 = vadd.f32 %v672_v52, %v586_v20 }
 0x104   : > { %v588_v28 = vpop.f32.mrf.mxu1 }
 0x105   : > { %v763_v53 = vadd.f32 %v746_v38, %v689_v10  ;;  %v589_v35 = vadd.f32 %v588_v28, %v2026_v18 }
 0x107   : > { %v2129_v29 = vadd.f32 %v862_v30, %v763_v53  ;;  %v751_v54 = vpop.f32.mrf.mxu3  ;;  %v1214_v51 = vpop.f32.mrf.mxu0 }
 0x10a   : > { %v675_v55 = vpop.f32.mrf.mxu2 }
 0x10b   : > { %v690_v56 = vadd.f32 %v675_v55, %v589_v35 }
 0x10c   : > { %v590_v57 = vpop.f32.mrf.mxu1 }
 0x10d   : > { %v764_v58 = vadd.f32 %v749_v50, %v690_v56  ;;  %v591_v41 = vadd.f32 %v590_v57, %v2040_v8 }
 0x10f   : > { %v2132_v59 = vadd.f32 %v865_v40, %v764_v58  ;;  %v1122_v13 = vpop.f32.mrf.mxu3  ;;  %v1216_v43 = vpop.f32.mrf.mxu0 }
 0x112   : > { %v677_v25 = vpop.f32.mrf.mxu2 }
 0x113   : > { %v691_v60 = vadd.f32 %v677_v25, %v591_v41 }
 0x114   : > { %v932_v61 = vpop.f32.mrf.mxu1 }
 0x115   : > { %v765_v62 = vadd.f32 %v751_v54, %v691_v60  ;;  %v962_v18 = vadd.f32 %v932_v61, %v2068_v12  ;;  %v1311_v60 = vpop.permute.xlu1 %1310 }
 0x117   : > { %v2135_v63 = vadd.f32 %v867_v9, %v765_v62  ;;  %v1124_v1 = vpop.f32.mrf.mxu3  ;;  %v1219_v6 = vpop.f32.mrf.mxu0 }
 0x11a   : > { %v1006_v2 = vpop.f32.mrf.mxu2 }
 0x11b   : > { %v1036_v3 = vadd.f32 %v1006_v2, %v962_v18 }
 0x11c   : > { %v934_v5 = vpop.f32.mrf.mxu1 }
 0x11d   : > { %v1152_v36 = vadd.f32 %v1122_v13, %v1036_v3  ;;  %v963_v39 = vadd.f32 %v934_v5, %v2083_v17 }
 0x11f   : > { %v1244_v21 = vadd.f32 %v1214_v51, %v1152_v36  ;;  %v1127_v8 = vpop.f32.mrf.mxu3  ;;  %v1221_v26 = vpop.f32.mrf.mxu0 }
 0x121   : > { %v1256_v44 = vpack.c.bf16 %v1244_v21, %v1244_v21  ;;  %v1353_v22 = vmul.f32 %v1296_v4, %v1244_v21 }
 0x122   : > { %v1008_v12 = vpop.f32.mrf.mxu2 }
 0x123   : > { %1269 = vst.msk [vmem:[%s2142_s10] sm:$0xf] %vm1268_vm7, %v1256_v44  ;;  %v1037_v11 = vadd.f32 %v1008_v12, %v963_v39  ;;  %v1395_v31 = vmul.f32 %v1353_v22, %v1353_v22  ;;  %v1366_v38 = vsel %vm1365_vm8, %v1353_v22, 0.0 }
 0x124   : > { %v937_v19 = vpop.f32.mrf.mxu1 }
 0x125   : > { %v1153_v0 = vadd.f32 %v1124_v1, %v1037_v11  ;;  %v964_v34 = vadd.f32 %v937_v19, %v2092_v42  ;;  %v1407_v50 = vsel %vm1365_vm8, %v1395_v31, 0.0 }
 0x127   : > { %v1245_v27 = vadd.f32 %v1216_v43, %v1153_v0  ;;  %v1129_v30 = vpop.f32.mrf.mxu3  ;;  %v1224_v28 = vpop.f32.mrf.mxu0 }
 0x129   : > { %v1257_v23 = vpack.c.bf16 %v1245_v27, %v1245_v27  ;;  %v1354_v16 = vmul.f32 %v1301_v24, %v1245_v27 }
 0x12a   : > { %v1011_v17 = vpop.f32.mrf.mxu2 }
 0x12b   : > { %1270 = vst.msk [vmem:[%s2142_s10 + $0x4] sm:$0xf] %vm1268_vm7, %v1257_v23  ;;  %v1367_v15 = vsel %vm1365_vm8, %v1354_v16, 0.0  ;;  %v1396_v40 = vmul.f32 %v1354_v16, %v1354_v16  ;;  %v1038_v45 = vadd.f32 %v1011_v17, %v964_v34 }
 0x12c   : > { %v1368_v46 = vadd.f32 %v1367_v15, %v1366_v38  ;;  %v939_v47 = vpop.f32.mrf.mxu1 }
 0x12d   : > { %v1408_v20 = vsel %vm1365_vm8, %v1396_v40, 0.0  ;;  %v1154_v42 = vadd.f32 %v1127_v8, %v1038_v45  ;;  %v965_v53 = vadd.f32 %v939_v47, %v2100_v33  ;;  %v1316_v8 = vpop.permute.xlu2 %1315 }
 0x12e   : > { %v1409_v9 = vadd.f32 %v1408_v20, %v1407_v50 }
 0x12f   : > { %v1246_v52 = vadd.f32 %v1219_v6, %v1154_v42  ;;  %v1132_v10 = vpop.f32.mrf.mxu3  ;;  %v1226_v3 = vpop.f32.mrf.mxu0 }
 0x131   : > { %v1258_v54 = vpack.c.bf16 %v1246_v52, %v1246_v52  ;;  %v1355_v35 = vmul.f32 %v1306_v48, %v1246_v52 }
 0x132   : > { %v1013_v51 = vpop.f32.mrf.mxu2 }
 0x133   : > { %1271 = vst.msk [vmem:[%s2142_s10 + $0x8] sm:$0xf] %vm1268_vm7, %v1258_v54  ;;  %v1369_v55 = vsel %vm1365_vm8, %v1355_v35, 0.0  ;;  %v1397_v56 = vmul.f32 %v1355_v35, %v1355_v35  ;;  %v1039_v57 = vadd.f32 %v1013_v51, %v965_v53  ;;  %v1326_v35 = vpop.permute.xlu0 %1325 }
 0x134   : > { %v1370_v58 = vadd.f32 %v1369_v55, %v1368_v46  ;;  %v942_v13 = vpop.f32.mrf.mxu1 }
 0x135   : > { %v1410_v41 = vsel %vm1365_vm8, %v1397_v56, 0.0  ;;  %v1155_v25 = vadd.f32 %v1129_v30, %v1039_v57  ;;  %v966_v33 = vadd.f32 %v942_v13, %v2108_v32  ;;  %v1321_v15 = vpop.permute.xlu2 %1320 }
 0x136   : > { %v1411_v43 = vadd.f32 %v1410_v41, %v1409_v9 }
 0x137   : > { %v1247_v61 = vadd.f32 %v1221_v26, %v1155_v25  ;;  %v1134_v62 = vpop.f32.mrf.mxu3  ;;  %v1229_v23 = vpop.f32.mrf.mxu0 }
 0x139   : > { %v1259_v1 = vpack.c.bf16 %v1247_v61, %v1247_v61  ;;  %v1356_v18 = vmul.f32 %v1311_v60, %v1247_v61 }
 0x13a   : > { %v1016_v2 = vpop.f32.mrf.mxu2 }
 0x13b   : > { %1272 = vst.msk [vmem:[%s2142_s10 + $0xc] sm:$0xf] %vm1268_vm7, %v1259_v1  ;;  %v1371_v4 = vsel %vm1365_vm8, %v1356_v18, 0.0  ;;  %v1398_v5 = vmul.f32 %v1356_v18, %v1356_v18  ;;  %v1040_v6 = vadd.f32 %v1016_v2, %v966_v33  ;;  %v1331_v18 = vpop.permute.xlu1 %1330 }
 0x13c   : > { %v1372_v36 = vadd.f32 %v1371_v4, %v1370_v58  ;;  %v944_v21 = vpop.f32.mrf.mxu1 }
 0x13d   : > { %v1412_v39 = vsel %vm1365_vm8, %v1398_v5, 0.0  ;;  %v1156_v44 = vadd.f32 %v1132_v10, %v1040_v6  ;;  %v967_v32 = vadd.f32 %v944_v21, %v2117_v7 }
 0x13e   : > { %v1413_v12 = vadd.f32 %v1412_v39, %v1411_v43 }
 0x13f   : > { %v1248_v11 = vadd.f32 %v1224_v28, %v1156_v44  ;;  %v1137_v24 = vpop.f32.mrf.mxu3  ;;  %v1231_v54 = vpop.f32.mrf.mxu0 }
 0x141   : > { %v1260_v19 = vpack.c.bf16 %v1248_v11, %v1248_v11  ;;  %v1357_v22 = vmul.f32 %v1316_v8, %v1248_v11 }
 0x142   : > { %v1018_v0 = vpop.f32.mrf.mxu2 }
 0x143   : > { %1273 = vst.msk [vmem:[%s2142_s10 + $0x10] sm:$0xf] %vm1268_vm7, %v1260_v19  ;;  %v1373_v26 = vsel %vm1365_vm8, %v1357_v22, 0.0  ;;  %v1399_v27 = vmul.f32 %v1357_v22, %v1357_v22  ;;  %v1041_v30 = vadd.f32 %v1018_v0, %v967_v32  ;;  %v1336_v19 = vpop.permute.xlu2 %1335 }
 0x144   : > { %v1374_v31 = vadd.f32 %v1373_v26, %v1372_v36  ;;  %v947_v34 = vpop.f32.mrf.mxu1 }
 0x145   : > { %v1414_v16 = vsel %vm1365_vm8, %v1399_v27, 0.0  ;;  %v1157_v17 = vadd.f32 %v1134_v62, %v1041_v30  ;;  %v968_v40 = vadd.f32 %v947_v34, %v2120_v14 }
 0x146   : > { %v1415_v38 = vadd.f32 %v1414_v16, %v1413_v12 }
 0x147   : > { %v1249_v7 = vadd.f32 %v1226_v3, %v1157_v17  ;;  %v1139_v52 = vpop.f32.mrf.mxu3 }
 0x149   : > { %v1261_v45 = vpack.c.bf16 %v1249_v7, %v1249_v7  ;;  %v1358_v46 = vmul.f32 %v1321_v15, %v1249_v7 }
 0x14a   : > { %v1021_v47 = vpop.f32.mrf.mxu2 }
 0x14b   : > { %1274 = vst.msk [vmem:[%s2142_s10 + $0x14] sm:$0xf] %vm1268_vm7, %v1261_v45  ;;  %v1375_v48 = vsel %vm1365_vm8, %v1358_v46, 0.0  ;;  %v1400_v50 = vmul.f32 %v1358_v46, %v1358_v46  ;;  %v1042_v20 = vadd.f32 %v1021_v47, %v968_v40  ;;  %v1341_v40 = vpop.permute.xlu0 %1340 }
 0x14c   : > { %v1376_v42 = vadd.f32 %v1375_v48, %v1374_v31  ;;  %v949_v9 = vpop.f32.mrf.mxu1 }
 0x14d   : > { %v1416_v10 = vsel %vm1365_vm8, %v1400_v50, 0.0  ;;  %v1158_v28 = vadd.f32 %v1137_v24, %v1042_v20  ;;  %v969_v51 = vadd.f32 %v949_v9, %v2123_v37  ;;  %v1234_v37 = vpop.f32.mrf.mxu0 }
 0x14e   : > { %v1417_v53 = vadd.f32 %v1416_v10, %v1415_v38 }
 0x14f   : > { %v1250_v14 = vadd.f32 %v1229_v23, %v1158_v28  ;;  %v1142_v33 = vpop.f32.mrf.mxu3 }
 0x151   : > { %v1262_v55 = vpack.c.bf16 %v1250_v14, %v1250_v14  ;;  %v1359_v56 = vmul.f32 %v1326_v35, %v1250_v14  ;;  %v1346_v14 = vpop.permute.xlu1 %1345 }
 0x152   : > { %v1023_v57 = vpop.f32.mrf.mxu2 }
 0x153   : > { %1275 = vst.msk [vmem:[%s2142_s10 + $0x18] sm:$0xf] %vm1268_vm7, %v1262_v55  ;;  %v1377_v58 = vsel %vm1365_vm8, %v1359_v56, 0.0  ;;  %v1401_v13 = vmul.f32 %v1359_v56, %v1359_v56  ;;  %v1043_v41 = vadd.f32 %v1023_v57, %v969_v51 }
 0x154   : > { %v1378_v25 = vadd.f32 %v1377_v58, %v1376_v42  ;;  %v952_v43 = vpop.f32.mrf.mxu1 }
 0x155   : > { %v1418_v60 = vsel %vm1365_vm8, %v1401_v13, 0.0  ;;  %v1159_v61 = vadd.f32 %v1139_v52, %v1043_v41  ;;  %v970_v2 = vadd.f32 %v952_v43, %v2126_v49  ;;  %v1236_v26 = vpop.f32.mrf.mxu0 }
 0x156   : > { %v1419_v62 = vadd.f32 %v1418_v60, %v1417_v53 }
 0x157   : > { %v1251_v1 = vadd.f32 %v1231_v54, %v1159_v61  ;;  %v1144_v22 = vpop.f32.mrf.mxu3 }
 0x159   : > { %v1263_v3 = vpack.c.bf16 %v1251_v1, %v1251_v1  ;;  %v1360_v4 = vmul.f32 %v1331_v18, %v1251_v1  ;;  %v1351_v1 = vpop.permute.xlu2 %1350 }
 0x15a   : > { %v1026_v5 = vpop.f32.mrf.mxu2 }
 0x15b   : > { %1276 = vst.msk [vmem:[%s2142_s10 + $0x1c] sm:$0xf] %vm1268_vm7, %v1263_v3  ;;  %v1379_v6 = vsel %vm1365_vm8, %v1360_v4, 0.0  ;;  %v1402_v36 = vmul.f32 %v1360_v4, %v1360_v4  ;;  %v1044_v21 = vadd.f32 %v1026_v5, %v970_v2 }
 0x15c   : > { %v1380_v8 = vadd.f32 %v1379_v6, %v1378_v25  ;;  %v954_v39 = vpop.f32.mrf.mxu1 }
 0x15d   : > { %v1420_v44 = vsel %vm1365_vm8, %v1402_v36, 0.0  ;;  %v1160_v12 = vadd.f32 %v1142_v33, %v1044_v21  ;;  %v971_v24 = vadd.f32 %v954_v39, %v2129_v29  ;;  %v1239_v52 = vpop.f32.mrf.mxu0 }
 0x15e   : > { %v1421_v11 = vadd.f32 %v1420_v44, %v1419_v62 }
 0x15f   : > { %v1252_v32 = vadd.f32 %v1234_v37, %v1160_v12  ;;  %v1147_v47 = vpop.f32.mrf.mxu3 }
 0x161   : > { %v1264_v49 = vpack.c.bf16 %v1252_v32, %v1252_v32  ;;  %v1361_v0 = vmul.f32 %v1336_v19, %v1252_v32 }
 0x162   : > { %v1028_v27 = vpop.f32.mrf.mxu2 }
 0x163   : > { %1277 = vst.msk [vmem:[%s2142_s10 + $0x20] sm:$0xf] %vm1268_vm7, %v1264_v49  ;;  %v1381_v30 = vsel %vm1365_vm8, %v1361_v0, 0.0  ;;  %v1403_v31 = vmul.f32 %v1361_v0, %v1361_v0  ;;  %v1045_v34 = vadd.f32 %v1028_v27, %v971_v24 }
 0x164   : > { %v1382_v23 = vadd.f32 %v1381_v30, %v1380_v8  ;;  %v957_v16 = vpop.f32.mrf.mxu1  ;;  %v1436_v8 = vlaneseq }
 0x165   : > { %v1422_v17 = vsel %vm1365_vm8, %v1403_v31, 0.0  ;;  %v1161_v38 = vadd.f32 %v1144_v22, %v1045_v34  ;;  %v972_v29 = vadd.f32 %v957_v16, %v2132_v59  ;;  %v1241_v62 = vpop.f32.mrf.mxu0 }
 0x166   : > { %v1423_v15 = vadd.f32 %v1422_v17, %v1421_v11  ;;  %v1437_v32 = vshrl.u32 %v1436_v8, 7 }
 0x167   : > { %v1253_v7 = vadd.f32 %v1236_v26, %v1161_v38  ;;  %v1149_v25 = vpop.f32.mrf.mxu3 }
 0x168   : > { %vm1439_vm9 = vcmp.eq.s32.totalorder %v1437_v32, 1  ;;  %vm1438_vm10 = vcmp.eq.s32.totalorder %v1437_v32, 0 }
 0x169   : > { %v1265_v45 = vpack.c.bf16 %v1253_v7, %v1253_v7  ;;  %v1362_v46 = vmul.f32 %v1341_v40, %v1253_v7 }
 0x16a   : > { %v1031_v48 = vpop.f32.mrf.mxu2 }
 0x16b   : > { %1278 = vst.msk [vmem:[%s2142_s10 + $0x24] sm:$0xf] %vm1268_vm7, %v1265_v45  ;;  %v1383_v50 = vsel %vm1365_vm8, %v1362_v46, 0.0  ;;  %v1404_v20 = vmul.f32 %v1362_v46, %v1362_v46  ;;  %v1046_v42 = vadd.f32 %v1031_v48, %v972_v29 }
 0x16c   : > { %v1384_v9 = vadd.f32 %v1383_v50, %v1382_v23  ;;  %v959_v54 = vpop.f32.mrf.mxu1 }
 0x16d   : > { %v1424_v10 = vsel %vm1365_vm8, %v1404_v20, 0.0  ;;  %v1162_v28 = vadd.f32 %v1147_v47, %v1046_v42  ;;  %v973_v55 = vadd.f32 %v959_v54, %v2135_v63 }
 0x16e   : > { %v1425_v53 = vadd.f32 %v1424_v10, %v1423_v15 }
 0x16f   : > { %v1254_v35 = vadd.f32 %v1239_v52, %v1162_v28 }
 0x171   : > { %v1266_v51 = vpack.c.bf16 %v1254_v35, %v1254_v35  ;;  %v1363_v59 = vmul.f32 %v1346_v14, %v1254_v35 }
 0x172   : > { %v1033_v56 = vpop.f32.mrf.mxu2 }
 0x173   : > { %1279 = vst.msk [vmem:[%s2142_s10 + $0x28] sm:$0xf] %vm1268_vm7, %v1266_v51  ;;  %v1385_v57 = vsel %vm1365_vm8, %v1363_v59, 0.0  ;;  %v1405_v58 = vmul.f32 %v1363_v59, %v1363_v59  ;;  %v1047_v13 = vadd.f32 %v1033_v56, %v973_v55 }
 0x174   : > { %v1386_v41 = vadd.f32 %v1385_v57, %v1384_v9 }
 0x175   : > { %v1426_v43 = vsel %vm1365_vm8, %v1405_v58, 0.0  ;;  %v1163_v60 = vadd.f32 %v1149_v25, %v1047_v13 }
 0x176   : > { %v1427_v61 = vadd.f32 %v1426_v43, %v1425_v53 }
 0x177   : > { %v1255_v33 = vadd.f32 %v1241_v62, %v1163_v60 }
 0x179   : > { %v1267_v63 = vpack.c.bf16 %v1255_v33, %v1255_v33  ;;  %v1364_v18 = vmul.f32 %v1351_v1, %v1255_v33 }
 0x17b   : > { %1280 = vst.msk [vmem:[%s2142_s10 + $0x2c] sm:$0xf] %vm1268_vm7, %v1267_v63  ;;  %v1387_v37 = vsel %vm1365_vm8, %v1364_v18, 0.0  ;;  %v1406_v2 = vmul.f32 %v1364_v18, %v1364_v18 }
 0x17c   : > { %v1388_v3 = vadd.f32 %v1387_v37, %v1386_v41 }
 0x17d   : > { %v1428_v4 = vsel %vm1365_vm8, %v1406_v2, 0.0 }
 0x17e   : > { %v1389_v5 = vrot.slane %v1388_v3, 4  ;;  %v1429_v6 = vadd.f32 %v1428_v4, %v1427_v61 }
 0x180   : > { %v1390_v36 = vadd.f32 %v1389_v5, %v1388_v3  ;;  %v1430_v21 = vrot.slane %v1429_v6, 4 }
 0x182   : > { %v1391_v39 = vrot.slane %v1390_v36, 2  ;;  %v1431_v44 = vadd.f32 %v1430_v21, %v1429_v6 }
 0x184   : > { %v1392_v12 = vadd.f32 %v1391_v39, %v1390_v36  ;;  %v1432_v11 = vrot.slane %v1431_v44, 2 }
 0x186   : > { %v1433_v19 = vadd.f32 %v1432_v11, %v1431_v44  ;;  %v1393_v22 = vrot.slane %v1392_v12, 1 }
 0x188   : > { %v1434_v49 = vrot.slane %v1433_v19, 1  ;;  %v1394_v24 = vadd.f32 %v1393_v22, %v1392_v12 }
 0x18a   : > { %v1435_v0 = vadd.f32 %v1434_v49, %v1433_v19 }
 0x18c   : > { %v1440_v26 = vsel %vm1439_vm9, %v1435_v0, 0.0 }
 0x18d   : > { %v1441_v27 = vsel %vm1438_vm10, %v1394_v24, %v1440_v26 }
 0x18e   : > { %1442 = vst.msk [vmem:[%s316_s13] sm:$0xff] %vm1365_vm8, %v1441_v27 }
 0x18f PF: > { %s16_s18 = sadd.s32 1, %s1757_s18  }
 0x190   : > { %p13_p7 = scmp.ge.s32.totalorder %s16_s18, 9  }
 0x192   :  { %15 = sbr.rel (!%p13_p7) target bundleno = 1 (0x1), region = 92 }

// kernel: _lambda_.9
= control target key start
LH: loop header
LB: loop body
LE: loop exit
PB: predicated region body
PF: predicated region fallthrough
CT: control target
= control target key end

     0   :  { %s3460_s15 = smov 0   ;;  %s4667_s0 = inlined_call_operand.vmem [shape: bf16[2640,8], index: 0, kind: input, shape index: {}, may-alias: {0,1}]   ;;  %s4668_s1 = inlined_call_operand.vmem [shape: bf16[2640,8], index: 1, kind: input, shape index: {}, may-alias: {0,1}]   ;;  %s4669_s2 = inlined_call_operand.vmem [shape: bf16[9,8,12], index: 2, kind: input, shape index: {}]   ;;  %s4670_s3 = inlined_call_operand.vmem [shape: f32[1,12], index: 3, kind: input, shape index: {}]   ;;  %s4671_s4 = inlined_call_operand.vmem [shape: f32[2560,12], index: 4, kind: output, shape index: {}]  }
   0x1 LB: > { %s2980_s16 = sadd.s32 4294967295, %s3433_s15   ;;  %p2986_p0 = scmp.ge.s32.totalorder %s3433_s15, 1  ;;  %s3433_s15 = sphi %s3460_s15, %s14_s15  }
   0x2   : > { %p190_p1 = scmp.lt.s32.totalorder %s3433_s15, 9 }
   0x4   : > { %p191_p2 = pnand %p2986_p0, %p190_p1 }
   0x6   : > { %194 = sbr.rel (%p191_p2) target bundleno = 888 (0x378), region = 36 }
   0xb   : > { %v3092_v0 = vld [vmem:[%s4669_s2 + $0x4] sm:$0xf]  ;;  %vm757_vm0 = vcmask 1043456   ;;  %s3473_s19 = smul.u32 40, %s2980_s16  ;;  %v3133_v2 = vld [vmem:[%s4669_s2 + $0x8] sm:$0xf] }
   0xc   : > { %v759_v1 = vsel %vm757_vm0, %v3092_v0, 0  ;;  %v3154_v3 = vld [vmem:[%s4669_s2 + $0xc] sm:$0xf]  ;;  %v1148_v4 = vsel %vm757_vm0, %v3133_v2, 0  ;;  %v527_v6 = vld [vmem:[%s4669_s2] sm:$0xf] }
   0xd   : > { %3313 = vmatpush.bf16.msra.mxu1 %v759_v1  ;;  %3314 = vmatpush.bf16.msra.mxu2 %v759_v1  ;;  %p232_p3 = scmp.lt.s32.totalorder %s3473_s19, 329  ;;  %v1323_v5 = vsel %vm757_vm0, %v3154_v3, 0  ;;  %v911_v7 = vsel %vm757_vm0, %v527_v6, 0  ;;  %v3175_v8 = vld [vmem:[%s4669_s2 + $0x10] sm:$0xf]  ;;  %vm696_vm2 = vcmask 64512  }
   0xe   : > { %3315 = vmatpush.bf16.msra.mxu3 %v759_v1  ;;  %768 = vmatpush.bf16.msra.mxu0 %v759_v1  ;;  %v1636_v9 = vsel %vm757_vm0, %v3175_v8, 0  ;;  %vm531_vm1 = vsmask.f32 7424  ;;  %s3664_s7 = sadd.s32 1, %s2980_s16  ;;  %vm1045_vm3 = vcmask 1046528   ;;  %vm1789_vm5 = vcmask 1045504  }
   0xf   : > { %s233_s28 = scalar_select %p232_p3, %s3473_s19, 329  ;;  %vm1476_vm4 = vsmask.f32 6400  ;;  %vm2220_vm6 = vsmask.f32 5376  ;;  %vm2533_vm7 = vcmask 1044480  }
  0x10   : > { %s2989_s8 = smul.u32 40, %s3664_s7  ;;  %p252_p5 = scmp.lt.s32.totalorder %s3473_s19, 319  ;;  %vm2871_vm8 = vcmask 97280  }
  0x11   : > { %1157 = vmatpush.bf16.msrb.mxu2 %v1148_v4  ;;  %920 = vmatpush.bf16.msrb.mxu1 %v911_v7  ;;  %s2987_s29 = sshll.u32 %s233_s28, 2 }
  0x12   : > { %1332 = vmatpush.bf16.msrb.mxu3 %v1323_v5  ;;  %1645 = vmatpush.bf16.msrb.mxu0 %v1636_v9  ;;  %s3497_s6 = scalar_lea.vmem %s4667_s0, %s2987_s29  ;;  %p244_p4 = scmp.lt.s32.totalorder %s2989_s8, 329 }
  0x13   : > { %v3500_v10 = vld [vmem:[%s3497_s6 + $0x28] sm:$0xff]  ;;  %v3503_v11 = vld [vmem:[%s3497_s6 + $0x30] sm:$0xff]  ;;  %v3509_v13 = vld [vmem:[%s3497_s6 + $0x58] sm:$0xff]  ;;  %s4840_s19 = smov (!%p252_p5, %s3473_s19), 319 }
  0x14   : > { %v3506_v12 = vld [vmem:[%s3497_s6 + $0x50] sm:$0xff]  ;;  %v3512_v14 = vld [vmem:[%s3497_s6 + $0x78] sm:$0xff]  ;;  %v3515_v15 = vld [vmem:[%s3497_s6 + $0x80] sm:$0xff]  ;;  %v3518_v16 = vshll.u32 %v3500_v10, 16  ;;  %v3521_v17 = vshrl.u32 %v3500_v10, 16  ;;  %v3524_v18 = vshll.u32 %v3503_v11, 16 }
  0x15   : > { %4713 = vst [vmem:[#allocation2_spill] sm:$0xff] %v3515_v15  ;;  %v3527_v19 = vshll.u32 %v3506_v12, 16  ;;  %v3530_v20 = vld [vmem:[%s3497_s6] sm:$0xff]  ;;  %v3533_v21 = vld [vmem:[%s3497_s6 + $0x8] sm:$0xff]  ;;  %v3536_v22 = vshrl.u32 %v3506_v12, 16  ;;  %v3539_v23 = vshll.u32 %v3509_v13, 16 }
  0x16   : > { %4714 = vst [vmem:[#allocation3_spill] sm:$0xff] %v3518_v16  ;;  %v3542_v24 = vshll.u32 %v3512_v14, 16  ;;  %v3545_v25 = vshrl.u32 %v3512_v14, 16  ;;  %v4673_v26 = vrot.slane %v3518_v16, 1  ;;  %v582_v27 = vrot.slane %v3524_v18, 1  ;;  %v3575_v45 = vld [vmem:[%s3497_s6 + $0x38] sm:$0xff] }
  0x17   : > { %4715 = vst [vmem:[#allocation4_spill] sm:$0xff] %v3521_v17  ;;  %v614_v28 = vrot.slane %v3527_v19, 1  ;;  %v3551_v29 = vshll.u32 %v3515_v15, 16  ;;  %v622_v30 = vrot.slane %v3539_v23, 1  ;;  %v533_v32 = vshrl.u32 %v3530_v20, 16  ;;  %v3578_v46 = vld [vmem:[%s3497_s6 + $0x60] sm:$0xff] }
  0x18   : > { %4716 = vst [vmem:[#allocation5_spill] sm:$0xff] %v3524_v18  ;;  %v654_v31 = vrot.slane %v3542_v24, 1  ;;  %v535_v33 = vshll.u32 %v3530_v20, 16  ;;  %v578_v34 = vor.u32 %v3521_v17, %v4673_v26  ;;  %v540_v37 = vshll.u32 %v3533_v21, 16  ;;  %v3582_v48 = vld [vmem:[%s3497_s6 + $0x88] sm:$0xff]  ;;  %v3586_v49 = vld [vmem:[%s3497_s6 + $0x10] sm:$0xff] }
  0x19   : > { %4717 = vst [vmem:[#allocation6_spill] sm:$0xff] %v3527_v19  ;;  %v618_v35 = vor.u32 %v3536_v22, %v614_v28  ;;  %v662_v36 = vrot.slane %v3551_v29, 1  ;;  %v3589_v50 = vshrl.u32 %v3503_v11, 16  ;;  %v3592_v51 = vshll.u32 %v3575_v45, 16  ;;  %v3615_v0 = vld [vmem:[%s3497_s6 + $0x48] sm:$0xff]  ;;  %v3630_v8 = vld [vmem:[%s3497_s6 + $0x40] sm:$0xff] }
  0x1a   : > { %4718 = vst [vmem:[#allocation7_spill] sm:$0xff] %v3536_v22  ;;  %v658_v38 = vor.u32 %v3545_v25, %v654_v31  ;;  %v537_v39 = vrot.slane %v535_v33, 1  ;;  %v583_v40 = vsel %vm531_vm1, %v578_v34, %v582_v27  ;;  %v542_v42 = vrot.slane %v540_v37, 1  ;;  %v3633_v9 = vld [vmem:[%s3497_s6 + $0x68] sm:$0xff]  ;;  %v3647_v34 = vld [vmem:[%s3497_s6 + $0x18] sm:$0xff]  ;;  %s4838_s8 = smov (!%p244_p4, %s2989_s8), 329 }
  0x1b   : > { %4719 = vst [vmem:[#allocation8_spill] sm:$0xff] %v3539_v23  ;;  %v623_v41 = vsel %vm531_vm1, %v618_v35, %v622_v30  ;;  %3098 = vmatmul.msk.bf16.vlgmr.msra.gmra.mxu1 %vm696_vm2, %v583_v40  ;;  %v3595_v52 = vshrl.u32 %v3509_v13, 16  ;;  %v3598_v53 = vshll.u32 %v3578_v46, 16  ;;  %v3601_v54 = vshrl.u32 %v3515_v15, 16  ;;  %v3650_v35 = vld [vmem:[%s3497_s6 + $0x70] sm:$0xff]  ;;  %s2990_s9 = sshll.u32 %s4838_s8, 2 }
  0x1c   : > { %4720 = vst [vmem:[#allocation9_spill] sm:$0xff] %v3551_v29  ;;  %3103 = vmatmul.msk.bf16.vlgmr.msra.gmra.mxu2 %vm696_vm2, %v623_v41  ;;  %v663_v43 = vsel %vm531_vm1, %v658_v38, %v662_v36  ;;  %v538_v44 = vor.u32 %v537_v39, %v533_v32  ;;  %v3604_v55 = vshll.u32 %v3582_v48, 16  ;;  %v544_v56 = vshrl.u32 %v3533_v21, 16  ;;  %s3741_s12 = scalar_lea.vmem %s4668_s1, %s2990_s9  ;;  %s2991_s25 = sshll.u32 %s4840_s19, 3 }
  0x1d   : > { %3108 = vmatmul.msk.bf16.vlgmr.msra.gmra.mxu3 %vm696_vm2, %v663_v43  ;;  %4721 = vst [vmem:[#allocation10_spill] sm:$0xff] %v3582_v48  ;;  %v4672_v57 = vshll.u32 %v3586_v49, 16  ;;  %v586_v58 = vor.u32 %v3589_v50, %v582_v27  ;;  %v590_v59 = vrot.slane %v3592_v51, 1  ;;  %v626_v60 = vor.u32 %v3595_v52, %v622_v30  ;;  %v3636_v27 = vld [vmem:[%s3497_s6 + $0x90] sm:$0xff]  ;;  %s4346_s28 = scalar_lea.vmem %s4671_s4, %s2991_s25 }
  0x1e   : > { %v543_v47 = vsel %vm531_vm1, %v538_v44, %v542_v42  ;;  %4722 = vst [vmem:[#allocation11_spill] sm:$0xff] %v3589_v50  ;;  %v630_v61 = vrot.slane %v3598_v53, 1  ;;  %v666_v62 = vor.u32 %v3601_v54, %v662_v36  ;;  %v670_v63 = vrot.slane %v3604_v55, 1 }
  0x1f   : > { %3093 = vmatmul.msk.bf16.vlgmr.msra.gmra.mxu0 %vm696_vm2, %v543_v47  ;;  %4723 = vst [vmem:[#allocation12_spill] sm:$0xff] %v3592_v51  ;;  %v546_v1 = vor.u32 %v544_v56, %v542_v42  ;;  %v550_v2 = vrot.slane %v4672_v57, 1  ;;  %v591_v3 = vsel %vm531_vm1, %v586_v58, %v590_v59  ;;  %v3623_v6 = vshll.u32 %v3615_v0, 16  ;;  %v3673_v42 = vld [vmem:[%s3497_s6 + $0x20] sm:$0xff] }
  0x20   : > { %4724 = vst [vmem:[#allocation13_spill] sm:$0xff] %v3595_v52  ;;  %v631_v4 = vsel %vm531_vm1, %v626_v60, %v630_v61  ;;  %v671_v5 = vsel %vm531_vm1, %v666_v62, %v670_v63  ;;  %v3641_v32 = vshrl.u32 %v3615_v0, 16  ;;  %v3644_v33 = vshrl.u32 %v3575_v45, 16 }
  0x21   : > { %4725 = vst [vmem:[#allocation14_spill] sm:$0xff] %v3601_v54  ;;  %v551_v7 = vsel %vm531_vm1, %v546_v1, %v550_v2  ;;  %v606_v30 = vrot.slane %v3623_v6, 1  ;;  %v3653_v36 = vshll.u32 %v3630_v8, 16  ;;  %v3656_v37 = vshrl.u32 %v3578_v46, 16 }
  0x22   : > { %4726 = vst [vmem:[#allocation15_spill] sm:$0xff] %v3604_v55  ;;  %v3659_v38 = vshll.u32 %v3633_v9, 16  ;;  %v3667_v40 = vshrl.u32 %v3582_v48, 16  ;;  %v3670_v41 = vshll.u32 %v3636_v27, 16  ;;  %v4674_v44 = vshrl.u32 %v3586_v49, 16 }
  0x23   : > { %4727 = vst [vmem:[#allocation16_spill] sm:$0xff] %v3623_v6  ;;  %v610_v39 = vor.u32 %v3641_v32, %v606_v30  ;;  %v4675_v47 = vshll.u32 %v3647_v34, 16  ;;  %v3683_v56 = vshll.u32 %v3650_v35, 16  ;;  %v594_v58 = vor.u32 %v3644_v33, %v590_v59 }
  0x24   : > { %4728 = vst [vmem:[#allocation17_spill] sm:$0xff] %v3636_v27  ;;  %v598_v60 = vrot.slane %v3653_v36, 1  ;;  %v634_v62 = vor.u32 %v3656_v37, %v630_v61  ;;  %v638_v1 = vrot.slane %v3659_v38, 1  ;;  %v3701_v61 = vshrl.u32 %v3650_v35, 16 }
  0x25   : > { %4729 = vst [vmem:[#allocation18_spill] sm:$0xff] %v3641_v32  ;;  %v3678_v43 = vsel %vm531_vm1, %v610_v39, %v614_v28  ;;  %v678_v28 = vrot.slane %v3670_v41, 1  ;;  %v646_v59 = vrot.slane %v3683_v56, 1 }
  0x26   : > { %4730 = vst [vmem:[#allocation19_spill] sm:$0xff] %v3644_v33  ;;  %v639_v39 = vsel %vm531_vm1, %v634_v62, %v638_v1 }
  0x27   : > { %4731 = vst [vmem:[#allocation20_spill] sm:$0xff] %v3653_v36 }
  0x28   : > { %4732 = vst [vmem:[#allocation21_spill] sm:$0xff] %v3667_v40 }
  0x29   : > { %4733 = vst [vmem:[#allocation22_spill] sm:$0xff] %v3670_v41  ;;  %v4736_v41 = vrot.slane %v3518_v16, 1 }
  0x2b   : > { %3099 = vmatmul.msk.bf16.gmra.mxu1 %vm696_vm2, %v591_v3  ;;  %v674_v3 = vor.u32 %v3667_v40, %v670_v63  ;;  %v599_v63 = vsel %vm531_vm1, %v594_v58, %v598_v60 }
  0x2c   : > { %3104 = vmatmul.msk.bf16.gmra.mxu2 %vm696_vm2, %v631_v4  ;;  %v3693_v4 = vshll.u32 %v3673_v42, 16 }
  0x2d   : > { %3109 = vmatmul.msk.bf16.gmra.mxu3 %vm696_vm2, %v671_v5  ;;  %v554_v5 = vor.u32 %v4674_v44, %v550_v2  ;;  %v679_v57 = vsel %vm531_vm1, %v674_v3, %v678_v28  ;;  %v650_v2 = vor.u32 %v3701_v61, %v646_v59  ;;  %v3709_v44 = vshrl.u32 %v3673_v42, 16  ;;  %v3720_v3 = vld [vmem:[%s3497_s6 + $0x98] sm:$0xff] }
  0x2e   : > { %4734 = vst [vmem:[#allocation23_spill] sm:$0xff] %v3693_v4  ;;  %v566_v26 = vrot.slane %v3693_v4, 1 }
  0x2f   : > { %3094 = vmatmul.msk.bf16.gmra.mxu0 %vm696_vm2, %v551_v7  ;;  %v558_v7 = vrot.slane %v4675_v47, 1  ;;  %4735 = vst [vmem:[#allocation24_spill] sm:$0xff] %v3709_v44  ;;  %v655_v58 = vsel %vm531_vm1, %v650_v2, %v654_v31  ;;  %v3733_v31 = vshrl.u32 %v3636_v27, 16  ;;  %v3749_v27 = vld [vmem:[%s3741_s12] sm:$0xff] }
  0x30   : > { %v570_v62 = vor.u32 %v3709_v44, %v566_v26  ;;  %v498_v54 = vunpack.c.l.bf16 %v3749_v27 }
  0x31   : > { %v559_v47 = vsel %vm531_vm1, %v554_v5, %v558_v7  ;;  %v3727_v5 = vshrl.u32 %v3630_v8, 16  ;;  %v682_v2 = vor.u32 %v3733_v31, %v678_v28 }
  0x32   : > { %v575_v48 = vsel %vm531_vm1, %v570_v62, %v4736_v41  ;;  %v560_v41 = vshrl.u32 %v3647_v34, 16  ;;  %v3762_v28 = vpack.c.bf16 %v498_v54, %v498_v54 }
  0x33   : > { %4737 = vst [vmem:[#allocation25_spill] sm:$0xff] %v3727_v5 }
  0x34   : > { %v562_v55 = vor.u32 %v560_v41, %v558_v7  ;;  %v3779_v7 = vshrl.u32 %v3720_v3, 16 }
  0x3b   : > { %3100 = vmatmul.msk.bf16.gmra.mxu1 %vm696_vm2, %v599_v63  ;;  %v3730_v63 = vshrl.u32 %v3633_v9, 16 }
  0x3c   : > { %3105 = vmatmul.msk.bf16.gmra.mxu2 %vm696_vm2, %v639_v39 }
  0x3d   : > { %3110 = vmatmul.msk.bf16.gmra.mxu3 %vm696_vm2, %v679_v57  ;;  %v3736_v57 = vshll.u32 %v3720_v3, 16  ;;  %v642_v39 = vor.u32 %v3730_v63, %v638_v1  ;;  %v3217_v1 = vld [vmem:[%s4669_s2 + $0x18] sm:$0xf] }
  0x3f   : > { %3095 = vmatmul.msk.bf16.gmra.mxu0 %vm696_vm2, %v559_v47  ;;  %v602_v47 = vor.u32 %v3727_v5, %v598_v60  ;;  %v686_v62 = vrot.slane %v3736_v57, 1  ;;  %v647_v15 = vsel %vm531_vm1, %v642_v39, %v646_v59  ;;  %v567_v60 = vsel %vm531_vm1, %v562_v55, %v566_v26  ;;  %v3259_v26 = vld [vmem:[%s4669_s2 + $0x20] sm:$0xf] }
  0x40   : > { %v2636_v55 = vsel %vm757_vm0, %v3259_v26, 0  ;;  %v692_v59 = vshll.u32 %v3762_v28, 16 }
  0x41   : > { %v607_v40 = vsel %vm531_vm1, %v602_v47, %v606_v30  ;;  %v687_v29 = vsel %vm531_vm1, %v682_v2, %v686_v62  ;;  %v2067_v30 = vsel %vm757_vm0, %v3217_v1, 0  ;;  %2645 = vmatpush.bf16.msra.mxu0 %v2636_v55  ;;  %v690_v47 = vor.u32 %v3779_v7, %v686_v62 }
  0x42   : > { %2076 = vmatpush.bf16.msra.mxu2 %v2067_v30  ;;  %v694_v39 = vrot.slane %v692_v59, 1  ;;  %v4739_v30 = vshll.u32 %v3586_v49, 16  ;;  %v4740_v62 = vshll.u32 %v3647_v34, 16 }
  0x44   : > { %v695_v2 = vsel %vm531_vm1, %v690_v47, %v694_v39  ;;  %v1481_v26 = vrot.slane %v4740_v62, 2  ;;  %v1484_v39 = vrot.slane %v3709_v44, 1  ;;  %v1489_v62 = vrot.slane %v3518_v16, 2 }
  0x4b   : > { %3101 = vmatmul.msk.bf16.gmra.mxu1 %vm696_vm2, %v607_v40  ;;  %v3238_v40 = vld [vmem:[%s4669_s2 + $0x1c] sm:$0xf] }
  0x4c   : > { %3106 = vmatmul.msk.bf16.gmra.mxu2 %vm696_vm2, %v647_v15  ;;  %v3196_v15 = vld [vmem:[%s4669_s2 + $0x14] sm:$0xf] }
  0x4d   : > { %3111 = vmatmul.msk.bf16.gmra.mxu3 %vm696_vm2, %v687_v29  ;;  %v2380_v29 = vsel %vm757_vm0, %v3238_v40, 0  ;;  %v1892_v54 = vsel %vm757_vm0, %v3196_v15, 0  ;;  %v1478_v40 = vrot.slane %v4739_v30, 2  ;;  %v1480_v15 = vrot.slane %v560_v41, 1 }
  0x4e   : > { %2389 = vmatpush.bf16.msra.mxu3 %v2380_v29  ;;  %1901 = vmatpush.bf16.msra.mxu1 %v1892_v54  ;;  %v1046_v29 = vrot.slane %v3530_v20, 1  ;;  %v1051_v54 = vrot.slane %v3647_v34, 1 }
  0x4f   : > { %3096 = vmatmul.msk.bf16.gmra.mxu0 %vm696_vm2, %v567_v60  ;;  %v4738_v60 = vshrl.u32 %v3586_v49, 16  ;;  %v1482_v55 = vor.u32 %v1481_v26, %v1480_v15  ;;  %v1488_v15 = vrot.slane %v3521_v17, 1  ;;  %v1055_v26 = vrot.slane %v3500_v10, 1 }
  0x50   : > { %v1516_v17 = vrot.slane %v3656_v37, 1 }
  0x51   : > { %v1477_v1 = vrot.slane %v4738_v60, 1  ;;  %v1053_v60 = vrot.slane %v3673_v42, 1 }
  0x5b   : > { %3102 = vmatmul.msk.bf16.gmra.mxu1 %vm696_vm2, %v3678_v43  ;;  %v1047_v43 = vrot.slane %v3533_v21, 1 }
  0x5c   : > { %3107 = vmatmul.msk.bf16.gmra.mxu2 %vm696_vm2, %v655_v58  ;;  %v1049_v58 = vrot.slane %v3586_v49, 1 }
  0x5d   : > { %3112 = vmatmul.msk.bf16.gmra.mxu3 %vm696_vm2, %v695_v2  ;;  %v1048_v59 = vsel %vm1045_vm3, %v1046_v29, %v1047_v43  ;;  %v1485_v2 = vrot.slane %v3693_v4, 2  ;;  %v1490_v29 = vor.u32 %v1489_v62, %v1488_v15 }
  0x5e   : > { %v1052_v47 = vsel %vm1045_vm3, %v1049_v58, %v1051_v54  ;;  %v1050_v30 = vsel %vm1045_vm3, %v1047_v43, %v1049_v58  ;;  %v1056_v43 = vsel %vm1045_vm3, %v1053_v60, %v1055_v26  ;;  %v1492_v58 = vrot.slane %v3589_v50, 1 }
  0x5f   : > { %3097 = vmatmul.msk.bf16.gmra.mxu0 %vm696_vm2, %v575_v48  ;;  %v1479_v48 = vor.u32 %v1478_v40, %v1477_v1  ;;  %v1486_v1 = vor.u32 %v1485_v2, %v1484_v39  ;;  %v1054_v40 = vsel %vm1045_vm3, %v1051_v54, %v1053_v60  ;;  %v1493_v54 = vrot.slane %v3524_v18, 2 }
  0x61   : > { %v1483_v41 = vsel %vm1476_vm4, %v1479_v48, %v1482_v55  ;;  %v1057_v48 = vrot.slane %v3503_v11, 1 }
  0x6b   : > { %3113 = vmatmul.msk.bf16.vlgmr.msrb.gmra.mxu1 %vm696_vm2, %v3530_v20  ;;  %v1487_v20 = vsel %vm1476_vm4, %v1482_v55, %v1486_v1  ;;  %v1494_v55 = vor.u32 %v1493_v54, %v1492_v58 }
  0x6c   : > { %3134 = vmatmul.msk.bf16.vlgmr.msrb.gmra.mxu2 %vm696_vm2, %v1048_v59 }
  0x6d   : > { %3155 = vmatmul.msk.bf16.vlgmr.msrb.gmra.mxu3 %vm696_vm2, %v1052_v47 }
  0x6f   : > { %3176 = vmatmul.msk.bf16.vlgmr.msrb.gmra.mxu0 %vm696_vm2, %v1483_v41  ;;  %v1058_v41 = vsel %vm1045_vm3, %v1055_v26, %v1057_v48 }
  0x7b   : > { %3114 = vmatmul.msk.bf16.gmra.mxu1 %vm696_vm2, %v3533_v21  ;;  %v1491_v21 = vsel %vm1476_vm4, %v1486_v1, %v1490_v29 }
  0x7c   : > { %3135 = vmatmul.msk.bf16.gmra.mxu2 %vm696_vm2, %v1050_v30  ;;  %v1496_v30 = vrot.slane %v3644_v33, 1 }
  0x7d   : > { %3156 = vmatmul.msk.bf16.gmra.mxu3 %vm696_vm2, %v1054_v40 }
  0x7f   : > { %3177 = vmatmul.msk.bf16.gmra.mxu0 %vm696_vm2, %v1487_v20 }
  0x8b   : > { %3115 = vmatmul.msk.bf16.gmra.mxu1 %vm696_vm2, %v3586_v49 }
  0x8c   : > { %3136 = vmatmul.msk.bf16.gmra.mxu2 %vm696_vm2, %v1052_v47  ;;  %v1495_v47 = vsel %vm1476_vm4, %v1490_v29, %v1494_v55 }
  0x8d   : > { %3157 = vmatmul.msk.bf16.gmra.mxu3 %vm696_vm2, %v1056_v43 }
  0x8f   : > { %3178 = vmatmul.msk.bf16.gmra.mxu0 %vm696_vm2, %v1491_v21 }
  0x98   : > { %v3831_v59 = vpop.f32.mrf.mxu1 }
  0x9b   : > { %3116 = vmatmul.msk.bf16.gmra.mxu1 %vm696_vm2, %v3647_v34  ;;  %v1497_v34 = vrot.slane %v3592_v51, 2 }
  0x9c   : > { %v3834_v49 = vpop.f32.mrf.mxu0  ;;  %3137 = vmatmul.msk.bf16.gmra.mxu2 %vm696_vm2, %v1054_v40  ;;  %v1059_v40 = vrot.slane %v3575_v45, 1 }
  0x9d   : > { %3158 = vmatmul.msk.bf16.gmra.mxu3 %vm696_vm2, %v1058_v41  ;;  %v1498_v62 = vor.u32 %v1497_v34, %v1496_v30  ;;  %v1500_v34 = vrot.slane %v3727_v5, 1 }
  0x9e   : > { %v1060_v29 = vsel %vm1045_vm3, %v1057_v48, %v1059_v40 }
  0x9f   : > { %3179 = vmatmul.msk.bf16.gmra.mxu0 %vm696_vm2, %v1495_v47  ;;  %v3842_v39 = vpop.f32.mrf.mxu2  ;;  %v1499_v58 = vsel %vm1476_vm4, %v1494_v55, %v1498_v62 }
  0xa0   : > { %v3844_v2 = vpop.f32.mrf.mxu3  ;;  %v3846_v60 = vpop.f32.mrf.mxu1 }
  0xa1   : > { %4741 = vst [vmem:[#allocation26_spill] sm:$0xff] %v3844_v2 }
  0xa4   : > { %v3848_v1 = vpop.f32.mrf.mxu0 }
  0xa7   : > { %v3853_v20 = vpop.f32.mrf.mxu2 }
  0xa8   : > { %v3855_v15 = vpop.f32.mrf.mxu3  ;;  %v3857_v26 = vpop.f32.mrf.mxu1 }
  0xa9   : > { %4742 = vst [vmem:[#allocation27_spill] sm:$0xff] %v3855_v15 }
  0xab   : > { %3117 = vmatmul.msk.bf16.gmra.mxu1 %vm696_vm2, %v3673_v42  ;;  %v1501_v42 = vrot.slane %v3653_v36, 2 }
  0xac   : > { %v3860_v21 = vpop.f32.mrf.mxu0  ;;  %3138 = vmatmul.msk.bf16.gmra.mxu2 %vm696_vm2, %v1056_v43  ;;  %v1061_v43 = vrot.slane %v3630_v8, 1 }
  0xad   : > { %3159 = vmatmul.msk.bf16.gmra.mxu3 %vm696_vm2, %v1060_v29  ;;  %v1502_v2 = vor.u32 %v1501_v42, %v1500_v34 }
  0xae   : > { %v1062_v51 = vsel %vm1045_vm3, %v1059_v40, %v1061_v43 }
  0xaf   : > { %3180 = vmatmul.msk.bf16.gmra.mxu0 %vm696_vm2, %v1499_v58  ;;  %v3868_v54 = vpop.f32.mrf.mxu2  ;;  %v1503_v36 = vsel %vm1476_vm4, %v1498_v62, %v1502_v2 }
  0xb0   : > { %4743 = vst [vmem:[#allocation28_spill] sm:$0xff] %v3868_v54  ;;  %v3870_v47 = vpop.f32.mrf.mxu3  ;;  %v3872_v30 = vpop.f32.mrf.mxu1 }
  0xb1   : > { %4744 = vst [vmem:[#allocation29_spill] sm:$0xff] %v3870_v47 }
  0xb4   : > { %v3874_v48 = vpop.f32.mrf.mxu0 }
  0xb7   : > { %v3879_v15 = vpop.f32.mrf.mxu2 }
  0xb8   : > { %4745 = vst [vmem:[#allocation30_spill] sm:$0xff] %v3879_v15  ;;  %v3881_v55 = vpop.f32.mrf.mxu3  ;;  %v3883_v58 = vpop.f32.mrf.mxu1 }
  0xb9   : > { %4746 = vst [vmem:[#allocation31_spill] sm:$0xff] %v3881_v55  ;;  %v1504_v55 = vrot.slane %v3641_v32, 1 }
  0xbb   : > { %3118 = vmatmul.msk.bf16.gmra.mxu1 %vm696_vm2, %v3500_v10  ;;  %v1505_v10 = vrot.slane %v3623_v6, 2 }
  0xbc   : > { %v3886_v47 = vpop.f32.mrf.mxu0  ;;  %3139 = vmatmul.msk.bf16.gmra.mxu2 %vm696_vm2, %v1058_v41  ;;  %v1063_v41 = vrot.slane %v3615_v0, 1 }
  0xbd   : > { %3160 = vmatmul.msk.bf16.gmra.mxu3 %vm696_vm2, %v1062_v51  ;;  %v1506_v18 = vor.u32 %v1505_v10, %v1504_v55 }
  0xbe   : > { %v1064_v50 = vsel %vm1045_vm3, %v1061_v43, %v1063_v41 }
  0xbf   : > { %3181 = vmatmul.msk.bf16.gmra.mxu0 %vm696_vm2, %v1503_v36  ;;  %v3894_v5 = vpop.f32.mrf.mxu2  ;;  %v1507_v6 = vsel %vm1476_vm4, %v1502_v2, %v1506_v18 }
  0xc0   : > { %4747 = vst [vmem:[#allocation32_spill] sm:$0xff] %v3894_v5  ;;  %v3896_v34 = vpop.f32.mrf.mxu3  ;;  %v3898_v42 = vpop.f32.mrf.mxu1 }
  0xc1   : > { %4748 = vst [vmem:[#allocation33_spill] sm:$0xff] %v3896_v34 }
  0xc4   : > { %v3900_v40 = vpop.f32.mrf.mxu0 }
  0xc7   : > { %v3905_v33 = vpop.f32.mrf.mxu2 }
  0xc8   : > { %4749 = vst [vmem:[#allocation34_spill] sm:$0xff] %v3905_v33  ;;  %v3907_v62 = vpop.f32.mrf.mxu3  ;;  %v3909_v36 = vpop.f32.mrf.mxu1 }
  0xc9   : > { %4750 = vst [vmem:[#allocation35_spill] sm:$0xff] %v3907_v62  ;;  %v1508_v62 = vrot.slane %v3536_v22, 1 }
  0xcb   : > { %3119 = vmatmul.msk.bf16.gmra.mxu1 %vm696_vm2, %v3503_v11  ;;  %v1509_v11 = vrot.slane %v3527_v19, 2 }
  0xcc   : > { %v3912_v34 = vpop.f32.mrf.mxu0  ;;  %3140 = vmatmul.msk.bf16.gmra.mxu2 %vm696_vm2, %v1060_v29  ;;  %v1065_v29 = vrot.slane %v3506_v12, 1 }
  0xcd   : > { %3161 = vmatmul.msk.bf16.gmra.mxu3 %vm696_vm2, %v1064_v50  ;;  %v1510_v5 = vor.u32 %v1509_v11, %v1508_v62 }
  0xcf   : > { %3182 = vmatmul.msk.bf16.gmra.mxu0 %vm696_vm2, %v1507_v6  ;;  %v3920_v32 = vpop.f32.mrf.mxu2  ;;  %v1511_v19 = vsel %vm1476_vm4, %v1506_v18, %v1510_v5 }
  0xd0   : > { %4751 = vst [vmem:[#allocation36_spill] sm:$0xff] %v3920_v32  ;;  %v3922_v55 = vpop.f32.mrf.mxu3  ;;  %v3924_v10 = vpop.f32.mrf.mxu1  ;;  %v1066_v32 = vsel %vm1045_vm3, %v1063_v41, %v1065_v29 }
  0xd1   : > { %4752 = vst [vmem:[#allocation37_spill] sm:$0xff] %v3922_v55 }
  0xd4   : > { %v3926_v43 = vpop.f32.mrf.mxu0 }
  0xd7   : > { %v3931_v33 = vpop.f32.mrf.mxu2 }
  0xd8   : > { %4753 = vst [vmem:[#allocation38_spill] sm:$0xff] %v3931_v33  ;;  %v3933_v2 = vpop.f32.mrf.mxu3  ;;  %v3935_v6 = vpop.f32.mrf.mxu1 }
  0xd9   : > { %4754 = vst [vmem:[#allocation39_spill] sm:$0xff] %v3933_v2  ;;  %v1512_v2 = vrot.slane %v3595_v52, 1 }
  0xdb   : > { %3120 = vmatmul.msk.bf16.gmra.mxu1 %vm696_vm2, %v3575_v45  ;;  %v1513_v45 = vrot.slane %v3539_v23, 2 }
  0xdc   : > { %v3938_v55 = vpop.f32.mrf.mxu0  ;;  %3141 = vmatmul.msk.bf16.gmra.mxu2 %vm696_vm2, %v1062_v51  ;;  %v1067_v51 = vrot.slane %v3509_v13, 1 }
  0xdd   : > { %3162 = vmatmul.msk.bf16.gmra.mxu3 %vm696_vm2, %v1066_v32  ;;  %v1514_v15 = vor.u32 %v1513_v45, %v1512_v2 }
  0xdf   : > { %3183 = vmatmul.msk.bf16.gmra.mxu0 %vm696_vm2, %v1511_v19  ;;  %v3946_v22 = vpop.f32.mrf.mxu2 }
  0xe0   : > { %4755 = vst [vmem:[#allocation40_spill] sm:$0xff] %v3946_v22  ;;  %v3948_v62 = vpop.f32.mrf.mxu3  ;;  %v3950_v11 = vpop.f32.mrf.mxu1  ;;  %v1068_v22 = vsel %vm1045_vm3, %v1065_v29, %v1067_v51 }
  0xe1   : > { %4756 = vst [vmem:[#allocation41_spill] sm:$0xff] %v3948_v62  ;;  %v1515_v62 = vsel %vm1476_vm4, %v1510_v5, %v1514_v15  ;;  %v1069_v5 = vrot.slane %v3578_v46, 1 }
  0xe4   : > { %v3952_v41 = vpop.f32.mrf.mxu0 }
  0xe7   : > { %v3957_v33 = vpop.f32.mrf.mxu2 }
  0xe8   : > { %4757 = vst [vmem:[#allocation42_spill] sm:$0xff] %v3957_v33  ;;  %v3959_v18 = vpop.f32.mrf.mxu3  ;;  %v922_v19 = vpop.f32.mrf.mxu1 }
  0xe9   : > { %4758 = vst [vmem:[#allocation43_spill] sm:$0xff] %v3959_v18  ;;  %v923_v23 = vadd.f32 %v922_v19, %v3834_v49 }
  0xeb   : > { %3121 = vmatmul.msk.bf16.gmra.mxu1 %vm696_vm2, %v3630_v8  ;;  %v1517_v8 = vrot.slane %v3598_v53, 2 }
  0xec   : > { %v1647_v16 = vpop.f32.mrf.mxu0  ;;  %3142 = vmatmul.msk.bf16.gmra.mxu2 %vm696_vm2, %v1064_v50 }
  0xed   : > { %3163 = vmatmul.msk.bf16.gmra.mxu3 %vm696_vm2, %v1068_v22 }
  0xef   : > { %3184 = vmatmul.msk.bf16.gmra.mxu0 %vm696_vm2, %v1515_v62  ;;  %v1159_v52 = vpop.f32.mrf.mxu2  ;;  %v1518_v62 = vor.u32 %v1517_v8, %v1516_v17 }
  0xf0   : > { %v1259_v18 = vadd.f32 %v1159_v52, %v923_v23  ;;  %v1334_v2 = vpop.f32.mrf.mxu3  ;;  %v924_v45 = vpop.f32.mrf.mxu1  ;;  %v1070_v52 = vsel %vm1045_vm3, %v1067_v51, %v1069_v5 }
  0xf1   : > { %v925_v50 = vadd.f32 %v924_v45, %v3848_v1 }
  0xf2   : > { %v1434_v33 = vadd.f32 %v1334_v2, %v1259_v18 }
  0xf4   : > { %v1649_v29 = vpop.f32.mrf.mxu0  ;;  %v3971_v4 = vadd.f32 %v1647_v16, %v1434_v33  ;;  %v1519_v16 = vsel %vm1476_vm4, %v1514_v15, %v1518_v62 }
  0xf7   : > { %v1161_v44 = vpop.f32.mrf.mxu2 }
  0xf8   : > { %v1260_v49 = vadd.f32 %v1161_v44, %v925_v50  ;;  %v1336_v19 = vpop.f32.mrf.mxu3  ;;  %v927_v54 = vpop.f32.mrf.mxu1 }
  0xf9   : > { %v928_v44 = vadd.f32 %v927_v54, %v3860_v21 }
  0xfa   : > { %v1435_v23 = vadd.f32 %v1336_v19, %v1260_v49 }
  0xfb   : > { %3122 = vmatmul.msk.bf16.gmra.mxu1 %vm696_vm2, %v3615_v0  ;;  %v1520_v0 = vrot.slane %v3730_v63, 1 }
  0xfc   : > { %v1652_v18 = vpop.f32.mrf.mxu0  ;;  %3143 = vmatmul.msk.bf16.gmra.mxu2 %vm696_vm2, %v1066_v32  ;;  %v3980_v33 = vadd.f32 %v1649_v29, %v1435_v23  ;;  %v1521_v32 = vrot.slane %v3659_v38, 2  ;;  %v1071_v29 = vrot.slane %v3633_v9, 1 }
  0xfd   : > { %3164 = vmatmul.msk.bf16.gmra.mxu3 %vm696_vm2, %v1070_v52 }
  0xfe   : > { %v1522_v19 = vor.u32 %v1521_v32, %v1520_v0 }
  0xff   : > { %3185 = vmatmul.msk.bf16.gmra.mxu0 %vm696_vm2, %v1519_v16  ;;  %v1164_v17 = vpop.f32.mrf.mxu2 }
 0x100   : > { %v1261_v1 = vadd.f32 %v1164_v17, %v928_v44  ;;  %v1339_v2 = vpop.f32.mrf.mxu3  ;;  %v929_v51 = vpop.f32.mrf.mxu1  ;;  %v1072_v44 = vsel %vm1045_vm3, %v1069_v5, %v1071_v29 }
 0x101   : > { %v930_v15 = vadd.f32 %v929_v51, %v3874_v48 }
 0x102   : > { %v1436_v45 = vadd.f32 %v1339_v2, %v1261_v1 }
 0x104   : > { %v1654_v8 = vpop.f32.mrf.mxu0  ;;  %v3987_v50 = vadd.f32 %v1652_v18, %v1436_v45  ;;  %v1523_v18 = vsel %vm1476_vm4, %v1518_v62, %v1522_v19 }
 0x107   : > { %v1166_v49 = vpop.f32.mrf.mxu2 }
 0x108   : > { %v1262_v21 = vadd.f32 %v1166_v49, %v930_v15  ;;  %v1341_v54 = vpop.f32.mrf.mxu3  ;;  %v932_v23 = vpop.f32.mrf.mxu1 }
 0x109   : > { %v933_v48 = vadd.f32 %v932_v23, %v3886_v47 }
 0x10a   : > { %v1437_v16 = vadd.f32 %v1341_v54, %v1262_v21 }
 0x10b   : > { %3123 = vmatmul.msk.bf16.gmra.mxu1 %vm696_vm2, %v3506_v12  ;;  %v1524_v12 = vrot.slane %v3701_v61, 1 }
 0x10c   : > { %v1657_v17 = vpop.f32.mrf.mxu0  ;;  %3144 = vmatmul.msk.bf16.gmra.mxu2 %vm696_vm2, %v1068_v22  ;;  %v3996_v1 = vadd.f32 %v1654_v8, %v1437_v16  ;;  %v1525_v22 = vrot.slane %v3683_v56, 2  ;;  %v1073_v8 = vrot.slane %v3650_v35, 1 }
 0x10d   : > { %3165 = vmatmul.msk.bf16.gmra.mxu3 %vm696_vm2, %v1072_v44 }
 0x10e   : > { %v1526_v54 = vor.u32 %v1525_v22, %v1524_v12 }
 0x10f   : > { %3186 = vmatmul.msk.bf16.gmra.mxu0 %vm696_vm2, %v1523_v18  ;;  %v1169_v2 = vpop.f32.mrf.mxu2  ;;  %v1074_v18 = vsel %vm1045_vm3, %v1071_v29, %v1073_v8 }
 0x110   : > { %v1263_v51 = vadd.f32 %v1169_v2, %v933_v48  ;;  %v1344_v45 = vpop.f32.mrf.mxu3  ;;  %v934_v5 = vpop.f32.mrf.mxu1 }
 0x111   : > { %v935_v62 = vadd.f32 %v934_v5, %v3900_v40 }
 0x112   : > { %v1438_v0 = vadd.f32 %v1344_v45, %v1263_v51 }
 0x114   : > { %v1659_v32 = vpop.f32.mrf.mxu0  ;;  %v4003_v15 = vadd.f32 %v1657_v17, %v1438_v0  ;;  %v1527_v17 = vsel %vm1476_vm4, %v1522_v19, %v1526_v54 }
 0x117   : > { %v1171_v49 = vpop.f32.mrf.mxu2 }
 0x118   : > { %v1264_v47 = vadd.f32 %v1171_v49, %v935_v62  ;;  %v1346_v21 = vpop.f32.mrf.mxu3  ;;  %v937_v23 = vpop.f32.mrf.mxu1 }
 0x119   : > { %v938_v40 = vadd.f32 %v937_v23, %v3912_v34 }
 0x11a   : > { %v1439_v16 = vadd.f32 %v1346_v21, %v1264_v47 }
 0x11b   : > { %3124 = vmatmul.msk.bf16.gmra.mxu1 %vm696_vm2, %v3509_v13  ;;  %v1528_v13 = vrot.slane %v3545_v25, 1 }
 0x11c   : > { %v1662_v48 = vpop.f32.mrf.mxu0  ;;  %3145 = vmatmul.msk.bf16.gmra.mxu2 %vm696_vm2, %v1070_v52  ;;  %v4012_v2 = vadd.f32 %v1659_v32, %v1439_v16  ;;  %v1529_v52 = vrot.slane %v3542_v24, 2  ;;  %v1075_v32 = vrot.slane %v3512_v14, 1 }
 0x11d   : > { %3166 = vmatmul.msk.bf16.gmra.mxu3 %vm696_vm2, %v1074_v18 }
 0x11e   : > { %v1530_v47 = vor.u32 %v1529_v52, %v1528_v13  ;;  %v1076_v16 = vsel %vm1045_vm3, %v1073_v8, %v1075_v32  ;;  %v4759_v13 = vld [vmem:[#allocation14_spill] sm:$0xff]  ;;  %v4760_v52 = vld [vmem:[#allocation9_spill] sm:$0xff] }
 0x11f   : > { %3187 = vmatmul.msk.bf16.gmra.mxu0 %vm696_vm2, %v1527_v17  ;;  %v1174_v51 = vpop.f32.mrf.mxu2 }
 0x120   : > { %v1265_v45 = vadd.f32 %v1174_v51, %v938_v40  ;;  %v1349_v5 = vpop.f32.mrf.mxu3  ;;  %v939_v29 = vpop.f32.mrf.mxu1 }
 0x121   : > { %v940_v19 = vadd.f32 %v939_v29, %v3926_v43 }
 0x122   : > { %v1440_v0 = vadd.f32 %v1349_v5, %v1265_v45 }
 0x124   : > { %v1664_v12 = vpop.f32.mrf.mxu0  ;;  %v4019_v22 = vadd.f32 %v1662_v48, %v1440_v0  ;;  %v1531_v48 = vsel %vm1476_vm4, %v1526_v54, %v1530_v47 }
 0x127   : > { %v1176_v62 = vpop.f32.mrf.mxu2 }
 0x128   : > { %v1266_v34 = vadd.f32 %v1176_v62, %v940_v19  ;;  %v1351_v49 = vpop.f32.mrf.mxu3  ;;  %v942_v21 = vpop.f32.mrf.mxu1 }
 0x129   : > { %v943_v43 = vadd.f32 %v942_v21, %v3938_v55 }
 0x12a   : > { %v1441_v23 = vadd.f32 %v1351_v49, %v1266_v34 }
 0x12b   : > { %3125 = vmatmul.msk.bf16.gmra.mxu1 %vm696_vm2, %v3578_v46  ;;  %v1532_v46 = vrot.slane %v4759_v13, 1 }
 0x12c   : > { %v1667_v17 = vpop.f32.mrf.mxu0  ;;  %3146 = vmatmul.msk.bf16.gmra.mxu2 %vm696_vm2, %v1072_v44  ;;  %v4028_v40 = vadd.f32 %v1664_v12, %v1441_v23  ;;  %v1533_v44 = vrot.slane %v4760_v52, 2  ;;  %v4761_v12 = vld [vmem:[#allocation2_spill] sm:$0xff] }
 0x12d   : > { %3167 = vmatmul.msk.bf16.gmra.mxu3 %vm696_vm2, %v1076_v16  ;;  %v1077_v62 = vrot.slane %v4761_v12, 1 }
 0x12e   : > { %v1534_v21 = vor.u32 %v1533_v44, %v1532_v46 }
 0x12f   : > { %3188 = vmatmul.msk.bf16.gmra.mxu0 %vm696_vm2, %v1531_v48  ;;  %v1179_v51 = vpop.f32.mrf.mxu2 }
 0x130   : > { %v1267_v45 = vadd.f32 %v1179_v51, %v943_v43  ;;  %v1354_v5 = vpop.f32.mrf.mxu3  ;;  %v944_v8 = vpop.f32.mrf.mxu1  ;;  %v1078_v43 = vsel %vm1045_vm3, %v1075_v32, %v1077_v62 }
 0x131   : > { %v945_v54 = vadd.f32 %v944_v8, %v3952_v41 }
 0x132   : > { %v1442_v29 = vadd.f32 %v1354_v5, %v1267_v45 }
 0x134   : > { %v1669_v0 = vpop.f32.mrf.mxu0  ;;  %v4035_v19 = vadd.f32 %v1667_v17, %v1442_v29  ;;  %v1535_v17 = vsel %vm1476_vm4, %v1530_v47, %v1534_v21 }
 0x137   : > { %v1181_v34 = vpop.f32.mrf.mxu2 }
 0x138   : > { %v1268_v55 = vadd.f32 %v1181_v34, %v945_v54  ;;  %v1356_v49 = vpop.f32.mrf.mxu3  ;;  %v947_v23 = vpop.f32.mrf.mxu1  ;;  %v4763_v54 = vld [vmem:[#allocation21_spill] sm:$0xff]  ;;  %v4764_v34 = vld [vmem:[#allocation15_spill] sm:$0xff] }
 0x139   : > { %v948_v41 = vadd.f32 %v947_v23, %v3831_v59 }
 0x13a   : > { %v1443_v48 = vadd.f32 %v1356_v49, %v1268_v55 }
 0x13b   : > { %3126 = vmatmul.msk.bf16.gmra.mxu1 %vm696_vm2, %v3633_v9  ;;  %v1536_v9 = vrot.slane %v4763_v54, 1 }
 0x13c   : > { %v1672_v51 = vpop.f32.mrf.mxu0  ;;  %3147 = vmatmul.msk.bf16.gmra.mxu2 %vm696_vm2, %v1074_v18  ;;  %v4044_v45 = vadd.f32 %v1669_v0, %v1443_v48  ;;  %v1537_v18 = vrot.slane %v4764_v34, 2  ;;  %v4765_v0 = vld [vmem:[#allocation10_spill] sm:$0xff] }
 0x13d   : > { %3168 = vmatmul.msk.bf16.gmra.mxu3 %vm696_vm2, %v1078_v43  ;;  %v1079_v49 = vrot.slane %v4765_v0, 1 }
 0x13e   : > { %4762 = vst [vmem:[#allocation14_spill] sm:$0xff] %v4044_v45 }
 0x13f   : > { %3189 = vmatmul.msk.bf16.gmra.mxu0 %vm696_vm2, %v1535_v17  ;;  %v1184_v5 = vpop.f32.mrf.mxu2  ;;  %v1538_v17 = vor.u32 %v1537_v18, %v1536_v9 }
 0x140   : > { %v1269_v8 = vadd.f32 %v1184_v5, %v948_v41  ;;  %v1359_v29 = vpop.f32.mrf.mxu3  ;;  %v949_v32 = vpop.f32.mrf.mxu1  ;;  %v1080_v5 = vsel %vm1045_vm3, %v1077_v62, %v1079_v49 }
 0x141   : > { %v950_v47 = vadd.f32 %v949_v32, %v3846_v60 }
 0x142   : > { %v1444_v46 = vadd.f32 %v1359_v29, %v1269_v8 }
 0x144   : > { %v1674_v44 = vpop.f32.mrf.mxu0  ;;  %v4051_v55 = vadd.f32 %v1672_v51, %v1444_v46  ;;  %v1539_v51 = vsel %vm1476_vm4, %v1534_v21, %v1538_v17 }
 0x147   : > { %v1186_v48 = vpop.f32.mrf.mxu2 }
 0x148   : > { %v1270_v59 = vadd.f32 %v1186_v48, %v950_v47  ;;  %v1361_v23 = vpop.f32.mrf.mxu3  ;;  %v952_v45 = vpop.f32.mrf.mxu1  ;;  %v4767_v48 = vld [vmem:[#allocation22_spill] sm:$0xff] }
 0x149   : > { %v953_v60 = vadd.f32 %v952_v45, %v3857_v26 }
 0x14a   : > { %v1445_v41 = vadd.f32 %v1361_v23, %v1270_v59 }
 0x14b   : > { %3127 = vmatmul.msk.bf16.gmra.mxu1 %vm696_vm2, %v3650_v35  ;;  %v1540_v35 = vrot.slane %v3733_v31, 1 }
 0x14c   : > { %v1677_v8 = vpop.f32.mrf.mxu0  ;;  %3148 = vmatmul.msk.bf16.gmra.mxu2 %vm696_vm2, %v1076_v16  ;;  %v4060_v29 = vadd.f32 %v1674_v44, %v1445_v41  ;;  %v1541_v16 = vrot.slane %v4767_v48, 2  ;;  %v4768_v44 = vld [vmem:[#allocation17_spill] sm:$0xff] }
 0x14d   : > { %3169 = vmatmul.msk.bf16.gmra.mxu3 %vm696_vm2, %v1080_v5  ;;  %v1081_v23 = vrot.slane %v4768_v44, 1 }
 0x14e   : > { %4766 = vst [vmem:[#allocation9_spill] sm:$0xff] %v4060_v29 }
 0x14f   : > { %3190 = vmatmul.msk.bf16.gmra.mxu0 %vm696_vm2, %v1539_v51  ;;  %v1189_v32 = vpop.f32.mrf.mxu2  ;;  %v1542_v51 = vor.u32 %v1541_v16, %v1540_v35 }
 0x150   : > { %v1271_v46 = vadd.f32 %v1189_v32, %v953_v60  ;;  %v1364_v9 = vpop.f32.mrf.mxu3  ;;  %v954_v62 = vpop.f32.mrf.mxu1  ;;  %v1082_v32 = vsel %vm1045_vm3, %v1079_v49, %v1081_v23 }
 0x151   : > { %v955_v21 = vadd.f32 %v954_v62, %v3872_v30 }
 0x152   : > { %v1446_v18 = vadd.f32 %v1364_v9, %v1271_v46 }
 0x154   : > { %v1679_v47 = vpop.f32.mrf.mxu0  ;;  %v4067_v59 = vadd.f32 %v1677_v8, %v1446_v18  ;;  %v1543_v8 = vsel %vm1476_vm4, %v1538_v17, %v1542_v51 }
 0x157   : > { %v1191_v41 = vpop.f32.mrf.mxu2 }
 0x158   : > { %v1272_v26 = vadd.f32 %v1191_v41, %v955_v21  ;;  %v1366_v45 = vpop.f32.mrf.mxu3  ;;  %v957_v29 = vpop.f32.mrf.mxu1 }
 0x159   : > { %v958_v30 = vadd.f32 %v957_v29, %v3883_v58 }
 0x15a   : > { %v1447_v60 = vadd.f32 %v1366_v45, %v1272_v26 }
 0x15b   : > { %3128 = vmatmul.msk.bf16.gmra.mxu1 %vm696_vm2, %v3512_v14  ;;  %v1544_v14 = vrot.slane %v3779_v7, 1 }
 0x15c   : > { %v1682_v46 = vpop.f32.mrf.mxu0  ;;  %3149 = vmatmul.msk.bf16.gmra.mxu2 %vm696_vm2, %v1078_v43  ;;  %v4076_v9 = vadd.f32 %v1679_v47, %v1447_v60  ;;  %v1545_v43 = vrot.slane %v3736_v57, 2  ;;  %v4087_v47 = vrot.slane %v3720_v3, 1 }
 0x15d   : > { %3170 = vmatmul.msk.bf16.gmra.mxu3 %vm696_vm2, %v1082_v32 }
 0x15e   : > { %v1546_v45 = vor.u32 %v1545_v43, %v1544_v14  ;;  %v4708_v14 = vshll.u32 %v3749_v27, 16 }
 0x15f   : > { %3191 = vmatmul.msk.bf16.gmra.mxu0 %vm696_vm2, %v1543_v8  ;;  %v1194_v62 = vpop.f32.mrf.mxu2 }
 0x160   : > { %v1273_v18 = vadd.f32 %v1194_v62, %v958_v30  ;;  %v1369_v35 = vpop.f32.mrf.mxu3  ;;  %v959_v49 = vpop.f32.mrf.mxu1  ;;  %v1084_v30 = vsel %vm1045_vm3, %v1081_v23, %v4087_v47  ;;  %v4709_v23 = vshrl.u32 %v3749_v27, 16 }
 0x161   : > { %v960_v17 = vadd.f32 %v959_v49, %v3898_v42  ;;  %v1547_v42 = vsel %vm1476_vm4, %v1542_v51, %v1546_v45 }
 0x162   : > { %v1448_v16 = vadd.f32 %v1369_v35, %v1273_v18  ;;  %v1551_v51 = vrot.slane %v4709_v23, 1 }
 0x164   : > { %v1684_v21 = vpop.f32.mrf.mxu0  ;;  %v4083_v41 = vadd.f32 %v1682_v46, %v1448_v16 }
 0x167   : > { %v1196_v58 = vpop.f32.mrf.mxu2 }
 0x168   : > { %v1274_v29 = vadd.f32 %v1196_v58, %v960_v17  ;;  %v1371_v26 = vpop.f32.mrf.mxu3  ;;  %v962_v60 = vpop.f32.mrf.mxu1  ;;  %v1307_v58 = vrot.slane %v3749_v27, 1 }
 0x169   : > { %v963_v18 = vadd.f32 %v962_v60, %v3909_v36 }
 0x16a   : > { %v1449_v8 = vadd.f32 %v1371_v26, %v1274_v29 }
 0x16b   : > { %3129 = vmatmul.msk.bf16.gmra.mxu1 %vm696_vm2, %v4761_v12 }
 0x16c   : > { %v1687_v62 = vpop.f32.mrf.mxu0  ;;  %3150 = vmatmul.msk.bf16.gmra.mxu2 %vm696_vm2, %v1080_v5  ;;  %v4095_v46 = vadd.f32 %v1684_v21, %v1449_v8  ;;  %v1554_v21 = vrot.slane %v4708_v14, 2 }
 0x16d   : > { %3171 = vmatmul.msk.bf16.gmra.mxu3 %vm696_vm2, %v1084_v30 }
 0x16e   : > { %v1555_v8 = vor.u32 %v1554_v21, %v1551_v51 }
 0x16f   : > { %3192 = vmatmul.msk.bf16.gmra.mxu0 %vm696_vm2, %v1547_v42  ;;  %v1199_v35 = vpop.f32.mrf.mxu2 }
 0x170   : > { %v1275_v49 = vadd.f32 %v1199_v35, %v963_v18  ;;  %v1374_v16 = vpop.f32.mrf.mxu3  ;;  %v964_v12 = vpop.f32.mrf.mxu1  ;;  %v1308_v35 = vsel %vm1045_vm3, %v4087_v47, %v1307_v58 }
 0x171   : > { %v965_v17 = vadd.f32 %v964_v12, %v3924_v10  ;;  %v4117_v10 = vld [vmem:[%s3741_s12 + $0x8] sm:$0xff] }
 0x172   : > { %v1450_v43 = vadd.f32 %v1374_v16, %v1275_v49 }
 0x174   : > { %v1689_v5 = vpop.f32.mrf.mxu0  ;;  %v4106_v36 = vadd.f32 %v1687_v62, %v1450_v43  ;;  %v1556_v62 = vsel %vm1476_vm4, %v1546_v45, %v1555_v8 }
 0x177   : > { %v1201_v29 = vpop.f32.mrf.mxu2 }
 0x178   : > { %v1276_v26 = vadd.f32 %v1201_v29, %v965_v17  ;;  %v1376_v60 = vpop.f32.mrf.mxu3  ;;  %v967_v42 = vpop.f32.mrf.mxu1 }
 0x179   : > { %v968_v12 = vadd.f32 %v967_v42, %v3935_v6 }
 0x17a   : > { %v1451_v18 = vadd.f32 %v1376_v60, %v1276_v26  ;;  %v3310_v60 = vld [vmem:[%s3741_s12 + $0x10] sm:$0xff] }
 0x17b   : > { %3130 = vmatmul.msk.bf16.gmra.mxu1 %vm696_vm2, %v4765_v0  ;;  %v4710_v0 = vshrl.u32 %v4117_v10, 16  ;;  %v502_v14 = vunpack.c.l.bf16 %v3310_v60 }
 0x17c   : > { %v1692_v49 = vpop.f32.mrf.mxu0  ;;  %3151 = vmatmul.msk.bf16.gmra.mxu2 %vm696_vm2, %v1082_v32  ;;  %v4119_v16 = vadd.f32 %v1689_v5, %v1451_v18  ;;  %v4711_v32 = vshll.u32 %v4117_v10, 16  ;;  %v1309_v18 = vrot.slane %v4117_v10, 1 }
 0x17d   : > { %3172 = vmatmul.msk.bf16.gmra.mxu3 %vm696_vm2, %v1308_v35  ;;  %v1560_v5 = vrot.slane %v4710_v0, 1 }
 0x17e   : > { %v1563_v26 = vrot.slane %v4711_v32, 2  ;;  %v1310_v23 = vsel %vm1045_vm3, %v1307_v58, %v1309_v18 }
 0x17f   : > { %3193 = vmatmul.msk.bf16.gmra.mxu0 %vm696_vm2, %v1556_v62  ;;  %v1204_v43 = vpop.f32.mrf.mxu2 }
 0x180   : > { %v1277_v51 = vadd.f32 %v1204_v43, %v968_v12  ;;  %v1379_v21 = vpop.f32.mrf.mxu3  ;;  %v969_v17 = vpop.f32.mrf.mxu1  ;;  %v1564_v43 = vor.u32 %v1563_v26, %v1560_v5 }
 0x181   : > { %v970_v42 = vadd.f32 %v969_v17, %v3950_v11  ;;  %v4140_v11 = vpack.c.bf16 %v502_v14, %v502_v14 }
 0x182   : > { %v1452_v45 = vadd.f32 %v1379_v21, %v1277_v51 }
 0x183   : > { %4769 = vst [vmem:[#allocation2_spill] sm:$0xff] %v4140_v11  ;;  %v1567_v60 = vshrl.u32 %v4140_v11, 16 }
 0x184   : > { %v1694_v29 = vpop.f32.mrf.mxu0  ;;  %v4131_v6 = vadd.f32 %v1692_v49, %v1452_v45  ;;  %v1565_v49 = vsel %vm1476_vm4, %v1555_v8, %v1564_v43 }
 0x185   : > { %v1569_v14 = vrot.slane %v1567_v60, 1 }
 0x187   : > { %v1206_v35 = vpop.f32.mrf.mxu2 }
 0x188   : > { %v1278_v62 = vadd.f32 %v1206_v35, %v970_v42  ;;  %v1381_v12 = vpop.f32.mrf.mxu3  ;;  %v972_v51 = vpop.f32.mrf.mxu1 }
 0x189   : > { %v973_v45 = vadd.f32 %v972_v51, %v3842_v39 }
 0x18a   : > { %v1453_v21 = vadd.f32 %v1381_v12, %v1278_v62 }
 0x18b   : > { %3131 = vmatmul.msk.bf16.gmra.mxu1 %vm696_vm2, %v4768_v44  ;;  %v1570_v44 = vshll.u32 %v4140_v11, 16 }
 0x18c   : > { %v1697_v0 = vpop.f32.mrf.mxu0  ;;  %3152 = vmatmul.msk.bf16.gmra.mxu2 %vm696_vm2, %v1084_v30  ;;  %v4143_v17 = vadd.f32 %v1694_v29, %v1453_v21  ;;  %v1311_v29 = vrot.slane %v4140_v11, 1 }
 0x18d   : > { %3173 = vmatmul.msk.bf16.gmra.mxu3 %vm696_vm2, %v1310_v23  ;;  %v1572_v35 = vrot.slane %v1570_v44, 2  ;;  %v1085_v23 = vrot.slane %v3762_v28, 1 }
 0x18f   : > { %3194 = vmatmul.msk.bf16.gmra.mxu0 %vm696_vm2, %v1565_v49  ;;  %v1209_v5 = vpop.f32.mrf.mxu2  ;;  %v1573_v49 = vor.u32 %v1572_v35, %v1569_v14 }
 0x190   : > { %v1279_v58 = vadd.f32 %v1209_v5, %v973_v45  ;;  %v1384_v26 = vpop.f32.mrf.mxu3  ;;  %v974_v30 = vpop.f32.mrf.mxu1  ;;  %v1086_v5 = vsel %vm1045_vm3, %v4087_v47, %v1085_v23 }
 0x191   : > { %v975_v39 = vadd.f32 %v974_v30, %v3853_v20  ;;  %v1574_v28 = vsel %vm1476_vm4, %v1564_v43, %v1573_v49  ;;  %v4774_v43 = vld [vmem:[#allocation23_spill] sm:$0xff]  ;;  %v3405_v49 = vld [vmem:[%s3497_s6 + $0x10] sm:$0xff] }
 0x192   : > { %v1454_v42 = vadd.f32 %v1384_v26, %v1279_v58  ;;  %v1312_v26 = vsel %vm1045_vm3, %v1309_v18, %v1311_v29  ;;  %v2222_v23 = vrot.slane %v4774_v43, 3 }
 0x194   : > { %v1699_v8 = vpop.f32.mrf.mxu0  ;;  %v4149_v62 = vadd.f32 %v1697_v0, %v1454_v42  ;;  %v4772_v0 = vld [vmem:[#allocation28_spill] sm:$0xff] }
 0x195   : > { %v4773_v42 = vld [vmem:[#allocation24_spill] sm:$0xff] }
 0x196   : > { %4770 = vst [vmem:[#allocation21_spill] sm:$0xff] %v4149_v62  ;;  %v2221_v14 = vrot.slane %v4773_v42, 2 }
 0x197   : > { %v1211_v12 = vpop.f32.mrf.mxu2 }
 0x198   : > { %v1280_v51 = vadd.f32 %v1211_v12, %v975_v39  ;;  %v1386_v21 = vpop.f32.mrf.mxu3  ;;  %v977_v45 = vpop.f32.mrf.mxu1  ;;  %v4775_v39 = vld [vmem:[#allocation4_spill] sm:$0xff] }
 0x199   : > { %v978_v44 = vadd.f32 %v977_v45, %v4772_v0  ;;  %v2224_v29 = vrot.slane %v4775_v39, 2  ;;  %v1790_v45 = vrot.slane %v3405_v49, 2  ;;  %v3408_v0 = vld [vmem:[%s3497_s6 + $0x28] sm:$0xff] }
 0x19a   : > { %v1455_v58 = vadd.f32 %v1386_v21, %v1280_v51 }
 0x19b   : > { %3132 = vmatmul.msk.bf16.gmra.mxu1 %vm696_vm2, %v3720_v3 }
 0x19c   : > { %v1702_v60 = vpop.f32.mrf.mxu0  ;;  %3153 = vmatmul.msk.bf16.gmra.mxu2 %vm696_vm2, %v1086_v5  ;;  %v4162_v20 = vadd.f32 %v1699_v8, %v1455_v58  ;;  %v4776_v8 = vld [vmem:[#allocation3_spill] sm:$0xff]  ;;  %v3406_v5 = vld [vmem:[%s3497_s6 + $0x18] sm:$0xff] }
 0x19d   : > { %3174 = vmatmul.msk.bf16.gmra.mxu3 %vm696_vm2, %v1312_v26  ;;  %v2225_v12 = vrot.slane %v4776_v8, 3  ;;  %v1791_v58 = vrot.slane %v3406_v5, 2  ;;  %v3407_v26 = vld [vmem:[%s3497_s6 + $0x20] sm:$0xff] }
 0x19e   : > { %4771 = vst [vmem:[#allocation15_spill] sm:$0xff] %v4162_v20  ;;  %v2534_v32 = vrot.slane %v3407_v26, 3 }
 0x19f   : > { %3195 = vmatmul.msk.bf16.gmra.mxu0 %vm696_vm2, %v1574_v28  ;;  %v1214_v47 = vpop.f32.mrf.mxu2  ;;  %v1793_v28 = vrot.slane %v3407_v26, 2  ;;  %v1792_v49 = vsel %vm1789_vm5, %v1790_v45, %v1791_v58 }
 0x1a0   : > { %v1281_v18 = vadd.f32 %v1214_v47, %v978_v44  ;;  %v1389_v30 = vpop.f32.mrf.mxu3  ;;  %v979_v3 = vpop.f32.mrf.mxu1  ;;  %v1795_v44 = vrot.slane %v3408_v0, 2  ;;  %v4778_v47 = vld [vmem:[#allocation30_spill] sm:$0xff] }
 0x1a1   : > { %v980_v42 = vadd.f32 %v979_v3, %v4778_v47 }
 0x1a2   : > { %v1456_v35 = vadd.f32 %v1389_v30, %v1281_v18  ;;  %v2223_v18 = vor.u32 %v2222_v23, %v2221_v14  ;;  %v2226_v30 = vor.u32 %v2225_v12, %v2224_v29  ;;  %v4179_v5 = vsel %vm1789_vm5, %v1793_v28, %v1795_v44  ;;  %v4780_v29 = vld [vmem:[#allocation32_spill] sm:$0xff] }
 0x1a4   : > { %v1704_v51 = vpop.f32.mrf.mxu0  ;;  %v4170_v21 = vadd.f32 %v1702_v60, %v1456_v35  ;;  %v2535_v60 = vrot.slane %v3408_v0, 3  ;;  %v2227_v20 = vsel %vm2220_vm6, %v2223_v18, %v2226_v30  ;;  %v4781_v18 = vld [vmem:[#allocation11_spill] sm:$0xff] }
 0x1a6   : > { %4777 = vst [vmem:[#allocation10_spill] sm:$0xff] %v4170_v21  ;;  %v2536_v14 = vsel %vm2533_vm7, %v2534_v32, %v2535_v60  ;;  %v3409_v32 = vld [vmem:[%s3497_s6 + $0x30] sm:$0xff] }
 0x1a7   : > { %v1216_v43 = vpop.f32.mrf.mxu2  ;;  %v2537_v62 = vrot.slane %v3409_v32, 3 }
 0x1a8   : > { %v1282_v39 = vadd.f32 %v1216_v43, %v980_v42  ;;  %v1391_v8 = vpop.f32.mrf.mxu3  ;;  %v982_v35 = vpop.f32.mrf.mxu1  ;;  %v2228_v43 = vrot.slane %v4781_v18, 2 }
 0x1a9   : > { %v983_v12 = vadd.f32 %v982_v35, %v4780_v29 }
 0x1aa   : > { %v1457_v21 = vadd.f32 %v1391_v8, %v1282_v39  ;;  %v4782_v39 = vld [vmem:[#allocation5_spill] sm:$0xff] }
 0x1ab   : > { %3197 = vmatmul.msk.bf16.vlgmr.msra.gmra.mxu1 %vm696_vm2, %v1792_v49  ;;  %v2229_v8 = vrot.slane %v4782_v39, 3 }
 0x1ac   : > { %v1707_v3 = vpop.f32.mrf.mxu0  ;;  %3218 = vmatmul.msk.bf16.vlgmr.msra.gmra.mxu2 %vm696_vm2, %v4179_v5  ;;  %v4186_v23 = vadd.f32 %v1704_v51, %v1457_v21  ;;  %v1797_v51 = vrot.slane %v3409_v32, 2  ;;  %v4783_v21 = vld [vmem:[#allocation34_spill] sm:$0xff]  ;;  %v4786_v32 = vld [vmem:[#allocation19_spill] sm:$0xff] }
 0x1ad   : > { %3239 = vmatmul.msk.bf16.vlgmr.msra.gmra.mxu3 %vm696_vm2, %v2227_v20 }
 0x1ae   : > { %4779 = vst [vmem:[#allocation22_spill] sm:$0xff] %v4186_v23  ;;  %v2230_v23 = vor.u32 %v2229_v8, %v2228_v43 }
 0x1af   : > { %3260 = vmatmul.msk.bf16.vlgmr.msra.gmra.mxu0 %vm696_vm2, %v2536_v14  ;;  %v1219_v45 = vpop.f32.mrf.mxu2 }
 0x1b0   : > { %v1283_v26 = vadd.f32 %v1219_v45, %v983_v12  ;;  %v1394_v0 = vpop.f32.mrf.mxu3  ;;  %v984_v47 = vpop.f32.mrf.mxu1  ;;  %v1794_v45 = vsel %vm1789_vm5, %v1791_v58, %v1793_v28  ;;  %v2231_v18 = vsel %vm2220_vm6, %v2226_v30, %v2230_v23 }
 0x1b1   : > { %v985_v20 = vadd.f32 %v984_v47, %v4783_v21  ;;  %v2232_v21 = vrot.slane %v4786_v32, 2 }
 0x1b2   : > { %v1458_v42 = vadd.f32 %v1394_v0, %v1283_v26  ;;  %v1798_v26 = vsel %vm1789_vm5, %v1795_v44, %v1797_v51 }
 0x1b4   : > { %v1709_v49 = vpop.f32.mrf.mxu0  ;;  %v4193_v11 = vadd.f32 %v1707_v3, %v1458_v42  ;;  %v2538_v3 = vsel %vm2533_vm7, %v2535_v60, %v2537_v62  ;;  %v4785_v42 = vld [vmem:[#allocation36_spill] sm:$0xff]  ;;  %v3410_v60 = vld [vmem:[%s3497_s6 + $0x38] sm:$0xff] }
 0x1b7   : > { %v1221_v35 = vpop.f32.mrf.mxu2 }
 0x1b8   : > { %v1284_v29 = vadd.f32 %v1221_v35, %v985_v20  ;;  %v1396_v14 = vpop.f32.mrf.mxu3  ;;  %v987_v12 = vpop.f32.mrf.mxu1  ;;  %v4787_v20 = vld [vmem:[#allocation12_spill] sm:$0xff] }
 0x1b9   : > { %v988_v43 = vadd.f32 %v987_v12, %v4785_v42  ;;  %v2233_v35 = vrot.slane %v4787_v20, 3 }
 0x1ba   : > { %v1459_v0 = vadd.f32 %v1396_v14, %v1284_v29 }
 0x1bb   : > { %3198 = vmatmul.msk.bf16.gmra.mxu1 %vm696_vm2, %v1794_v45  ;;  %v4789_v45 = vld [vmem:[#allocation38_spill] sm:$0xff] }
 0x1bc   : > { %v1712_v39 = vpop.f32.mrf.mxu0  ;;  %3219 = vmatmul.msk.bf16.gmra.mxu2 %vm696_vm2, %v1798_v26  ;;  %v4203_v47 = vadd.f32 %v1709_v49, %v1459_v0  ;;  %v1799_v49 = vrot.slane %v3410_v60, 2 }
 0x1bd   : > { %3240 = vmatmul.msk.bf16.gmra.mxu3 %vm696_vm2, %v2231_v18  ;;  %v2234_v18 = vor.u32 %v2233_v35, %v2232_v21 }
 0x1be   : > { %4784 = vst [vmem:[#allocation17_spill] sm:$0xff] %v4203_v47  ;;  %v2539_v47 = vrot.slane %v3410_v60, 3 }
 0x1bf   : > { %3261 = vmatmul.msk.bf16.gmra.mxu0 %vm696_vm2, %v2538_v3  ;;  %v1224_v58 = vpop.f32.mrf.mxu2 }
 0x1c0   : > { %v1285_v28 = vadd.f32 %v1224_v58, %v988_v43  ;;  %v1399_v44 = vpop.f32.mrf.mxu3  ;;  %v989_v30 = vpop.f32.mrf.mxu1  ;;  %v1800_v58 = vsel %vm1789_vm5, %v1797_v51, %v1799_v49 }
 0x1c1   : > { %v990_v0 = vadd.f32 %v989_v30, %v4789_v45  ;;  %v4792_v45 = vld [vmem:[#allocation25_spill] sm:$0xff] }
 0x1c2   : > { %v1460_v8 = vadd.f32 %v1399_v44, %v1285_v28  ;;  %v2235_v44 = vsel %vm2220_vm6, %v2230_v23, %v2234_v18 }
 0x1c4   : > { %v1714_v29 = vpop.f32.mrf.mxu0  ;;  %v4210_v14 = vadd.f32 %v1712_v39, %v1460_v8  ;;  %v2540_v39 = vsel %vm2533_vm7, %v2537_v62, %v2539_v47  ;;  %v4791_v8 = vld [vmem:[#allocation40_spill] sm:$0xff]  ;;  %v3411_v62 = vld [vmem:[%s3497_s6 + $0x40] sm:$0xff] }
 0x1c6   : > { %4788 = vst [vmem:[#allocation28_spill] sm:$0xff] %v4210_v14  ;;  %v2541_v14 = vrot.slane %v3411_v62, 3 }
 0x1c7   : > { %v1226_v12 = vpop.f32.mrf.mxu2 }
 0x1c8   : > { %v1286_v42 = vadd.f32 %v1226_v12, %v990_v0  ;;  %v1401_v3 = vpop.f32.mrf.mxu3  ;;  %v992_v43 = vpop.f32.mrf.mxu1  ;;  %v4793_v0 = vld [vmem:[#allocation20_spill] sm:$0xff] }
 0x1c9   : > { %v993_v21 = vadd.f32 %v992_v43, %v4791_v8  ;;  %v2237_v12 = vrot.slane %v4793_v0, 3 }
 0x1ca   : > { %v1461_v28 = vadd.f32 %v1401_v3, %v1286_v42 }
 0x1cb   : > { %3199 = vmatmul.msk.bf16.gmra.mxu1 %vm696_vm2, %v4179_v5  ;;  %v2236_v5 = vrot.slane %v4792_v45, 2 }
 0x1cc   : > { %v1717_v32 = vpop.f32.mrf.mxu0  ;;  %3220 = vmatmul.msk.bf16.gmra.mxu2 %vm696_vm2, %v1800_v58  ;;  %v4220_v30 = vadd.f32 %v1714_v29, %v1461_v28  ;;  %v1801_v29 = vrot.slane %v3411_v62, 2  ;;  %v4795_v28 = vld [vmem:[#allocation42_spill] sm:$0xff] }
 0x1cd   : > { %3241 = vmatmul.msk.bf16.gmra.mxu3 %vm696_vm2, %v2235_v44 }
 0x1ce   : > { %4790 = vst [vmem:[#allocation24_spill] sm:$0xff] %v4220_v30  ;;  %v2238_v30 = vor.u32 %v2237_v12, %v2236_v5 }
 0x1cf   : > { %3262 = vmatmul.msk.bf16.gmra.mxu0 %vm696_vm2, %v2540_v39  ;;  %v1229_v51 = vpop.f32.mrf.mxu2 }
 0x1d0   : > { %v1287_v20 = vadd.f32 %v1229_v51, %v993_v21  ;;  %v1404_v23 = vpop.f32.mrf.mxu3  ;;  %v994_v35 = vpop.f32.mrf.mxu1  ;;  %v1802_v51 = vsel %vm1789_vm5, %v1799_v49, %v1801_v29 }
 0x1d1   : > { %v995_v44 = vadd.f32 %v994_v35, %v4795_v28  ;;  %v4798_v28 = vld [vmem:[#allocation18_spill] sm:$0xff] }
 0x1d2   : > { %v1462_v60 = vadd.f32 %v1404_v23, %v1287_v20  ;;  %v2239_v23 = vsel %vm2220_vm6, %v2234_v18, %v2238_v30 }
 0x1d4   : > { %v1719_v42 = vpop.f32.mrf.mxu0  ;;  %v4227_v3 = vadd.f32 %v1717_v32, %v1462_v60  ;;  %v2542_v32 = vsel %vm2533_vm7, %v2539_v47, %v2541_v14  ;;  %v4797_v60 = vld [vmem:[#allocation26_spill] sm:$0xff]  ;;  %v3412_v47 = vld [vmem:[%s3497_s6 + $0x48] sm:$0xff] }
 0x1d6   : > { %4794 = vst [vmem:[#allocation23_spill] sm:$0xff] %v4227_v3  ;;  %v2543_v3 = vrot.slane %v3412_v47, 3 }
 0x1d7   : > { %v1231_v43 = vpop.f32.mrf.mxu2 }
 0x1d8   : > { %v1288_v8 = vadd.f32 %v1231_v43, %v995_v44  ;;  %v1406_v39 = vpop.f32.mrf.mxu3  ;;  %v997_v21 = vpop.f32.mrf.mxu1  ;;  %v4799_v44 = vld [vmem:[#allocation16_spill] sm:$0xff] }
 0x1d9   : > { %v998_v5 = vadd.f32 %v997_v21, %v4797_v60  ;;  %v2241_v43 = vrot.slane %v4799_v44, 3 }
 0x1da   : > { %v1463_v20 = vadd.f32 %v1406_v39, %v1288_v8 }
 0x1db   : > { %3200 = vmatmul.msk.bf16.gmra.mxu1 %vm696_vm2, %v1798_v26  ;;  %v2240_v26 = vrot.slane %v4798_v28, 2 }
 0x1dc   : > { %v1722_v45 = vpop.f32.mrf.mxu0  ;;  %3221 = vmatmul.msk.bf16.gmra.mxu2 %vm696_vm2, %v1802_v51  ;;  %v4236_v35 = vadd.f32 %v1719_v42, %v1463_v20  ;;  %v1803_v42 = vrot.slane %v3412_v47, 2  ;;  %v4801_v20 = vld [vmem:[#allocation27_spill] sm:$0xff] }
 0x1dd   : > { %3242 = vmatmul.msk.bf16.gmra.mxu3 %vm696_vm2, %v2239_v23 }
 0x1de   : > { %4796 = vst [vmem:[#allocation4_spill] sm:$0xff] %v4236_v35  ;;  %v2242_v35 = vor.u32 %v2241_v43, %v2240_v26 }
 0x1df   : > { %3263 = vmatmul.msk.bf16.gmra.mxu0 %vm696_vm2, %v2542_v32  ;;  %v1234_v49 = vpop.f32.mrf.mxu2 }
 0x1e0   : > { %v1289_v0 = vadd.f32 %v1234_v49, %v998_v5  ;;  %v1409_v12 = vpop.f32.mrf.mxu3  ;;  %v999_v18 = vpop.f32.mrf.mxu1  ;;  %v1804_v49 = vsel %vm1789_vm5, %v1801_v29, %v1803_v42 }
 0x1e1   : > { %v1000_v23 = vadd.f32 %v999_v18, %v4801_v20  ;;  %v4804_v20 = vld [vmem:[#allocation7_spill] sm:$0xff] }
 0x1e2   : > { %v1464_v62 = vadd.f32 %v1409_v12, %v1289_v0  ;;  %v2243_v12 = vsel %vm2220_vm6, %v2238_v30, %v2242_v35 }
 0x1e4   : > { %v1724_v8 = vpop.f32.mrf.mxu0  ;;  %v4243_v39 = vadd.f32 %v1722_v45, %v1464_v62  ;;  %v2544_v45 = vsel %vm2533_vm7, %v2541_v14, %v2543_v3  ;;  %v4803_v62 = vld [vmem:[#allocation29_spill] sm:$0xff]  ;;  %v3413_v14 = vld [vmem:[%s3497_s6 + $0x50] sm:$0xff] }
 0x1e6   : > { %4800 = vst [vmem:[#allocation3_spill] sm:$0xff] %v4243_v39  ;;  %v2545_v39 = vrot.slane %v3413_v14, 3 }
 0x1e7   : > { %v1236_v21 = vpop.f32.mrf.mxu2 }
 0x1e8   : > { %v1290_v60 = vadd.f32 %v1236_v21, %v1000_v23  ;;  %v1411_v32 = vpop.f32.mrf.mxu3  ;;  %v1002_v5 = vpop.f32.mrf.mxu1  ;;  %v4805_v23 = vld [vmem:[#allocation6_spill] sm:$0xff] }
 0x1e9   : > { %v1003_v26 = vadd.f32 %v1002_v5, %v4803_v62  ;;  %v2245_v21 = vrot.slane %v4805_v23, 3 }
 0x1ea   : > { %v1465_v0 = vadd.f32 %v1411_v32, %v1290_v60 }
 0x1eb   : > { %3201 = vmatmul.msk.bf16.gmra.mxu1 %vm696_vm2, %v1800_v58  ;;  %v2244_v58 = vrot.slane %v4804_v20, 2 }
 0x1ec   : > { %v1727_v28 = vpop.f32.mrf.mxu0  ;;  %3222 = vmatmul.msk.bf16.gmra.mxu2 %vm696_vm2, %v1804_v49  ;;  %v4252_v18 = vadd.f32 %v1724_v8, %v1465_v0  ;;  %v1805_v8 = vrot.slane %v3413_v14, 2  ;;  %v4807_v0 = vld [vmem:[#allocation31_spill] sm:$0xff] }
 0x1ed   : > { %3243 = vmatmul.msk.bf16.gmra.mxu3 %vm696_vm2, %v2243_v12 }
 0x1ee   : > { %4802 = vst [vmem:[#allocation30_spill] sm:$0xff] %v4252_v18  ;;  %v2246_v18 = vor.u32 %v2245_v21, %v2244_v58 }
 0x1ef   : > { %3264 = vmatmul.msk.bf16.gmra.mxu0 %vm696_vm2, %v2544_v45  ;;  %v1239_v29 = vpop.f32.mrf.mxu2 }
 0x1f0   : > { %v1291_v44 = vadd.f32 %v1239_v29, %v1003_v26  ;;  %v1414_v43 = vpop.f32.mrf.mxu3  ;;  %v1004_v30 = vpop.f32.mrf.mxu1  ;;  %v1806_v29 = vsel %vm1789_vm5, %v1803_v42, %v1805_v8 }
 0x1f1   : > { %v1005_v12 = vadd.f32 %v1004_v30, %v4807_v0  ;;  %v4810_v0 = vld [vmem:[#allocation13_spill] sm:$0xff] }
 0x1f2   : > { %v1466_v47 = vadd.f32 %v1414_v43, %v1291_v44  ;;  %v2247_v43 = vsel %vm2220_vm6, %v2242_v35, %v2246_v18 }
 0x1f4   : > { %v1729_v60 = vpop.f32.mrf.mxu0  ;;  %v4259_v32 = vadd.f32 %v1727_v28, %v1466_v47  ;;  %v2546_v28 = vsel %vm2533_vm7, %v2543_v3, %v2545_v39  ;;  %v4809_v47 = vld [vmem:[#allocation33_spill] sm:$0xff] }
 0x1f5   : > { %v3414_v3 = vld [vmem:[%s3497_s6 + $0x58] sm:$0xff] }
 0x1f6   : > { %4806 = vst [vmem:[#allocation32_spill] sm:$0xff] %v4259_v32  ;;  %v2547_v32 = vrot.slane %v3414_v3, 3 }
 0x1f7   : > { %v1241_v5 = vpop.f32.mrf.mxu2 }
 0x1f8   : > { %v1292_v62 = vadd.f32 %v1241_v5, %v1005_v12  ;;  %v1416_v45 = vpop.f32.mrf.mxu3  ;;  %v1007_v26 = vpop.f32.mrf.mxu1  ;;  %v4811_v12 = vld [vmem:[#allocation8_spill] sm:$0xff] }
 0x1f9   : > { %v1008_v58 = vadd.f32 %v1007_v26, %v4809_v47  ;;  %v2249_v5 = vrot.slane %v4811_v12, 3 }
 0x1fa   : > { %v1467_v44 = vadd.f32 %v1416_v45, %v1292_v62 }
 0x1fb   : > { %3202 = vmatmul.msk.bf16.gmra.mxu1 %vm696_vm2, %v1802_v51  ;;  %v2248_v51 = vrot.slane %v4810_v0, 2 }
 0x1fc   : > { %v1732_v20 = vpop.f32.mrf.mxu0  ;;  %3223 = vmatmul.msk.bf16.gmra.mxu2 %vm696_vm2, %v1806_v29  ;;  %v4268_v30 = vadd.f32 %v1729_v60, %v1467_v44  ;;  %v1807_v60 = vrot.slane %v3414_v3, 2  ;;  %v4812_v44 = vld [vmem:[#allocation35_spill] sm:$0xff] }
 0x1fd   : > { %3244 = vmatmul.msk.bf16.gmra.mxu3 %vm696_vm2, %v2247_v43 }
 0x1fe   : > { %4808 = vst [vmem:[#allocation11_spill] sm:$0xff] %v4268_v30  ;;  %v2250_v30 = vor.u32 %v2249_v5, %v2248_v51 }
 0x1ff   : > { %3265 = vmatmul.msk.bf16.gmra.mxu0 %vm696_vm2, %v2546_v28  ;;  %v1244_v42 = vpop.f32.mrf.mxu2 }
 0x200   : > { %v1293_v23 = vadd.f32 %v1244_v42, %v1008_v58  ;;  %v1419_v21 = vpop.f32.mrf.mxu3  ;;  %v1009_v35 = vpop.f32.mrf.mxu1  ;;  %v1808_v42 = vsel %vm1789_vm5, %v1805_v8, %v1807_v60 }
 0x201   : > { %v1010_v43 = vadd.f32 %v1009_v35, %v4812_v44  ;;  %v2253_v44 = vrot.slane %v3598_v53, 3 }
 0x202   : > { %v1468_v14 = vadd.f32 %v1419_v21, %v1293_v23  ;;  %v2251_v21 = vsel %vm2220_vm6, %v2246_v18, %v2250_v30 }
 0x204   : > { %v1734_v62 = vpop.f32.mrf.mxu0  ;;  %v4275_v45 = vadd.f32 %v1732_v20, %v1468_v14  ;;  %v2548_v20 = vsel %vm2533_vm7, %v2545_v39, %v2547_v32  ;;  %v4813_v14 = vld [vmem:[#allocation37_spill] sm:$0xff]  ;;  %v3415_v39 = vld [vmem:[%s3497_s6 + $0x60] sm:$0xff] }
 0x207   : > { %v1246_v26 = vpop.f32.mrf.mxu2 }
 0x208   : > { %v1294_v47 = vadd.f32 %v1246_v26, %v1010_v43  ;;  %v1421_v28 = vpop.f32.mrf.mxu3  ;;  %v1012_v58 = vpop.f32.mrf.mxu1 }
 0x209   : > { %v1013_v51 = vadd.f32 %v1012_v58, %v4813_v14  ;;  %v2549_v14 = vrot.slane %v3415_v39, 3 }
 0x20a   : > { %v1469_v23 = vadd.f32 %v1421_v28, %v1294_v47  ;;  %v4814_v47 = vld [vmem:[#allocation39_spill] sm:$0xff] }
 0x20b   : > { %3203 = vmatmul.msk.bf16.gmra.mxu1 %vm696_vm2, %v1804_v49  ;;  %v2252_v49 = vrot.slane %v3656_v37, 2 }
 0x20c   : > { %v1737_v0 = vpop.f32.mrf.mxu0  ;;  %3224 = vmatmul.msk.bf16.gmra.mxu2 %vm696_vm2, %v1808_v42  ;;  %v4284_v35 = vadd.f32 %v1734_v62, %v1469_v23  ;;  %v1809_v62 = vrot.slane %v3415_v39, 2 }
 0x20d   : > { %3245 = vmatmul.msk.bf16.gmra.mxu3 %vm696_vm2, %v2251_v21  ;;  %v2254_v23 = vor.u32 %v2253_v44, %v2252_v49 }
 0x20f   : > { %3266 = vmatmul.msk.bf16.gmra.mxu0 %vm696_vm2, %v2548_v20  ;;  %v1249_v8 = vpop.f32.mrf.mxu2  ;;  %v2255_v37 = vsel %vm2220_vm6, %v2250_v30, %v2254_v23 }
 0x210   : > { %v1295_v12 = vadd.f32 %v1249_v8, %v1013_v51  ;;  %v1424_v5 = vpop.f32.mrf.mxu3  ;;  %v1014_v18 = vpop.f32.mrf.mxu1  ;;  %v4296_v8 = vsel %vm1789_vm5, %v1807_v60, %v1809_v62 }
 0x211   : > { %v1015_v28 = vadd.f32 %v1014_v18, %v4814_v47  ;;  %v4815_v18 = vld [vmem:[#allocation41_spill] sm:$0xff]  ;;  %v2257_v47 = vrot.slane %v3659_v38, 3 }
 0x212   : > { %v1470_v3 = vadd.f32 %v1424_v5, %v1295_v12 }
 0x214   : > { %v1739_v43 = vpop.f32.mrf.mxu0  ;;  %v4291_v26 = vadd.f32 %v1737_v0, %v1470_v3  ;;  %v2550_v0 = vsel %vm2533_vm7, %v2547_v32, %v2549_v14  ;;  %v3416_v32 = vld [vmem:[%s3497_s6 + $0x68] sm:$0xff] }
 0x217   : > { %v1251_v58 = vpop.f32.mrf.mxu2 }
 0x218   : > { %v1296_v21 = vadd.f32 %v1251_v58, %v1015_v28  ;;  %v1426_v20 = vpop.f32.mrf.mxu3  ;;  %v1017_v51 = vpop.f32.mrf.mxu1 }
 0x219   : > { %v1018_v3 = vadd.f32 %v1017_v51, %v4815_v18  ;;  %v2551_v18 = vrot.slane %v3416_v32, 3 }
 0x21a   : > { %v1471_v12 = vadd.f32 %v1426_v20, %v1296_v21  ;;  %v4816_v21 = vld [vmem:[#allocation43_spill] sm:$0xff] }
 0x21b   : > { %3204 = vmatmul.msk.bf16.gmra.mxu1 %vm696_vm2, %v1806_v29  ;;  %v2256_v29 = vrot.slane %v3730_v63, 2 }
 0x21c   : > { %v1742_v53 = vpop.f32.mrf.mxu0  ;;  %3225 = vmatmul.msk.bf16.gmra.mxu2 %vm696_vm2, %v4296_v8  ;;  %v4303_v5 = vadd.f32 %v1739_v43, %v1471_v12  ;;  %v1811_v43 = vrot.slane %v3416_v32, 2 }
 0x21d   : > { %3246 = vmatmul.msk.bf16.gmra.mxu3 %vm696_vm2, %v2255_v37  ;;  %v2258_v12 = vor.u32 %v2257_v47, %v2256_v29  ;;  %v2260_v47 = vrot.slane %v3701_v61, 2 }
 0x21f   : > { %3267 = vmatmul.msk.bf16.gmra.mxu0 %vm696_vm2, %v2550_v0  ;;  %v1254_v60 = vpop.f32.mrf.mxu2  ;;  %v2259_v38 = vsel %vm2220_vm6, %v2254_v23, %v2258_v12 }
 0x220   : > { %v1297_v49 = vadd.f32 %v1254_v60, %v1018_v3  ;;  %v1429_v30 = vpop.f32.mrf.mxu3  ;;  %v1019_v44 = vpop.f32.mrf.mxu1  ;;  %v4315_v60 = vsel %vm1789_vm5, %v1809_v62, %v1811_v43 }
 0x221   : > { %v1020_v20 = vadd.f32 %v1019_v44, %v4816_v21 }
 0x222   : > { %v1472_v39 = vadd.f32 %v1429_v30, %v1297_v49 }
 0x224   : > { %v1744_v28 = vpop.f32.mrf.mxu0  ;;  %v4310_v58 = vadd.f32 %v1742_v53, %v1472_v39  ;;  %v2552_v53 = vsel %vm2533_vm7, %v2549_v14, %v2551_v18  ;;  %v4331_v14 = vld [vmem:[%s4670_s3] ss:$0 sm:$0xff] }
 0x227   : > { %v1256_v51 = vpop.f32.mrf.mxu2 }
 0x228   : > { %v1298_v37 = vadd.f32 %v1256_v51, %v1020_v20  ;;  %v1431_v0 = vpop.f32.mrf.mxu3  ;;  %v1903_v3 = vpop.f32.mrf.mxu1 }
 0x229   : > { %v2003_v62 = vadd.f32 %v1903_v3, %v3971_v4  ;;  %v3417_v4 = vld [vmem:[%s3497_s6 + $0x70] sm:$0xff] }
 0x22a   : > { %v1473_v63 = vadd.f32 %v1431_v0, %v1298_v37  ;;  %v1813_v20 = vrot.slane %v3417_v4, 2 }
 0x22b   : > { %3205 = vmatmul.msk.bf16.gmra.mxu1 %vm696_vm2, %v1808_v42 }
 0x22c   : > { %v2647_v49 = vpop.f32.mrf.mxu0  ;;  %3226 = vmatmul.msk.bf16.gmra.mxu2 %vm696_vm2, %v4315_v60  ;;  %v4322_v30 = vadd.f32 %v1744_v28, %v1473_v63  ;;  %v2261_v28 = vrot.slane %v3683_v56, 3  ;;  %v4340_v61 = vsel %vm1789_vm5, %v1811_v43, %v1813_v20 }
 0x22d   : > { %3247 = vmatmul.msk.bf16.gmra.mxu3 %vm696_vm2, %v2259_v38 }
 0x22e   : > { %v2262_v0 = vor.u32 %v2261_v28, %v2260_v47 }
 0x22f   : > { %3268 = vmatmul.msk.bf16.gmra.mxu0 %vm696_vm2, %v2552_v53  ;;  %v2078_v44 = vpop.f32.mrf.mxu2  ;;  %v2553_v53 = vrot.slane %v3417_v4, 3 }
 0x230   : > { %v2178_v23 = vadd.f32 %v2078_v44, %v2003_v62  ;;  %v2391_v39 = vpop.f32.mrf.mxu3  ;;  %v1905_v42 = vpop.f32.mrf.mxu1 }
 0x231   : > { %v2004_v37 = vadd.f32 %v1905_v42, %v3980_v33  ;;  %v2554_v43 = vsel %vm2533_vm7, %v2551_v18, %v2553_v53  ;;  %v2264_v18 = vrot.slane %v3545_v25, 2 }
 0x232   : > { %v2491_v29 = vadd.f32 %v2391_v39, %v2178_v23 }
 0x234   : > { %v2747_v32 = vadd.f32 %v2647_v49, %v2491_v29  ;;  %v2649_v21 = vpop.f32.mrf.mxu0  ;;  %v2263_v49 = vsel %vm2220_vm6, %v2258_v12, %v2262_v0 }
 0x236   : > { %v2791_v51 = vadd.f32 %v4331_v14, %v2747_v32  ;;  %v2265_v32 = vrot.slane %v3542_v24, 3 }
 0x237   : > { %v2080_v3 = vpop.f32.mrf.mxu2 }
 0x238   : > { %3325 = vtanh.f32 %v2791_v51  ;;  %v2179_v63 = vadd.f32 %v2080_v3, %v2004_v37  ;;  %v2393_v38 = vpop.f32.mrf.mxu3  ;;  %v1908_v62 = vpop.f32.mrf.mxu1  ;;  %v3418_v51 = vld [vmem:[%s3497_s6 + $0x78] sm:$0xff] }
 0x239   : > { %v2005_v39 = vadd.f32 %v1908_v62, %v3987_v50  ;;  %v1815_v37 = vrot.slane %v3418_v51, 2  ;;  %v2555_v25 = vrot.slane %v3418_v51, 3 }
 0x23a   : > { %v2492_v56 = vadd.f32 %v2393_v38, %v2179_v63  ;;  %v2266_v38 = vor.u32 %v2265_v32, %v2264_v18 }
 0x23b   : > { %3206 = vmatmul.msk.bf16.gmra.mxu1 %vm696_vm2, %v4296_v8  ;;  %v4367_v24 = vsel %vm1789_vm5, %v1813_v20, %v1815_v37 }
 0x23c   : > { %v2748_v33 = vadd.f32 %v2649_v21, %v2492_v56  ;;  %v2652_v44 = vpop.f32.mrf.mxu0  ;;  %3227 = vmatmul.msk.bf16.gmra.mxu2 %vm696_vm2, %v4340_v61 }
 0x23d   : > { %3248 = vmatmul.msk.bf16.gmra.mxu3 %vm696_vm2, %v2263_v49 }
 0x23e   : > { %v3326_v12 = vpop.eup %3325  ;;  %v2792_v23 = vadd.f32 %v4331_v14, %v2748_v33 }
 0x23f   : > { %2872 = vst.msk [vmem:[%s4346_s28] sm:$0xff] %vm2871_vm8, %v3326_v12  ;;  %3269 = vmatmul.msk.bf16.gmra.mxu0 %vm696_vm2, %v2554_v43  ;;  %v2083_v42 = vpop.f32.mrf.mxu2  ;;  %v2267_v43 = vsel %vm2220_vm6, %v2262_v0, %v2266_v38 }
 0x240   : > { %3327 = vtanh.f32 %v2792_v23  ;;  %v2180_v8 = vadd.f32 %v2083_v42, %v2005_v39  ;;  %v2396_v29 = vpop.f32.mrf.mxu3  ;;  %v1910_v47 = vpop.f32.mrf.mxu1 }
 0x241   : > { %v2006_v63 = vadd.f32 %v1910_v47, %v3996_v1  ;;  %v2556_v1 = vsel %vm2533_vm7, %v2553_v53, %v2555_v25  ;;  %v2268_v53 = vrot.slane %v4759_v13, 2 }
 0x242   : > { %v2493_v28 = vadd.f32 %v2396_v29, %v2180_v8 }
 0x244   : > { %v2749_v21 = vadd.f32 %v2652_v44, %v2493_v28  ;;  %v2654_v4 = vpop.f32.mrf.mxu0  ;;  %v2269_v28 = vrot.slane %v4760_v52, 3 }
 0x246   : > { %v3328_v50 = vpop.eup %3327  ;;  %v2793_v3 = vadd.f32 %v4331_v14, %v2749_v21  ;;  %v3419_v21 = vld [vmem:[%s3497_s6 + $0x80] sm:$0xff] }
 0x247   : > { %2873 = vst.msk [vmem:[%s4346_s28 + $0x8] sm:$0xff] %vm2871_vm8, %v3328_v50  ;;  %v2085_v62 = vpop.f32.mrf.mxu2  ;;  %v2557_v13 = vrot.slane %v3419_v21, 3 }
 0x248   : > { %3329 = vtanh.f32 %v2793_v3  ;;  %v2181_v56 = vadd.f32 %v2085_v62, %v2006_v63  ;;  %v2398_v49 = vpop.f32.mrf.mxu3  ;;  %v1913_v33 = vpop.f32.mrf.mxu1  ;;  %v2270_v3 = vor.u32 %v2269_v28, %v2268_v53 }
 0x249   : > { %v2007_v42 = vadd.f32 %v1913_v33, %v4003_v15 }
 0x24a   : > { %v2494_v44 = vadd.f32 %v2398_v49, %v2181_v56 }
 0x24b   : > { %3207 = vmatmul.msk.bf16.gmra.mxu1 %vm696_vm2, %v4315_v60 }
 0x24c   : > { %v2750_v12 = vadd.f32 %v2654_v4, %v2494_v44  ;;  %v2657_v23 = vpop.f32.mrf.mxu0  ;;  %3228 = vmatmul.msk.bf16.gmra.mxu2 %vm696_vm2, %v4367_v24  ;;  %v1817_v4 = vrot.slane %v3419_v21, 2  ;;  %v2271_v44 = vsel %vm2220_vm6, %v2266_v38, %v2270_v3 }
 0x24d   : > { %3249 = vmatmul.msk.bf16.gmra.mxu3 %vm696_vm2, %v2267_v43 }
 0x24e   : > { %v3330_v39 = vpop.eup %3329  ;;  %v2794_v20 = vadd.f32 %v4331_v14, %v2750_v12  ;;  %v4389_v52 = vsel %vm1789_vm5, %v1815_v37, %v1817_v4 }
 0x24f   : > { %2874 = vst.msk [vmem:[%s4346_s28 + $0x10] sm:$0xff] %vm2871_vm8, %v3330_v39  ;;  %3270 = vmatmul.msk.bf16.gmra.mxu0 %vm696_vm2, %v2556_v1  ;;  %v2088_v0 = vpop.f32.mrf.mxu2 }
 0x250   : > { %3331 = vtanh.f32 %v2794_v20  ;;  %v2182_v60 = vadd.f32 %v2088_v0, %v2007_v42  ;;  %v2401_v8 = vpop.f32.mrf.mxu3  ;;  %v1915_v29 = vpop.f32.mrf.mxu1  ;;  %v2273_v0 = vrot.slane %v4764_v34, 3 }
 0x251   : > { %v2008_v50 = vadd.f32 %v1915_v29, %v4012_v2  ;;  %v2558_v2 = vsel %vm2533_vm7, %v2555_v25, %v2557_v13  ;;  %v2272_v25 = vrot.slane %v4763_v54, 2  ;;  %v3420_v29 = vld [vmem:[%s3497_s6 + $0x88] sm:$0xff] }
 0x252   : > { %v2495_v47 = vadd.f32 %v2401_v8, %v2182_v60  ;;  %v2559_v54 = vrot.slane %v3420_v29, 3 }
 0x254   : > { %v2751_v18 = vadd.f32 %v2657_v23, %v2495_v47  ;;  %v2659_v32 = vpop.f32.mrf.mxu0  ;;  %v1819_v47 = vrot.slane %v3420_v29, 2 }
 0x256   : > { %v3332_v15 = vpop.eup %3331  ;;  %v2795_v51 = vadd.f32 %v4331_v14, %v2751_v18  ;;  %v2274_v18 = vor.u32 %v2273_v0, %v2272_v25  ;;  %v4411_v34 = vsel %vm1789_vm5, %v1817_v4, %v1819_v47 }
 0x257   : > { %2875 = vst.msk [vmem:[%s4346_s28 + $0x18] sm:$0xff] %vm2871_vm8, %v3332_v15  ;;  %v2090_v63 = vpop.f32.mrf.mxu2 }
 0x258   : > { %3333 = vtanh.f32 %v2795_v51  ;;  %v2183_v62 = vadd.f32 %v2090_v63, %v2008_v50  ;;  %v2403_v56 = vpop.f32.mrf.mxu3  ;;  %v1918_v49 = vpop.f32.mrf.mxu1  ;;  %v2275_v63 = vsel %vm2220_vm6, %v2270_v3, %v2274_v18 }
 0x259   : > { %v2009_v1 = vadd.f32 %v1918_v49, %v4019_v22 }
 0x25a   : > { %v2496_v33 = vadd.f32 %v2403_v56, %v2183_v62 }
 0x25b   : > { %3208 = vmatmul.msk.bf16.gmra.mxu1 %vm696_vm2, %v4340_v61 }
 0x25c   : > { %v2752_v43 = vadd.f32 %v2659_v32, %v2496_v33  ;;  %v2662_v12 = vpop.f32.mrf.mxu0  ;;  %3229 = vmatmul.msk.bf16.gmra.mxu2 %vm696_vm2, %v4389_v52 }
 0x25d   : > { %3250 = vmatmul.msk.bf16.gmra.mxu3 %vm696_vm2, %v2271_v44 }
 0x25e   : > { %v3334_v23 = vpop.eup %3333  ;;  %v2796_v37 = vadd.f32 %v4331_v14, %v2752_v43 }
 0x25f   : > { %2876 = vst.msk [vmem:[%s4346_s28 + $0x20] sm:$0xff] %vm2871_vm8, %v3334_v23  ;;  %3271 = vmatmul.msk.bf16.gmra.mxu0 %vm696_vm2, %v2558_v2  ;;  %v2093_v38 = vpop.f32.mrf.mxu2  ;;  %v2277_v2 = vrot.slane %v4767_v48, 3 }
 0x260   : > { %3335 = vtanh.f32 %v2796_v37  ;;  %v2184_v61 = vadd.f32 %v2093_v38, %v2009_v1  ;;  %v2406_v39 = vpop.f32.mrf.mxu3  ;;  %v1920_v20 = vpop.f32.mrf.mxu1  ;;  %v3421_v1 = vld [vmem:[%s3497_s6 + $0x90] sm:$0xff] }
 0x261   : > { %v2010_v28 = vadd.f32 %v1920_v20, %v4028_v40  ;;  %v2560_v40 = vsel %vm2533_vm7, %v2557_v13, %v2559_v54  ;;  %v2276_v13 = vrot.slane %v3733_v31, 2  ;;  %v1821_v38 = vrot.slane %v3421_v1, 2 }
 0x262   : > { %v2497_v42 = vadd.f32 %v2406_v39, %v2184_v61  ;;  %v4817_v39 = vld [vmem:[#allocation14_spill] sm:$0xff]  ;;  %v2561_v31 = vrot.slane %v3421_v1, 3 }
 0x263   : > { %v4433_v48 = vsel %vm1789_vm5, %v1819_v47, %v1821_v38 }
 0x264   : > { %v2753_v60 = vadd.f32 %v2662_v12, %v2497_v42  ;;  %v2664_v8 = vpop.f32.mrf.mxu0  ;;  %v2278_v42 = vor.u32 %v2277_v2, %v2276_v13 }
 0x266   : > { %v3336_v22 = vpop.eup %3335  ;;  %v2797_v53 = vadd.f32 %v4331_v14, %v2753_v60 }
 0x267   : > { %2877 = vst.msk [vmem:[%s4346_s28 + $0x28] sm:$0xff] %vm2871_vm8, %v3336_v22  ;;  %v2095_v32 = vpop.f32.mrf.mxu2  ;;  %v2279_v22 = vsel %vm2220_vm6, %v2274_v18, %v2278_v42 }
 0x268   : > { %3337 = vtanh.f32 %v2797_v53  ;;  %v2185_v21 = vadd.f32 %v2095_v32, %v2010_v28  ;;  %v2408_v15 = vpop.f32.mrf.mxu3  ;;  %v1923_v51 = vpop.f32.mrf.mxu1  ;;  %v2562_v32 = vsel %vm2533_vm7, %v2559_v54, %v2561_v31  ;;  %v2280_v54 = vrot.slane %v3779_v7, 2 }
 0x269   : > { %v2011_v33 = vadd.f32 %v1923_v51, %v4035_v19 }
 0x26a   : > { %v2498_v50 = vadd.f32 %v2408_v15, %v2185_v21 }
 0x26b   : > { %3209 = vmatmul.msk.bf16.gmra.mxu1 %vm696_vm2, %v4367_v24 }
 0x26c   : > { %v2754_v62 = vadd.f32 %v2664_v8, %v2498_v50  ;;  %v2667_v56 = vpop.f32.mrf.mxu0  ;;  %3230 = vmatmul.msk.bf16.gmra.mxu2 %vm696_vm2, %v4411_v34 }
 0x26d   : > { %3251 = vmatmul.msk.bf16.gmra.mxu3 %vm696_vm2, %v2275_v63 }
 0x26e   : > { %v3338_v49 = vpop.eup %3337  ;;  %v2798_v4 = vadd.f32 %v4331_v14, %v2754_v62  ;;  %v2281_v62 = vrot.slane %v3736_v57, 3 }
 0x26f   : > { %2878 = vst.msk [vmem:[%s4346_s28 + $0x30] sm:$0xff] %vm2871_vm8, %v3338_v49  ;;  %3272 = vmatmul.msk.bf16.gmra.mxu0 %vm696_vm2, %v2560_v40  ;;  %v2098_v3 = vpop.f32.mrf.mxu2  ;;  %v3422_v49 = vld [vmem:[%s3497_s6 + $0x98] sm:$0xff] }
 0x270   : > { %3339 = vtanh.f32 %v2798_v4  ;;  %v2186_v24 = vadd.f32 %v2098_v3, %v2011_v33  ;;  %v2411_v44 = vpop.f32.mrf.mxu3  ;;  %v1925_v43 = vpop.f32.mrf.mxu1  ;;  %v1823_v4 = vrot.slane %v3422_v49, 2  ;;  %v4818_v3 = vld [vmem:[#allocation9_spill] sm:$0xff]  ;;  %v2563_v7 = vrot.slane %v3422_v49, 3 }
 0x271   : > { %v2012_v20 = vadd.f32 %v1925_v43, %v4817_v39 }
 0x272   : > { %v2499_v12 = vadd.f32 %v2411_v44, %v2186_v24  ;;  %v2282_v44 = vor.u32 %v2281_v62, %v2280_v54  ;;  %v4455_v57 = vsel %vm1789_vm5, %v1821_v38, %v1823_v4 }
 0x274   : > { %v2755_v23 = vadd.f32 %v2667_v56, %v2499_v12  ;;  %v2669_v37 = vpop.f32.mrf.mxu0 }
 0x276   : > { %v3340_v19 = vpop.eup %3339  ;;  %v2799_v61 = vadd.f32 %v4331_v14, %v2755_v23 }
 0x277   : > { %2879 = vst.msk [vmem:[%s4346_s28 + $0x38] sm:$0xff] %vm2871_vm8, %v3340_v19  ;;  %v2100_v25 = vpop.f32.mrf.mxu2 }
 0x278   : > { %3341 = vtanh.f32 %v2799_v61  ;;  %v2187_v0 = vadd.f32 %v2100_v25, %v2012_v20  ;;  %v2413_v60 = vpop.f32.mrf.mxu3  ;;  %v1928_v8 = vpop.f32.mrf.mxu1  ;;  %v2564_v61 = vsel %vm2533_vm7, %v2561_v31, %v2563_v7  ;;  %v4819_v31 = vshrl.u32 %v3749_v27, 16 }
 0x279   : > { %v2013_v15 = vadd.f32 %v1928_v8, %v4051_v55 }
 0x27a   : > { %v2500_v29 = vadd.f32 %v2413_v60, %v2187_v0  ;;  %v2284_v8 = vrot.slane %v4819_v31, 2 }
 0x27b   : > { %3210 = vmatmul.msk.bf16.gmra.mxu1 %vm696_vm2, %v4389_v52 }
 0x27c   : > { %v2756_v53 = vadd.f32 %v2669_v37, %v2500_v29  ;;  %v2672_v28 = vpop.f32.mrf.mxu0  ;;  %3231 = vmatmul.msk.bf16.gmra.mxu2 %vm696_vm2, %v4433_v48  ;;  %v2283_v37 = vsel %vm2220_vm6, %v2278_v42, %v2282_v44  ;;  %v4820_v29 = vshll.u32 %v3749_v27, 16 }
 0x27d   : > { %3252 = vmatmul.msk.bf16.gmra.mxu3 %vm696_vm2, %v2279_v22 }
 0x27e   : > { %v3342_v21 = vpop.eup %3341  ;;  %v2800_v47 = vadd.f32 %v4331_v14, %v2756_v53  ;;  %v2285_v22 = vrot.slane %v4820_v29, 3 }
 0x27f   : > { %2880 = vst.msk [vmem:[%s4346_s28 + $0x40] sm:$0xff] %vm2871_vm8, %v3342_v21  ;;  %3273 = vmatmul.msk.bf16.gmra.mxu0 %vm696_vm2, %v2562_v32  ;;  %v2103_v18 = vpop.f32.mrf.mxu2 }
 0x280   : > { %3343 = vtanh.f32 %v2800_v47  ;;  %v2188_v52 = vadd.f32 %v2103_v18, %v2013_v15  ;;  %v2416_v51 = vpop.f32.mrf.mxu3  ;;  %v1930_v50 = vpop.f32.mrf.mxu1  ;;  %v2286_v18 = vor.u32 %v2285_v22, %v2284_v8 }
 0x281   : > { %v2014_v24 = vadd.f32 %v1930_v50, %v4818_v3 }
 0x282   : > { %v2501_v63 = vadd.f32 %v2416_v51, %v2188_v52 }
 0x284   : > { %v2757_v56 = vadd.f32 %v2672_v28, %v2501_v63  ;;  %v2674_v40 = vpop.f32.mrf.mxu0 }
 0x286   : > { %v3344_v55 = vpop.eup %3343  ;;  %v2801_v33 = vadd.f32 %v4331_v14, %v2757_v56  ;;  %v2287_v56 = vsel %vm2220_vm6, %v2282_v44, %v2286_v18 }
 0x287   : > { %2881 = vst.msk [vmem:[%s4346_s28 + $0x48] sm:$0xff] %vm2871_vm8, %v3344_v55  ;;  %v2105_v43 = vpop.f32.mrf.mxu2 }
 0x288   : > { %3345 = vtanh.f32 %v2801_v33  ;;  %v2189_v12 = vadd.f32 %v2105_v43, %v2014_v24  ;;  %v2418_v13 = vpop.f32.mrf.mxu3  ;;  %v1933_v2 = vpop.f32.mrf.mxu1 }
 0x289   : > { %v2015_v20 = vadd.f32 %v1933_v2, %v4067_v59  ;;  %v3423_v59 = vld [vmem:[%s3741_s12] sm:$0xff] }
 0x28a   : > { %v2502_v23 = vadd.f32 %v2418_v13, %v2189_v12  ;;  %v1825_v32 = vrot.slane %v3423_v59, 2  ;;  %v2565_v63 = vrot.slane %v3423_v59, 3  ;;  %v4821_v12 = vshrl.u32 %v4117_v10, 16  ;;  %v4518_v59 = vld [vmem:[%s3741_s12 + $0x10] sm:$0xff] }
 0x28b   : > { %3211 = vmatmul.msk.bf16.gmra.mxu1 %vm696_vm2, %v4411_v34 }
 0x28c   : > { %v2758_v1 = vadd.f32 %v2674_v40, %v2502_v23  ;;  %v2677_v19 = vpop.f32.mrf.mxu0  ;;  %3232 = vmatmul.msk.bf16.gmra.mxu2 %vm696_vm2, %v4455_v57  ;;  %v4479_v54 = vsel %vm1789_vm5, %v1823_v4, %v1825_v32  ;;  %v2288_v13 = vrot.slane %v4821_v12, 2 }
 0x28d   : > { %3253 = vmatmul.msk.bf16.gmra.mxu3 %vm696_vm2, %v2283_v37 }
 0x28e   : > { %v3346_v39 = vpop.eup %3345  ;;  %v2802_v38 = vadd.f32 %v4331_v14, %v2758_v1 }
 0x28f   : > { %2882 = vst.msk [vmem:[%s4346_s28 + $0x50] sm:$0xff] %vm2871_vm8, %v3346_v39  ;;  %3274 = vmatmul.msk.bf16.gmra.mxu0 %vm696_vm2, %v2564_v61  ;;  %v2108_v42 = vpop.f32.mrf.mxu2 }
 0x290   : > { %3347 = vtanh.f32 %v2802_v38  ;;  %v2190_v34 = vadd.f32 %v2108_v42, %v2015_v20  ;;  %v2421_v25 = vpop.f32.mrf.mxu3  ;;  %v1935_v0 = vpop.f32.mrf.mxu1 }
 0x291   : > { %v2016_v15 = vadd.f32 %v1935_v0, %v4076_v9  ;;  %v2566_v9 = vsel %vm2533_vm7, %v2563_v7, %v2565_v63  ;;  %v4822_v7 = vshll.u32 %v4117_v10, 16 }
 0x292   : > { %v2503_v60 = vadd.f32 %v2421_v25, %v2190_v34 }
 0x293   : > { %v2289_v2 = vrot.slane %v4822_v7, 3 }
 0x294   : > { %v2759_v53 = vadd.f32 %v2677_v19, %v2503_v60  ;;  %v2679_v28 = vpop.f32.mrf.mxu0 }
 0x295   : > { %v2290_v38 = vor.u32 %v2289_v2, %v2288_v13 }
 0x296   : > { %v3348_v21 = vpop.eup %3347  ;;  %v2803_v47 = vadd.f32 %v4331_v14, %v2759_v53 }
 0x297   : > { %2883 = vst.msk [vmem:[%s4346_s28 + $0x58] sm:$0xff] %vm2871_vm8, %v3348_v21  ;;  %v2110_v52 = vpop.f32.mrf.mxu2  ;;  %v2291_v31 = vsel %vm2220_vm6, %v2286_v18, %v2290_v38  ;;  %v2296_v21 = vshll.u32 %v4518_v59, 16 }
 0x298   : > { %3349 = vtanh.f32 %v2803_v47  ;;  %v2191_v51 = vadd.f32 %v2110_v52, %v2016_v15  ;;  %v2423_v50 = vpop.f32.mrf.mxu3  ;;  %v1938_v27 = vpop.f32.mrf.mxu1 }
 0x299   : > { %v2017_v33 = vadd.f32 %v1938_v27, %v4083_v41  ;;  %v3424_v41 = vld [vmem:[%s3741_s12 + $0x8] sm:$0xff]  ;;  %v2051_v27 = vrot.slane %v4518_v59, 2 }
 0x29a   : > { %v2504_v62 = vadd.f32 %v2423_v50, %v2191_v51  ;;  %v4498_v1 = vrot.slane %v3424_v41, 2  ;;  %v2567_v10 = vrot.slane %v3424_v41, 3  ;;  %v2298_v50 = vrot.slane %v2296_v21, 3 }
 0x29b   : > { %3212 = vmatmul.msk.bf16.gmra.mxu1 %vm696_vm2, %v4433_v48 }
 0x29c   : > { %v2760_v40 = vadd.f32 %v2679_v28, %v2504_v62  ;;  %v2682_v49 = vpop.f32.mrf.mxu0  ;;  %3233 = vmatmul.msk.bf16.gmra.mxu2 %vm696_vm2, %v4479_v54  ;;  %v4506_v0 = vsel %vm1789_vm5, %v1825_v32, %v4498_v1  ;;  %v2568_v29 = vsel %vm2533_vm7, %v2565_v63, %v2567_v10  ;;  %v2293_v32 = vshrl.u32 %v4518_v59, 16 }
 0x29d   : > { %3254 = vmatmul.msk.bf16.gmra.mxu3 %vm696_vm2, %v2287_v56 }
 0x29e   : > { %v3350_v55 = vpop.eup %3349  ;;  %v2804_v4 = vadd.f32 %v4331_v14, %v2760_v40  ;;  %v2295_v51 = vrot.slane %v2293_v32, 2 }
 0x29f   : > { %2884 = vst.msk [vmem:[%s4346_s28 + $0x60] sm:$0xff] %vm2871_vm8, %v3350_v55  ;;  %3275 = vmatmul.msk.bf16.gmra.mxu0 %vm696_vm2, %v2566_v9  ;;  %v2113_v3 = vpop.f32.mrf.mxu2 }
 0x2a0   : > { %3351 = vtanh.f32 %v2804_v4  ;;  %v2192_v48 = vadd.f32 %v2113_v3, %v2017_v33  ;;  %v2426_v24 = vpop.f32.mrf.mxu3  ;;  %v1940_v44 = vpop.f32.mrf.mxu1  ;;  %v2569_v33 = vrot.slane %v4518_v59, 3 }
 0x2a1   : > { %v2018_v39 = vadd.f32 %v1940_v44, %v4095_v46 }
 0x2a2   : > { %v2505_v43 = vadd.f32 %v2426_v24, %v2192_v48  ;;  %v2052_v48 = vsel %vm1789_vm5, %v4498_v1, %v2051_v27  ;;  %v2570_v13 = vsel %vm2533_vm7, %v2567_v10, %v2569_v33 }
 0x2a4   : > { %v2761_v23 = vadd.f32 %v2682_v49, %v2505_v43  ;;  %v2684_v37 = vpop.f32.mrf.mxu0  ;;  %v2299_v49 = vor.u32 %v2298_v50, %v2295_v51  ;;  %v4535_v43 = vld [vmem:[%s3741_s12 + $0x18] sm:$0xff] }
 0x2a5   : > { %v2305_v41 = vshll.u32 %v4535_v43, 16  ;;  %v2571_v59 = vrot.slane %v4535_v43, 3 }
 0x2a6   : > { %v3352_v19 = vpop.eup %3351  ;;  %v2805_v61 = vadd.f32 %v4331_v14, %v2761_v23  ;;  %v2300_v44 = vsel %vm2220_vm6, %v2290_v38, %v2299_v49 }
 0x2a7   : > { %2885 = vst.msk [vmem:[%s4346_s28 + $0x68] sm:$0xff] %vm2871_vm8, %v3352_v19  ;;  %v2115_v20 = vpop.f32.mrf.mxu2 }
 0x2a8   : > { %3353 = vtanh.f32 %v2805_v61  ;;  %v2193_v42 = vadd.f32 %v2115_v20, %v2018_v39  ;;  %v2428_v34 = vpop.f32.mrf.mxu3  ;;  %v1943_v25 = vpop.f32.mrf.mxu1 }
 0x2a9   : > { %v2019_v28 = vadd.f32 %v1943_v25, %v4106_v36  ;;  %v2053_v25 = vrot.slane %v4535_v43, 2 }
 0x2aa   : > { %v2506_v60 = vadd.f32 %v2428_v34, %v2193_v42  ;;  %v2307_v42 = vrot.slane %v2305_v41, 3  ;;  %v3312_v34 = vld [vmem:[%s3741_s12 + $0x20] sm:$0xf] }
 0x2ab   : > { %3213 = vmatmul.msk.bf16.gmra.mxu1 %vm696_vm2, %v4455_v57  ;;  %v2054_v21 = vsel %vm1789_vm5, %v2051_v27, %v2053_v25 }
 0x2ac   : > { %v2762_v8 = vadd.f32 %v2684_v37, %v2506_v60  ;;  %v2687_v46 = vpop.f32.mrf.mxu0  ;;  %3234 = vmatmul.msk.bf16.gmra.mxu2 %vm696_vm2, %v4506_v0  ;;  %v2302_v37 = vshrl.u32 %v4535_v43, 16 }
 0x2ad   : > { %3255 = vmatmul.msk.bf16.gmra.mxu3 %vm696_vm2, %v2291_v31 }
 0x2ae   : > { %v3354_v22 = vpop.eup %3353  ;;  %v2806_v53 = vadd.f32 %v4331_v14, %v2762_v8  ;;  %v2304_v20 = vrot.slane %v2302_v37, 2 }
 0x2af   : > { %2886 = vst.msk [vmem:[%s4346_s28 + $0x70] sm:$0xff] %vm2871_vm8, %v3354_v22  ;;  %3276 = vmatmul.msk.bf16.gmra.mxu0 %vm696_vm2, %v2568_v29  ;;  %v2118_v57 = vpop.f32.mrf.mxu2  ;;  %v506_v29 = vunpack.c.l.bf16 %v3312_v34 }
 0x2b0   : > { %3355 = vtanh.f32 %v2806_v53  ;;  %v2194_v47 = vadd.f32 %v2118_v57, %v2019_v28  ;;  %v2431_v15 = vpop.f32.mrf.mxu3  ;;  %v1945_v18 = vpop.f32.mrf.mxu1 }
 0x2b1   : > { %v2020_v40 = vadd.f32 %v1945_v18, %v4119_v16 }
 0x2b2   : > { %v2507_v52 = vadd.f32 %v2431_v15, %v2194_v47  ;;  %v2045_v15 = vpack.c.bf16 %v506_v29, %v506_v29 }
 0x2b4   : > { %v2763_v36 = vadd.f32 %v2687_v46, %v2507_v52  ;;  %v2689_v63 = vpop.f32.mrf.mxu0  ;;  %v2308_v46 = vor.u32 %v2307_v42, %v2304_v20  ;;  %v2572_v52 = vsel %vm2533_vm7, %v2569_v33, %v2571_v59  ;;  %v2311_v27 = vshrl.u32 %v2045_v15, 16 }
 0x2b5   : > { %v2573_v41 = vrot.slane %v2045_v15, 3 }
 0x2b6   : > { %v3356_v62 = vpop.eup %3355  ;;  %v2807_v56 = vadd.f32 %v4331_v14, %v2763_v36  ;;  %v2309_v47 = vsel %vm2220_vm6, %v2299_v49, %v2308_v46  ;;  %v4823_v36 = vld [vmem:[#allocation21_spill] sm:$0xff] }
 0x2b7   : > { %2887 = vst.msk [vmem:[%s4346_s28 + $0x78] sm:$0xff] %vm2871_vm8, %v3356_v62  ;;  %v2120_v9 = vpop.f32.mrf.mxu2  ;;  %v2314_v62 = vshll.u32 %v2045_v15, 16  ;;  %v2574_v34 = vsel %vm2533_vm7, %v2571_v59, %v2573_v41 }
 0x2b8   : > { %3357 = vtanh.f32 %v2807_v56  ;;  %v2195_v55 = vadd.f32 %v2120_v9, %v2020_v40  ;;  %v2433_v4 = vpop.f32.mrf.mxu3  ;;  %v1948_v3 = vpop.f32.mrf.mxu1 }
 0x2b9   : > { %v2021_v23 = vadd.f32 %v1948_v3, %v4131_v6 }
 0x2ba   : > { %v2508_v24 = vadd.f32 %v2433_v4, %v2195_v55  ;;  %v2313_v55 = vrot.slane %v2311_v27, 2  ;;  %v2316_v4 = vrot.slane %v2314_v62, 3 }
 0x2bb   : > { %3214 = vmatmul.msk.bf16.gmra.mxu1 %vm696_vm2, %v4479_v54 }
 0x2bc   : > { %v2764_v16 = vadd.f32 %v2689_v63, %v2508_v24  ;;  %v2692_v12 = vpop.f32.mrf.mxu0  ;;  %3235 = vmatmul.msk.bf16.gmra.mxu2 %vm696_vm2, %v2052_v48  ;;  %v4824_v48 = vld [vmem:[#allocation2_spill] sm:$0xff] }
 0x2bd   : > { %3256 = vmatmul.msk.bf16.gmra.mxu3 %vm696_vm2, %v2300_v44  ;;  %v1829_v24 = vrot.slane %v4824_v48, 2  ;;  %v2055_v44 = vrot.slane %v2045_v15, 2 }
 0x2be   : > { %v3358_v7 = vpop.eup %3357  ;;  %v2808_v2 = vadd.f32 %v4331_v14, %v2764_v16 }
 0x2bf   : > { %2888 = vst.msk [vmem:[%s4346_s28 + $0x80] sm:$0xff] %vm2871_vm8, %v3358_v7  ;;  %3277 = vmatmul.msk.bf16.gmra.mxu0 %vm696_vm2, %v2570_v13  ;;  %v2123_v54 = vpop.f32.mrf.mxu2  ;;  %v2317_v7 = vor.u32 %v2316_v4, %v2313_v55 }
 0x2c0   : > { %3359 = vtanh.f32 %v2808_v2  ;;  %v2196_v19 = vadd.f32 %v2123_v54, %v2021_v23  ;;  %v2436_v61 = vpop.f32.mrf.mxu3  ;;  %v1950_v39 = vpop.f32.mrf.mxu1 }
 0x2c1   : > { %v2022_v8 = vadd.f32 %v1950_v39, %v4143_v17 }
 0x2c2   : > { %v2509_v38 = vadd.f32 %v2436_v61, %v2196_v19  ;;  %v1830_v19 = vsel %vm1789_vm5, %v4498_v1, %v1829_v24  ;;  %v2056_v61 = vsel %vm1789_vm5, %v2053_v25, %v2055_v44  ;;  %v4826_v1 = vld [vmem:[#allocation10_spill] sm:$0xff] }
 0x2c4   : > { %v2765_v10 = vadd.f32 %v2692_v12, %v2509_v38  ;;  %v2694_v6 = vpop.f32.mrf.mxu0  ;;  %v4825_v12 = vld [vmem:[#allocation15_spill] sm:$0xff]  ;;  %v2318_v38 = vsel %vm2220_vm6, %v2308_v46, %v2317_v7 }
 0x2c6   : > { %v3360_v60 = vpop.eup %3359  ;;  %v2809_v31 = vadd.f32 %v4331_v14, %v2765_v10 }
 0x2c7   : > { %2889 = vst.msk [vmem:[%s4346_s28 + $0x88] sm:$0xff] %vm2871_vm8, %v3360_v60  ;;  %v2125_v22 = vpop.f32.mrf.mxu2 }
 0x2c8   : > { %3361 = vtanh.f32 %v2809_v31  ;;  %v2197_v53 = vadd.f32 %v2125_v22, %v2022_v8  ;;  %v2438_v28 = vpop.f32.mrf.mxu3  ;;  %v1953_v32 = vpop.f32.mrf.mxu1 }
 0x2c9   : > { %v2023_v63 = vadd.f32 %v1953_v32, %v4823_v36  ;;  %v4827_v32 = vld [vmem:[#allocation22_spill] sm:$0xff] }
 0x2ca   : > { %v2510_v57 = vadd.f32 %v2438_v28, %v2197_v53 }
 0x2cb   : > { %3215 = vmatmul.msk.bf16.gmra.mxu1 %vm696_vm2, %v4506_v0 }
 0x2cc   : > { %v2766_v18 = vadd.f32 %v2694_v6, %v2510_v57  ;;  %v2697_v17 = vpop.f32.mrf.mxu0  ;;  %3236 = vmatmul.msk.bf16.gmra.mxu2 %vm696_vm2, %v2054_v21 }
 0x2cd   : > { %3257 = vmatmul.msk.bf16.gmra.mxu3 %vm696_vm2, %v2309_v47 }
 0x2ce   : > { %v3362_v51 = vpop.eup %3361  ;;  %v2810_v50 = vadd.f32 %v4331_v14, %v2766_v18 }
 0x2cf   : > { %2890 = vst.msk [vmem:[%s4346_s28 + $0x90] sm:$0xff] %vm2871_vm8, %v3362_v51  ;;  %3278 = vmatmul.msk.bf16.gmra.mxu0 %vm696_vm2, %v2572_v52  ;;  %v2128_v56 = vpop.f32.mrf.mxu2 }
 0x2d0   : > { %3363 = vtanh.f32 %v2810_v50  ;;  %v2198_v0 = vadd.f32 %v2128_v56, %v2023_v63  ;;  %v2441_v40 = vpop.f32.mrf.mxu3  ;;  %v1955_v49 = vpop.f32.mrf.mxu1 }
 0x2d1   : > { %v2024_v13 = vadd.f32 %v1955_v49, %v4825_v12 }
 0x2d2   : > { %v2511_v9 = vadd.f32 %v2441_v40, %v2198_v0 }
 0x2d4   : > { %v2767_v33 = vadd.f32 %v2697_v17, %v2511_v9  ;;  %v2699_v3 = vpop.f32.mrf.mxu0 }
 0x2d6   : > { %v3364_v43 = vpop.eup %3363  ;;  %v2811_v16 = vadd.f32 %v4331_v14, %v2767_v33  ;;  %v4828_v33 = vld [vmem:[#allocation17_spill] sm:$0xff] }
 0x2d7   : > { %2891 = vst.msk [vmem:[%s4346_s28 + $0x98] sm:$0xff] %vm2871_vm8, %v3364_v43  ;;  %v2130_v2 = vpop.f32.mrf.mxu2 }
 0x2d8   : > { %3365 = vtanh.f32 %v2811_v16  ;;  %v2199_v23 = vadd.f32 %v2130_v2, %v2024_v13  ;;  %v2443_v37 = vpop.f32.mrf.mxu3  ;;  %v1958_v54 = vpop.f32.mrf.mxu1  ;;  %v4829_v2 = vld [vmem:[#allocation28_spill] sm:$0xff] }
 0x2d9   : > { %v2025_v60 = vadd.f32 %v1958_v54, %v4826_v1 }
 0x2da   : > { %v2512_v39 = vadd.f32 %v2443_v37, %v2199_v23 }
 0x2db   : > { %3216 = vmatmul.msk.bf16.gmra.mxu1 %vm696_vm2, %v1830_v19 }
 0x2dc   : > { %v2768_v20 = vadd.f32 %v2699_v3, %v2512_v39  ;;  %v2702_v42 = vpop.f32.mrf.mxu0  ;;  %3237 = vmatmul.msk.bf16.gmra.mxu2 %vm696_vm2, %v2056_v61 }
 0x2dd   : > { %3258 = vmatmul.msk.bf16.gmra.mxu3 %vm696_vm2, %v2318_v38 }
 0x2de   : > { %v3366_v10 = vpop.eup %3365  ;;  %v2812_v6 = vadd.f32 %v4331_v14, %v2768_v20 }
 0x2df   : > { %2892 = vst.msk [vmem:[%s4346_s28 + $0xa0] sm:$0xff] %vm2871_vm8, %v3366_v10  ;;  %3279 = vmatmul.msk.bf16.gmra.mxu0 %vm696_vm2, %v2574_v34  ;;  %v2133_v25 = vpop.f32.mrf.mxu2  ;;  %v4830_v34 = vld [vmem:[#allocation24_spill] sm:$0xff] }
 0x2e0   : > { %3367 = vtanh.f32 %v2812_v6  ;;  %v2200_v31 = vadd.f32 %v2133_v25, %v2025_v60  ;;  %v2446_v8 = vpop.f32.mrf.mxu3  ;;  %v1960_v46 = vpop.f32.mrf.mxu1 }
 0x2e1   : > { %v2026_v21 = vadd.f32 %v1960_v46, %v4827_v32 }
 0x2e2   : > { %v2513_v29 = vadd.f32 %v2446_v8, %v2200_v31 }
 0x2e4   : > { %v2769_v22 = vadd.f32 %v2702_v42, %v2513_v29  ;;  %v2704_v53 = vpop.f32.mrf.mxu0 }
 0x2e6   : > { %v3368_v28 = vpop.eup %3367  ;;  %v2813_v59 = vadd.f32 %v4331_v14, %v2769_v22 }
 0x2e7   : > { %2893 = vst.msk [vmem:[%s4346_s28 + $0xa8] sm:$0xff] %vm2871_vm8, %v3368_v28  ;;  %v2135_v57 = vpop.f32.mrf.mxu2 }
 0x2e8   : > { %3369 = vtanh.f32 %v2813_v59  ;;  %v2201_v47 = vadd.f32 %v2135_v57, %v2026_v21  ;;  %v2448_v15 = vpop.f32.mrf.mxu3  ;;  %v1963_v18 = vpop.f32.mrf.mxu1 }
 0x2e9   : > { %v2027_v63 = vadd.f32 %v1963_v18, %v4193_v11 }
 0x2ea   : > { %v2514_v17 = vadd.f32 %v2448_v15, %v2201_v47 }
 0x2ec   : > { %v2770_v52 = vadd.f32 %v2704_v53, %v2514_v17  ;;  %v2707_v51 = vpop.f32.mrf.mxu0  ;;  %v4831_v53 = vld [vmem:[#allocation23_spill] sm:$0xff] }
 0x2ee   : > { %v3370_v50 = vpop.eup %3369  ;;  %v2814_v36 = vadd.f32 %v4331_v14, %v2770_v52 }
 0x2ef   : > { %2894 = vst.msk [vmem:[%s4346_s28 + $0xb0] sm:$0xff] %vm2871_vm8, %v3370_v50  ;;  %v2138_v27 = vpop.f32.mrf.mxu2 }
 0x2f0   : > { %3371 = vtanh.f32 %v2814_v36  ;;  %v2202_v62 = vadd.f32 %v2138_v27, %v2027_v63  ;;  %v2451_v56 = vpop.f32.mrf.mxu3  ;;  %v1965_v0 = vpop.f32.mrf.mxu1 }
 0x2f1   : > { %v2028_v3 = vadd.f32 %v1965_v0, %v4828_v33 }
 0x2f2   : > { %v2515_v40 = vadd.f32 %v2451_v56, %v2202_v62 }
 0x2f4   : > { %v2771_v49 = vadd.f32 %v2707_v51, %v2515_v40  ;;  %v2709_v9 = vpop.f32.mrf.mxu0  ;;  %v4832_v51 = vld [vmem:[#allocation4_spill] sm:$0xff] }
 0x2f6   : > { %v3372_v55 = vpop.eup %3371  ;;  %v2815_v4 = vadd.f32 %v4331_v14, %v2771_v49 }
 0x2f7   : > { %2895 = vst.msk [vmem:[%s4346_s28 + $0xb8] sm:$0xff] %vm2871_vm8, %v3372_v55  ;;  %v2140_v48 = vpop.f32.mrf.mxu2  ;;  %v4833_v55 = vld [vmem:[#allocation3_spill] sm:$0xff] }
 0x2f8   : > { %3373 = vtanh.f32 %v2815_v4  ;;  %v2203_v11 = vadd.f32 %v2140_v48, %v2028_v3  ;;  %v2453_v24 = vpop.f32.mrf.mxu3  ;;  %v1968_v44 = vpop.f32.mrf.mxu1 }
 0x2f9   : > { %v2029_v23 = vadd.f32 %v1968_v44, %v4829_v2 }
 0x2fa   : > { %v2516_v43 = vadd.f32 %v2453_v24, %v2203_v11 }
 0x2fc   : > { %v2772_v16 = vadd.f32 %v2709_v9, %v2516_v43  ;;  %v2712_v12 = vpop.f32.mrf.mxu0 }
 0x2fe   : > { %v3374_v13 = vpop.eup %3373  ;;  %v2816_v7 = vadd.f32 %v4331_v14, %v2772_v16 }
 0x2ff   : > { %2896 = vst.msk [vmem:[%s4346_s28 + $0xc0] sm:$0xff] %vm2871_vm8, %v3374_v13  ;;  %v2143_v37 = vpop.f32.mrf.mxu2  ;;  %v4834_v13 = vld [vmem:[#allocation30_spill] sm:$0xff] }
 0x300   : > { %3375 = vtanh.f32 %v2816_v7  ;;  %v2204_v41 = vadd.f32 %v2143_v37, %v2029_v23  ;;  %v2456_v54 = vpop.f32.mrf.mxu3  ;;  %v1970_v19 = vpop.f32.mrf.mxu1 }
 0x301   : > { %v2030_v10 = vadd.f32 %v1970_v19, %v4830_v34 }
 0x302   : > { %v2517_v61 = vadd.f32 %v2456_v54, %v2204_v41 }
 0x304   : > { %v2773_v39 = vadd.f32 %v2712_v12, %v2517_v61  ;;  %v2714_v38 = vpop.f32.mrf.mxu0 }
 0x306   : > { %v3376_v20 = vpop.eup %3375  ;;  %v2817_v42 = vadd.f32 %v4331_v14, %v2773_v39 }
 0x307   : > { %2897 = vst.msk [vmem:[%s4346_s28 + $0xc8] sm:$0xff] %vm2871_vm8, %v3376_v20  ;;  %v2145_v6 = vpop.f32.mrf.mxu2  ;;  %v4835_v20 = vld [vmem:[#allocation32_spill] sm:$0xff] }
 0x308   : > { %3377 = vtanh.f32 %v2817_v42  ;;  %v2205_v1 = vadd.f32 %v2145_v6, %v2030_v10  ;;  %v2458_v60 = vpop.f32.mrf.mxu3  ;;  %v1973_v25 = vpop.f32.mrf.mxu1 }
 0x309   : > { %v2031_v28 = vadd.f32 %v1973_v25, %v4831_v53 }
 0x30a   : > { %v2518_v31 = vadd.f32 %v2458_v60, %v2205_v1 }
 0x30c   : > { %v2774_v8 = vadd.f32 %v2714_v38, %v2518_v31  ;;  %v2717_v46 = vpop.f32.mrf.mxu0  ;;  %v4625_v38 = vld [vmem:[%s4670_s3] ss:$0 sm:$0xff] }
 0x30e   : > { %v3378_v29 = vpop.eup %3377  ;;  %v2818_v22 = vadd.f32 %v4331_v14, %v2774_v8 }
 0x30f   : > { %2898 = vst.msk [vmem:[%s4346_s28 + $0xd0] sm:$0xff] %vm2871_vm8, %v3378_v29  ;;  %v2148_v59 = vpop.f32.mrf.mxu2  ;;  %v4836_v29 = vld [vmem:[#allocation11_spill] sm:$0xff] }
 0x310   : > { %3379 = vtanh.f32 %v2818_v22  ;;  %v2206_v32 = vadd.f32 %v2148_v59, %v2031_v28  ;;  %v2461_v21 = vpop.f32.mrf.mxu3  ;;  %v1975_v57 = vpop.f32.mrf.mxu1 }
 0x311   : > { %v2032_v50 = vadd.f32 %v1975_v57, %v4832_v51 }
 0x312   : > { %v2519_v47 = vadd.f32 %v2461_v21, %v2206_v32 }
 0x314   : > { %v2775_v15 = vadd.f32 %v2717_v46, %v2519_v47  ;;  %v2719_v18 = vpop.f32.mrf.mxu0 }
 0x316   : > { %v3380_v17 = vpop.eup %3379  ;;  %v2819_v52 = vadd.f32 %v4331_v14, %v2775_v15 }
 0x317   : > { %2899 = vst.msk [vmem:[%s4346_s28 + $0xd8] sm:$0xff] %vm2871_vm8, %v3380_v17  ;;  %v2150_v36 = vpop.f32.mrf.mxu2 }
 0x318   : > { %3381 = vtanh.f32 %v2819_v52  ;;  %v2207_v63 = vadd.f32 %v2150_v36, %v2032_v50  ;;  %v2463_v27 = vpop.f32.mrf.mxu3  ;;  %v1978_v62 = vpop.f32.mrf.mxu1 }
 0x319   : > { %v2033_v4 = vadd.f32 %v1978_v62, %v4833_v55 }
 0x31a   : > { %v2520_v56 = vadd.f32 %v2463_v27, %v2207_v63 }
 0x31c   : > { %v2776_v0 = vadd.f32 %v2719_v18, %v2520_v56  ;;  %v2722_v40 = vpop.f32.mrf.mxu0 }
 0x31e   : > { %v3382_v49 = vpop.eup %3381  ;;  %v2820_v9 = vadd.f32 %v4331_v14, %v2776_v0 }
 0x31f   : > { %2900 = vst.msk [vmem:[%s4346_s28 + $0xe0] sm:$0xff] %vm2871_vm8, %v3382_v49  ;;  %v2153_v33 = vpop.f32.mrf.mxu2 }
 0x320   : > { %3383 = vtanh.f32 %v2820_v9  ;;  %v2208_v3 = vadd.f32 %v2153_v33, %v2033_v4  ;;  %v2466_v48 = vpop.f32.mrf.mxu3  ;;  %v1980_v11 = vpop.f32.mrf.mxu1 }
 0x321   : > { %v2034_v7 = vadd.f32 %v1980_v11, %v4834_v13 }
 0x322   : > { %v2521_v24 = vadd.f32 %v2466_v48, %v2208_v3 }
 0x324   : > { %v2777_v44 = vadd.f32 %v2722_v40, %v2521_v24  ;;  %v2724_v43 = vpop.f32.mrf.mxu0 }
 0x326   : > { %v3384_v16 = vpop.eup %3383  ;;  %v2821_v12 = vadd.f32 %v4331_v14, %v2777_v44 }
 0x327   : > { %2901 = vst.msk [vmem:[%s4346_s28 + $0xe8] sm:$0xff] %vm2871_vm8, %v3384_v16  ;;  %v2155_v2 = vpop.f32.mrf.mxu2 }
 0x328   : > { %3385 = vtanh.f32 %v2821_v12  ;;  %v2209_v23 = vadd.f32 %v2155_v2, %v2034_v7  ;;  %v2468_v37 = vpop.f32.mrf.mxu3  ;;  %v1983_v41 = vpop.f32.mrf.mxu1 }
 0x329   : > { %v2035_v42 = vadd.f32 %v1983_v41, %v4835_v20 }
 0x32a   : > { %v2522_v54 = vadd.f32 %v2468_v37, %v2209_v23 }
 0x32c   : > { %v2778_v19 = vadd.f32 %v2724_v43, %v2522_v54  ;;  %v2727_v61 = vpop.f32.mrf.mxu0 }
 0x32e   : > { %v3386_v39 = vpop.eup %3385  ;;  %v2822_v14 = vadd.f32 %v4625_v38, %v2778_v19 }
 0x32f   : > { %2902 = vst.msk [vmem:[%s4346_s28 + $0xf0] sm:$0xff] %vm2871_vm8, %v3386_v39  ;;  %v2158_v34 = vpop.f32.mrf.mxu2 }
 0x330   : > { %3387 = vtanh.f32 %v2822_v14  ;;  %v2210_v10 = vadd.f32 %v2158_v34, %v2035_v42  ;;  %v2471_v6 = vpop.f32.mrf.mxu3  ;;  %v1985_v1 = vpop.f32.mrf.mxu1 }
 0x331   : > { %v2036_v22 = vadd.f32 %v1985_v1, %v4836_v29 }
 0x332   : > { %v2523_v60 = vadd.f32 %v2471_v6, %v2210_v10 }
 0x334   : > { %v2779_v25 = vadd.f32 %v2727_v61, %v2523_v60  ;;  %v2729_v31 = vpop.f32.mrf.mxu0 }
 0x336   : > { %v3388_v8 = vpop.eup %3387  ;;  %v2823_v46 = vadd.f32 %v4625_v38, %v2779_v25 }
 0x337   : > { %2903 = vst.msk [vmem:[%s4346_s28 + $0xf8] sm:$0xff] %vm2871_vm8, %v3388_v8  ;;  %v2160_v53 = vpop.f32.mrf.mxu2 }
 0x338   : > { %3389 = vtanh.f32 %v2823_v46  ;;  %v2211_v28 = vadd.f32 %v2160_v53, %v2036_v22  ;;  %v2473_v59 = vpop.f32.mrf.mxu3  ;;  %v1988_v32 = vpop.f32.mrf.mxu1 }
 0x339   : > { %v2037_v17 = vadd.f32 %v1988_v32, %v4275_v45 }
 0x33a   : > { %v2524_v21 = vadd.f32 %v2473_v59, %v2211_v28 }
 0x33c   : > { %v2780_v57 = vadd.f32 %v2729_v31, %v2524_v21  ;;  %v2732_v47 = vpop.f32.mrf.mxu0 }
 0x33e   : > { %v3390_v15 = vpop.eup %3389  ;;  %v2824_v18 = vadd.f32 %v4625_v38, %v2780_v57 }
 0x33f   : > { %2904 = vst.msk [vmem:[%s4346_s28 + $0x100] sm:$0xff] %vm2871_vm8, %v3390_v15  ;;  %v2163_v52 = vpop.f32.mrf.mxu2 }
 0x340   : > { %3391 = vtanh.f32 %v2824_v18  ;;  %v2212_v51 = vadd.f32 %v2163_v52, %v2037_v17  ;;  %v2476_v50 = vpop.f32.mrf.mxu3  ;;  %v1990_v36 = vpop.f32.mrf.mxu1 }
 0x341   : > { %v2038_v40 = vadd.f32 %v1990_v36, %v4284_v35 }
 0x342   : > { %v2525_v63 = vadd.f32 %v2476_v50, %v2212_v51 }
 0x344   : > { %v2781_v27 = vadd.f32 %v2732_v47, %v2525_v63  ;;  %v2734_v62 = vpop.f32.mrf.mxu0 }
 0x346   : > { %v3392_v56 = vpop.eup %3391  ;;  %v2825_v0 = vadd.f32 %v4625_v38, %v2781_v27 }
 0x347   : > { %2905 = vst.msk [vmem:[%s4346_s28 + $0x108] sm:$0xff] %vm2871_vm8, %v3392_v56  ;;  %v2165_v49 = vpop.f32.mrf.mxu2 }
 0x348   : > { %3393 = vtanh.f32 %v2825_v0  ;;  %v2213_v45 = vadd.f32 %v2165_v49, %v2038_v40  ;;  %v2478_v9 = vpop.f32.mrf.mxu3  ;;  %v1993_v55 = vpop.f32.mrf.mxu1 }
 0x349   : > { %v2039_v24 = vadd.f32 %v1993_v55, %v4291_v26 }
 0x34a   : > { %v2526_v4 = vadd.f32 %v2478_v9, %v2213_v45 }
 0x34c   : > { %v2782_v33 = vadd.f32 %v2734_v62, %v2526_v4  ;;  %v2737_v3 = vpop.f32.mrf.mxu0 }
 0x34e   : > { %v3394_v48 = vpop.eup %3393  ;;  %v2826_v11 = vadd.f32 %v4625_v38, %v2782_v33 }
 0x34f   : > { %2906 = vst.msk [vmem:[%s4346_s28 + $0x110] sm:$0xff] %vm2871_vm8, %v3394_v48  ;;  %v2168_v44 = vpop.f32.mrf.mxu2 }
 0x350   : > { %3395 = vtanh.f32 %v2826_v11  ;;  %v2214_v35 = vadd.f32 %v2168_v44, %v2039_v24  ;;  %v2481_v43 = vpop.f32.mrf.mxu3  ;;  %v1995_v16 = vpop.f32.mrf.mxu1 }
 0x351   : > { %v2040_v23 = vadd.f32 %v1995_v16, %v4303_v5 }
 0x352   : > { %v2527_v12 = vadd.f32 %v2481_v43, %v2214_v35 }
 0x354   : > { %v2783_v13 = vadd.f32 %v2737_v3, %v2527_v12  ;;  %v2739_v37 = vpop.f32.mrf.mxu0 }
 0x356   : > { %v3396_v7 = vpop.eup %3395  ;;  %v2827_v2 = vadd.f32 %v4625_v38, %v2783_v13 }
 0x357   : > { %2907 = vst.msk [vmem:[%s4346_s28 + $0x118] sm:$0xff] %vm2871_vm8, %v3396_v7  ;;  %v2170_v41 = vpop.f32.mrf.mxu2 }
 0x358   : > { %3397 = vtanh.f32 %v2827_v2  ;;  %v2215_v26 = vadd.f32 %v2170_v41, %v2040_v23  ;;  %v2483_v54 = vpop.f32.mrf.mxu3  ;;  %v1998_v19 = vpop.f32.mrf.mxu1 }
 0x359   : > { %v2041_v42 = vadd.f32 %v1998_v19, %v4310_v58 }
 0x35a   : > { %v2528_v61 = vadd.f32 %v2483_v54, %v2215_v26 }
 0x35c   : > { %v2784_v39 = vadd.f32 %v2739_v37, %v2528_v61  ;;  %v2742_v6 = vpop.f32.mrf.mxu0 }
 0x35e   : > { %v3398_v14 = vpop.eup %3397  ;;  %v2828_v20 = vadd.f32 %v4625_v38, %v2784_v39 }
 0x35f   : > { %2908 = vst.msk [vmem:[%s4346_s28 + $0x120] sm:$0xff] %vm2871_vm8, %v3398_v14  ;;  %v2173_v34 = vpop.f32.mrf.mxu2 }
 0x360   : > { %3399 = vtanh.f32 %v2828_v20  ;;  %v2216_v5 = vadd.f32 %v2173_v34, %v2041_v42  ;;  %v2486_v10 = vpop.f32.mrf.mxu3  ;;  %v2000_v60 = vpop.f32.mrf.mxu1 }
 0x361   : > { %v2042_v46 = vadd.f32 %v2000_v60, %v4322_v30 }
 0x362   : > { %v2529_v1 = vadd.f32 %v2486_v10, %v2216_v5 }
 0x364   : > { %v2785_v25 = vadd.f32 %v2742_v6, %v2529_v1  ;;  %v2744_v28 = vpop.f32.mrf.mxu0 }
 0x366   : > { %v3400_v31 = vpop.eup %3399  ;;  %v2829_v8 = vadd.f32 %v4625_v38, %v2785_v25 }
 0x367   : > { %2909 = vst.msk [vmem:[%s4346_s28 + $0x128] sm:$0xff] %vm2871_vm8, %v3400_v31  ;;  %v2175_v58 = vpop.f32.mrf.mxu2 }
 0x368   : > { %3401 = vtanh.f32 %v2829_v8  ;;  %v2217_v29 = vadd.f32 %v2175_v58, %v2042_v46  ;;  %v2488_v22 = vpop.f32.mrf.mxu3 }
 0x36a   : > { %v2530_v53 = vadd.f32 %v2488_v22, %v2217_v29 }
 0x36c   : > { %v2786_v59 = vadd.f32 %v2744_v28, %v2530_v53 }
 0x36e   : > { %v3402_v32 = vpop.eup %3401  ;;  %v2830_v21 = vadd.f32 %v4625_v38, %v2786_v59 }
 0x36f   : > { %2910 = vst.msk [vmem:[%s4346_s28 + $0x130] sm:$0xff] %vm2871_vm8, %v3402_v32 }
 0x370   : > { %3403 = vtanh.f32 %v2830_v21 }
 0x376   : > { %v3404_v57 = vpop.eup %3403 }
 0x377   : > { %2911 = vst.msk [vmem:[%s4346_s28 + $0x138] sm:$0xff] %vm2871_vm8, %v3404_v57 }
 0x378 PF: > { %s14_s15 = sadd.s32 1, %s3433_s15  }
 0x379   : > { %p11_p6 = scmp.ge.s32.totalorder %s14_s15, 10  }
 0x37b   :  { %13 = sbr.rel (!%p11_p6) target bundleno = 1 (0x1), region = 77 }

</bundles_post_ra>
